<compile_context>
chip_gen: v7x
topology: tpu7x:2x2x1
jax: 0.10.0
libtpu: 0.0.40
codegen_flags: <defaults>
</compile_context>

<pallas_src>
import functools
import math

import jax
import jax.numpy as jnp
from jax.experimental import pallas as pl
from jax.experimental.pallas import tpu as pltpu


_VMEM_LIMIT = 32 * 1024 * 1024  # safe on v5e/v6e (128 MiB phys) and v7x (64 MiB phys)


def _round_up(x, m):
    return (x + m - 1) // m * m


def _choose_tm(M, cap=512):
    """Tile height: multiple of 16 (bf16 sublane packing), >=2 grid steps when the
    layer is big enough (keeps both v7x TensorCores busy), capped for VMEM."""
    if M <= 16 or M % 16 != 0:
        return M if M <= cap else cap          # full-dim block, or ragged capped tiles
    return min(cap, _round_up(M // 2, 16))


# ---------------------------------------------------------------------------
# Pallas kernels
# ---------------------------------------------------------------------------
def _gemm_kernel(a_ref, b_ref, o_ref, *, relu):
    acc = jnp.dot(a_ref[...], b_ref[...], preferred_element_type=jnp.float32)
    if relu:
        acc = jnp.maximum(acc, 0.0)
    o_ref[...] = acc.astype(o_ref.dtype)


def _gemm_res_kernel(a_ref, b_ref, r_ref, o_ref, *, relu):
    acc = jnp.dot(a_ref[...], b_ref[...], preferred_element_type=jnp.float32)
    acc = acc + r_ref[...].astype(jnp.float32)
    if relu:
        acc = jnp.maximum(acc, 0.0)
    o_ref[...] = acc.astype(o_ref.dtype)


def _deconv_pred_kernel(a_ref, b_ref, wp_ref, o_ref, p_ref):
    """Four transposed-conv output phases (batched) + fused ReLU + fused 1x1 pred.

    a_ref : (4, tm, K)  bf16 per-phase patch rows
    b_ref : (4, K,  N)  bf16 per-phase sub-kernels
    wp_ref: (N, 2)      bf16 prediction weights
    o_ref : (4, tm, N)  bf16 ReLU'd decoder activation (per phase)
    p_ref : (4, tm, 2)  f32  flow prediction (per phase)
    """
    wp = wp_ref[...]
    for p in range(4):  # static unroll over the 4 sub-pixel phases
        acc = jnp.dot(a_ref[p], b_ref[p], preferred_element_type=jnp.float32)
        act = jnp.maximum(acc, 0.0)
        o_ref[p] = act.astype(o_ref.dtype)
        pred = jnp.dot(act.astype(jnp.bfloat16), wp,
                       preferred_element_type=jnp.float32)
        p_ref[p] = pred.astype(p_ref.dtype)


# ---------------------------------------------------------------------------
# GEMM wrapper (conv as im2col GEMM, bf16 operands, fp32 accumulate)
# ---------------------------------------------------------------------------
def pallas_matmul(a, b, residual=None, relu=False, out_dtype=jnp.bfloat16):
    """out = relu?(a @ b (+ residual)).  a:(M,K) b:(K,N) residual:(M,N)."""
    M, K = a.shape
    K2, N = b.shape
    assert K == K2
    a = a.astype(jnp.bfloat16)
    b = b.astype(jnp.bfloat16)

    tm = _choose_tm(M)
    grid = (pl.cdiv(M, tm),)

    in_specs = [
        pl.BlockSpec((tm, K), lambda i: (i, 0)),
        pl.BlockSpec((K, N), lambda i: (0, 0)),
    ]
    args = [a, b]
    if residual is not None:
        in_specs.append(pl.BlockSpec((tm, N), lambda i: (i, 0)))
        args.append(residual.reshape(M, N).astype(jnp.bfloat16))
        kernel = functools.partial(_gemm_res_kernel, relu=relu)
    else:
        kernel = functools.partial(_gemm_kernel, relu=relu)

    return pl.pallas_call(
        kernel,
        out_shape=jax.ShapeDtypeStruct((M, N), out_dtype),
        grid=grid,
        in_specs=in_specs,
        out_specs=pl.BlockSpec((tm, N), lambda i: (i, 0)),
        compiler_params=pltpu.CompilerParams(
            dimension_semantics=("parallel",),
            vmem_limit_bytes=_VMEM_LIMIT),
    )(*args)


# ---------------------------------------------------------------------------
# Conv layers
# ---------------------------------------------------------------------------
def _im2col(x, kh, kw, stride, padding):
    """x: (B,H,W,C) NHWC -> (B*Ho*Wo, kh*kw*C) patch matrix (XLA glue, bf16)."""
    B, H, W, C = x.shape
    xp = jnp.pad(x, ((0, 0), (padding, padding), (padding, padding), (0, 0)))
    Ho = (H + 2 * padding - kh) // stride + 1
    Wo = (W + 2 * padding - kw) // stride + 1
    taps = []
    for i in range(kh):
        for j in range(kw):
            taps.append(xp[:, i:i + stride * Ho:stride, j:j + stride * Wo:stride, :])
    patches = jnp.stack(taps, axis=3)  # (B,Ho,Wo,kh*kw,C)
    return patches.reshape(B * Ho * Wo, kh * kw * C), Ho, Wo


def conv2d(x, w, stride, padding, relu=False, residual=None, out_dtype=jnp.bfloat16):
    """x NHWC, w is PyTorch-layout (Cout,Cin,kh,kw), no bias."""
    Cout, Cin, kh, kw = w.shape
    B = x.shape[0]
    patches, Ho, Wo = _im2col(x, kh, kw, stride, padding)
    w_mat = jnp.transpose(w, (2, 3, 1, 0)).reshape(kh * kw * Cin, Cout)
    res_mat = None if residual is None else residual.reshape(-1, Cout)
    out = pallas_matmul(patches, w_mat, residual=res_mat, relu=relu,
                        out_dtype=out_dtype)
    return out.reshape(B, Ho, Wo, Cout)


def _interleave_phases(ph, B, H, W, C):
    """ph: (4, B*H*W, C), phase order (di,dj) row-major -> (B, 2H, 2W, C)."""
    y = ph.reshape(2, 2, B, H, W, C)
    y = jnp.transpose(y, (2, 3, 0, 4, 1, 5))   # (B, H, di, W, dj, C)
    return y.reshape(B, 2 * H, 2 * W, C)


def decode_stage(x, w_t, wp):
    """ConvTranspose2d(k=4,s=2,p=1,bias=False) + ReLU + fused 1x1 pred conv.

    Phase decomposition: output pixel (2i+di, 2j+dj) is a stride-1 2x2 conv of the
    input with the (di,dj)-subsampled flipped kernel and one-sided padding, so the
    ~75%-zero dilated input is never materialized.  All 4 phases + the pred head run
    inside a single pallas_call.
    """
    Cin, Cout, kh, kw = w_t.shape          # kh == kw == 4
    B, H, W, _ = x.shape
    x = x.astype(jnp.bfloat16)
    # equivalent forward-conv kernel: flip spatial, swap (in,out)
    w_conv = jnp.transpose(jnp.flip(w_t, axis=(2, 3)), (1, 0, 2, 3))  # (Cout,Cin,4,4)

    patch_list, wmat_list = [], []
    for di in (0, 1):
        for dj in (0, 1):
            ph = (1, 0) if di == 0 else (0, 1)
            pw = (1, 0) if dj == 0 else (0, 1)
            xp = jnp.pad(x, ((0, 0), ph, pw, (0, 0)))
            taps = []
            for i in (0, 1):
                for j in (0, 1):
                    taps.append(xp[:, i:i + H, j:j + W, :])
            patch_list.append(jnp.stack(taps, axis=3).reshape(B * H * W, 4 * Cin))
            w_sub = w_conv[:, :, di::2, dj::2]                       # (Cout,Cin,2,2)
            wmat_list.append(jnp.transpose(w_sub, (2, 3, 1, 0)).reshape(4 * Cin, Cout))

    A = jnp.stack(patch_list, axis=0).astype(jnp.bfloat16)   # (4, M, K)
    Wb = jnp.stack(wmat_list, axis=0).astype(jnp.bfloat16)   # (4, K, N)
    wp_mat = jnp.transpose(wp.reshape(2, Cout)).astype(jnp.bfloat16)  # (N, 2)

    M, K, N = B * H * W, 4 * Cin, Cout
    tm = _choose_tm(M)
    grid = (pl.cdiv(M, tm),)

    y_ph, p_ph = pl.pallas_call(
        _deconv_pred_kernel,
        out_shape=(jax.ShapeDtypeStruct((4, M, N), jnp.bfloat16),
                   jax.ShapeDtypeStruct((4, M, 2), jnp.float32)),
        grid=grid,
        in_specs=[pl.BlockSpec((4, tm, K), lambda i: (0, i, 0)),
                  pl.BlockSpec((4, K, N), lambda i: (0, 0, 0)),
                  pl.BlockSpec((N, 2), lambda i: (0, 0))],
        out_specs=[pl.BlockSpec((4, tm, N), lambda i: (0, i, 0)),
                   pl.BlockSpec((4, tm, 2), lambda i: (0, i, 0))],
        compiler_params=pltpu.CompilerParams(
            dimension_semantics=("parallel",),
            vmem_limit_bytes=_VMEM_LIMIT),
    )(A, Wb, wp_mat)

    y = _interleave_phases(y_ph, B, H, W, N)        # (B, 2H, 2W, Cout) bf16, ReLU'd
    pred = _interleave_phases(p_ph, B, H, W, 2)     # (B, 2H, 2W, 2)    fp32
    return y, pred


# ---------------------------------------------------------------------------
# NonSpikingEVFlowNet parameters + forward
# ---------------------------------------------------------------------------
def init_params(key, opts):
    num_pols = opts['num_pols']
    ne = opts['num_encoders']
    nr = opts['num_res_blocks']
    cm = opts['c_mul']
    nb = opts['num_base_c']

    enc_in = [int(nb * cm ** i) for i in range(ne)]
    enc_out = [int(nb * cm ** (i + 1)) for i in range(ne)]

    params = {'encoders': [], 'res_blocks': [], 'decoders': [], 'pred_blocks': []}
    keys = iter(jax.random.split(key, 64))

    for i in range(ne):
        cin = num_pols if i == 0 else enc_in[i]
        cout = enc_out[i]
        s = math.sqrt(1.0 / cin)
        params['encoders'].append(
            jax.random.uniform(next(keys), (cout, cin, 3, 3), jnp.float32, -s, s))

    last = enc_out[-1]
    for _ in range(nr):
        s = math.sqrt(1.0 / last)
        w1 = jax.random.uniform(next(keys), (last, last, 3, 3), jnp.float32, -s, s)
        w2 = jax.random.uniform(next(keys), (last, last, 3, 3), jnp.float32, -s, s)
        params['res_blocks'].append((w1, w2))

    build_res = nr != 0
    dec_in = list(reversed(enc_out))
    dec_out = list(reversed(enc_in))
    for i, (cin, cout) in enumerate(zip(dec_in, dec_out)):
        skip = 0 if (not build_res and i == 0) else cin
        xtra = 0 if i == 0 else 2
        tot = cin + xtra + skip
        s = math.sqrt(1.0 / tot)
        params['decoders'].append(
            jax.random.uniform(next(keys), (tot, cout, 4, 4), jnp.float32, -s, s))

    for cout in reversed(enc_in):
        s = math.sqrt(1.0 / cout)
        params['pred_blocks'].append(
            jax.random.uniform(next(keys), (2, cout, 1, 1), jnp.float32, -s, s))

    return params


def forward(params, inps, build_res_blocks):
    """inps: (B, d1, d2, H, W); flattened to (B, d1*d2, H, W) like the PyTorch view."""
    B = inps.shape[0]
    x = inps.reshape((B, -1) + tuple(inps.shape[3:]))  # NCHW
    x = jnp.transpose(x, (0, 2, 3, 1)).astype(jnp.bfloat16)  # -> NHWC, bf16

    blocks = []
    for w in params['encoders']:
        x = conv2d(x, w, stride=2, padding=1, relu=True)
        blocks.append(x)

    for (w1, w2) in params['res_blocks']:
        h = conv2d(x, w1, stride=1, padding=1, relu=True)
        x = conv2d(h, w2, stride=1, padding=1, relu=True, residual=x)

    preds = []
    n = len(params['encoders'])
    for i, (wd, wp) in enumerate(zip(params['decoders'], params['pred_blocks'])):
        if i == 0:
            if build_res_blocks:
                x = jnp.concatenate([x, blocks[n - 1]], axis=-1)
        else:
            x = jnp.concatenate(
                [x, blocks[n - i - 1], preds[-1].astype(jnp.bfloat16)], axis=-1)
        x, p = decode_stage(x, wd, wp)   # decoder + fused ReLU + fused 1x1 pred
        preds.append(p)

    # back to NCHW (fp32) to match the PyTorch module's output convention
    return tuple(jnp.transpose(p, (0, 3, 1, 2)).astype(jnp.float32) for p in preds)


# ---------------------------------------------------------------------------
# Pure-XLA reference (NCHW, fp32, HIGHEST precision) for a sanity check
# ---------------------------------------------------------------------------
def _ref_conv(x, w, stride, padding):
    return jax.lax.conv_general_dilated(
        x, w, window_strides=(stride, stride),
        padding=[(padding, padding)] * 2,
        dimension_numbers=('NCHW', 'OIHW', 'NCHW'),
        precision=jax.lax.Precision.HIGHEST)


def _ref_convT(x, w_t, stride, padding):
    k = w_t.shape[2]
    w_conv = jnp.transpose(jnp.flip(w_t, (2, 3)), (1, 0, 2, 3))
    return jax.lax.conv_general_dilated(
        x, w_conv, window_strides=(1, 1),
        padding=[(k - 1 - padding, k - 1 - padding)] * 2,
        lhs_dilation=(stride, stride),
        dimension_numbers=('NCHW', 'OIHW', 'NCHW'),
        precision=jax.lax.Precision.HIGHEST)


def reference_forward(params, inps, build_res_blocks):
    B = inps.shape[0]
    x = inps.reshape((B, -1) + tuple(inps.shape[3:]))
    blocks = []
    for w in params['encoders']:
        x = jax.nn.relu(_ref_conv(x, w, 2, 1))
        blocks.append(x)
    for (w1, w2) in params['res_blocks']:
        h = jax.nn.relu(_ref_conv(x, w1, 1, 1))
        x = jax.nn.relu(_ref_conv(h, w2, 1, 1) + x)
    preds = []
    n = len(params['encoders'])
    for i, (wd, wp) in enumerate(zip(params['decoders'], params['pred_blocks'])):
        if i == 0:
            if build_res_blocks:
                x = jnp.concatenate([x, blocks[n - 1]], axis=1)
        else:
            x = jnp.concatenate([x, blocks[n - i - 1], preds[-1]], axis=1)
        x = jax.nn.relu(_ref_convT(x, wd, 2, 1))
        preds.append(_ref_conv(x, wp, 1, 0))
    return preds


# ---------------------------------------------------------------------------
if __name__ == "__main__":
    opts = dict(num_pols=4, num_encoders=2, num_res_blocks=1,
                norm='none', c_mul=2, num_base_c=8)
    build_res = opts['num_res_blocks'] != 0

    key = jax.random.PRNGKey(0)
    pkey, xkey = jax.random.split(key)
    params = init_params(pkey, opts)

    # (B, num_bins, num_pols_raw, H, W): flattened channel dim = 2*2 = num_pols = 4
    inps = jax.random.normal(xkey, (2, 2, 2, 16, 16), jnp.float32)

    fwd = jax.jit(lambda p, x: forward(p, x, build_res))
    preds = jax.block_until_ready(fwd(params, inps))

    # sanity check against XLA convolutions (shapes + values); the 5e-2 tolerance
    # absorbs the bf16-operand / bf16-activation quantization.
    refs = reference_forward(params, inps, build_res)
    for p, r in zip(preds, refs):
        assert p.shape == r.shape, (p.shape, r.shape)
        rel = float(jnp.max(jnp.abs(p - r)) / (jnp.max(jnp.abs(r)) + 1e-6))
        assert rel < 5e-2, f"relative mismatch {rel}"

    print("KERNEL_OK")
</pallas_src>

<mosaic_0001>
module attributes {stable_mosaic.version = 11 : i64} {
  func.func @_gemm_kernel(%arg0: i32, %arg1: memref<64x36xbf16, #tpu.memory_space<vmem>>, %arg2: memref<36x16xbf16, #tpu.memory_space<vmem>>, %arg3: memref<64x16xbf16, #tpu.memory_space<vmem>>) attributes {dimension_semantics = [#tpu.dimension_semantics<parallel>], iteration_bounds = array<i64: 2>, scalar_prefetch = 0 : i64, scratch_operands = 0 : i64, tpu.core_type = #tpu.core_type<tc>, window_params = [{transform_indices = @transform_0, window_bounds = array<i64: 64, 36>}, {pipeline_mode = #tpu.pipeline_mode<synchronous>, transform_indices = @transform_1, window_bounds = array<i64: 36, 16>}, {transform_indices = @transform_2, window_bounds = array<i64: 64, 16>}]} {
    %c0 = arith.constant 0 : index
    %c0_0 = arith.constant 0 : index
    %0 = vector.load %arg1[%c0, %c0_0] : memref<64x36xbf16, #tpu.memory_space<vmem>>, vector<64x36xbf16>
    %c0_1 = arith.constant 0 : index
    %c0_2 = arith.constant 0 : index
    %1 = vector.load %arg2[%c0_1, %c0_2] : memref<36x16xbf16, #tpu.memory_space<vmem>>, vector<36x16xbf16>
    %cst = arith.constant dense<0.000000e+00> : vector<64x16xf32>
    %2 = tpu.matmul %0, %1, %cst {dimension_numbers = #tpu.dot_dimension_numbers<[1], [0], [0], [1], [0, 0, 1, 1], [], []>} : vector<64x36xbf16>, vector<36x16xbf16>, vector<64x16xf32> -> vector<64x16xf32>
    %cst_3 = arith.constant 0.000000e+00 : f32
    %3 = vector.broadcast %cst_3 : f32 to vector<64x16xf32>
    %4 = arith.maximumf %2, %3 : vector<64x16xf32>
    %5 = arith.truncf %4 : vector<64x16xf32> to vector<64x16xbf16>
    %c0_4 = arith.constant 0 : index
    %c0_5 = arith.constant 0 : index
    %6 = vector.load %arg3[%c0_4, %c0_5] : memref<64x16xbf16, #tpu.memory_space<vmem>>, vector<64x16xbf16>
    tpu.vector_store %arg3[%c0_4, %c0_5], %5 {strides = array<i32>} : memref<64x16xbf16, #tpu.memory_space<vmem>>, vector<64x16xbf16>,
    return
  }
  func.func @transform_0(%arg0: i32) -> (i32, i32) {
    %c0_i32 = arith.constant 0 : i32
    %c0_i32_0 = arith.constant 0 : i32
    return %arg0, %c0_i32 : i32, i32
  }
  func.func @transform_1(%arg0: i32) -> (i32, i32) {
    %c0_i32 = arith.constant 0 : i32
    %c0_i32_0 = arith.constant 0 : i32
    %c0_i32_1 = arith.constant 0 : i32
    return %c0_i32, %c0_i32_0 : i32, i32
  }
  func.func @transform_2(%arg0: i32) -> (i32, i32) {
    %c0_i32 = arith.constant 0 : i32
    %c0_i32_0 = arith.constant 0 : i32
    return %arg0, %c0_i32 : i32, i32
  }
}

module attributes {stable_mosaic.version = 11 : i64} {
  func.func @_gemm_kernel(%arg0: i32, %arg1: memref<16x144xbf16, #tpu.memory_space<vmem>>, %arg2: memref<144x32xbf16, #tpu.memory_space<vmem>>, %arg3: memref<16x32xbf16, #tpu.memory_space<vmem>>) attributes {dimension_semantics = [#tpu.dimension_semantics<parallel>], iteration_bounds = array<i64: 2>, scalar_prefetch = 0 : i64, scratch_operands = 0 : i64, tpu.core_type = #tpu.core_type<tc>, window_params = [{transform_indices = @transform_0, window_bounds = array<i64: 16, 144>}, {pipeline_mode = #tpu.pipeline_mode<synchronous>, transform_indices = @transform_1, window_bounds = array<i64: 144, 32>}, {transform_indices = @transform_2, window_bounds = array<i64: 16, 32>}]} {
    %c0 = arith.constant 0 : index
    %c0_0 = arith.constant 0 : index
    %0 = vector.load %arg1[%c0, %c0_0] : memref<16x144xbf16, #tpu.memory_space<vmem>>, vector<16x144xbf16>
    %c0_1 = arith.constant 0 : index
    %c0_2 = arith.constant 0 : index
    %1 = vector.load %arg2[%c0_1, %c0_2] : memref<144x32xbf16, #tpu.memory_space<vmem>>, vector<144x32xbf16>
    %cst = arith.constant dense<0.000000e+00> : vector<16x32xf32>
    %2 = tpu.matmul %0, %1, %cst {dimension_numbers = #tpu.dot_dimension_numbers<[1], [0], [0], [1], [0, 0, 1, 1], [], []>} : vector<16x144xbf16>, vector<144x32xbf16>, vector<16x32xf32> -> vector<16x32xf32>
    %cst_3 = arith.constant 0.000000e+00 : f32
    %3 = vector.broadcast %cst_3 : f32 to vector<16x32xf32>
    %4 = arith.maximumf %2, %3 : vector<16x32xf32>
    %5 = arith.truncf %4 : vector<16x32xf32> to vector<16x32xbf16>
    %c0_4 = arith.constant 0 : index
    %c0_5 = arith.constant 0 : index
    %6 = vector.load %arg3[%c0_4, %c0_5] : memref<16x32xbf16, #tpu.memory_space<vmem>>, vector<16x32xbf16>
    tpu.vector_store %arg3[%c0_4, %c0_5], %5 {strides = array<i32>} : memref<16x32xbf16, #tpu.memory_space<vmem>>, vector<16x32xbf16>,
    return
  }
  func.func @transform_0(%arg0: i32) -> (i32, i32) {
    %c0_i32 = arith.constant 0 : i32
    %c0_i32_0 = arith.constant 0 : i32
    return %arg0, %c0_i32 : i32, i32
  }
  func.func @transform_1(%arg0: i32) -> (i32, i32) {
    %c0_i32 = arith.constant 0 : i32
    %c0_i32_0 = arith.constant 0 : i32
    %c0_i32_1 = arith.constant 0 : i32
    return %c0_i32, %c0_i32_0 : i32, i32
  }
  func.func @transform_2(%arg0: i32) -> (i32, i32) {
    %c0_i32 = arith.constant 0 : i32
    %c0_i32_0 = arith.constant 0 : i32
    return %arg0, %c0_i32 : i32, i32
  }
}

module attributes {stable_mosaic.version = 11 : i64} {
  func.func @_gemm_res_kernel(%arg0: i32, %arg1: memref<16x288xbf16, #tpu.memory_space<vmem>>, %arg2: memref<288x32xbf16, #tpu.memory_space<vmem>>, %arg3: memref<16x32xbf16, #tpu.memory_space<vmem>>, %arg4: memref<16x32xbf16, #tpu.memory_space<vmem>>) attributes {dimension_semantics = [#tpu.dimension_semantics<parallel>], iteration_bounds = array<i64: 2>, scalar_prefetch = 0 : i64, scratch_operands = 0 : i64, tpu.core_type = #tpu.core_type<tc>, window_params = [{transform_indices = @transform_0, window_bounds = array<i64: 16, 288>}, {pipeline_mode = #tpu.pipeline_mode<synchronous>, transform_indices = @transform_1, window_bounds = array<i64: 288, 32>}, {transform_indices = @transform_2, window_bounds = array<i64: 16, 32>}, {transform_indices = @transform_3, window_bounds = array<i64: 16, 32>}]} {
    %c0 = arith.constant 0 : index
    %c0_0 = arith.constant 0 : index
    %0 = vector.load %arg1[%c0, %c0_0] : memref<16x288xbf16, #tpu.memory_space<vmem>>, vector<16x288xbf16>
    %c0_1 = arith.constant 0 : index
    %c0_2 = arith.constant 0 : index
    %1 = vector.load %arg2[%c0_1, %c0_2] : memref<288x32xbf16, #tpu.memory_space<vmem>>, vector<288x32xbf16>
    %cst = arith.constant dense<0.000000e+00> : vector<16x32xf32>
    %2 = tpu.matmul %0, %1, %cst {dimension_numbers = #tpu.dot_dimension_numbers<[1], [0], [0], [1], [0, 0, 1, 1], [], []>} : vector<16x288xbf16>, vector<288x32xbf16>, vector<16x32xf32> -> vector<16x32xf32>
    %c0_3 = arith.constant 0 : index
    %c0_4 = arith.constant 0 : index
    %3 = vector.load %arg3[%c0_3, %c0_4] : memref<16x32xbf16, #tpu.memory_space<vmem>>, vector<16x32xbf16>
    %4 = arith.extf %3 : vector<16x32xbf16> to vector<16x32xf32>
    %5 = arith.addf %2, %4 : vector<16x32xf32>
    %cst_5 = arith.constant 0.000000e+00 : f32
    %6 = vector.broadcast %cst_5 : f32 to vector<16x32xf32>
    %7 = arith.maximumf %5, %6 : vector<16x32xf32>
    %8 = arith.truncf %7 : vector<16x32xf32> to vector<16x32xbf16>
    %c0_6 = arith.constant 0 : index
    %c0_7 = arith.constant 0 : index
    %9 = vector.load %arg4[%c0_6, %c0_7] : memref<16x32xbf16, #tpu.memory_space<vmem>>, vector<16x32xbf16>
    tpu.vector_store %arg4[%c0_6, %c0_7], %8 {strides = array<i32>} : memref<16x32xbf16, #tpu.memory_space<vmem>>, vector<16x32xbf16>,
    return
  }
  func.func @transform_0(%arg0: i32) -> (i32, i32) {
    %c0_i32 = arith.constant 0 : i32
    %c0_i32_0 = arith.constant 0 : i32
    return %arg0, %c0_i32 : i32, i32
  }
  func.func @transform_1(%arg0: i32) -> (i32, i32) {
    %c0_i32 = arith.constant 0 : i32
    %c0_i32_0 = arith.constant 0 : i32
    %c0_i32_1 = arith.constant 0 : i32
    return %c0_i32, %c0_i32_0 : i32, i32
  }
  func.func @transform_2(%arg0: i32) -> (i32, i32) {
    %c0_i32 = arith.constant 0 : i32
    %c0_i32_0 = arith.constant 0 : i32
    return %arg0, %c0_i32 : i32, i32
  }
  func.func @transform_3(%arg0: i32) -> (i32, i32) {
    %c0_i32 = arith.constant 0 : i32
    %c0_i32_0 = arith.constant 0 : i32
    return %arg0, %c0_i32 : i32, i32
  }
}

module attributes {stable_mosaic.version = 11 : i64} {
  func.func @_gemm_kernel(%arg0: i32, %arg1: memref<16x288xbf16, #tpu.memory_space<vmem>>, %arg2: memref<288x32xbf16, #tpu.memory_space<vmem>>, %arg3: memref<16x32xbf16, #tpu.memory_space<vmem>>) attributes {dimension_semantics = [#tpu.dimension_semantics<parallel>], iteration_bounds = array<i64: 2>, scalar_prefetch = 0 : i64, scratch_operands = 0 : i64, tpu.core_type = #tpu.core_type<tc>, window_params = [{transform_indices = @transform_0, window_bounds = array<i64: 16, 288>}, {pipeline_mode = #tpu.pipeline_mode<synchronous>, transform_indices = @transform_1, window_bounds = array<i64: 288, 32>}, {transform_indices = @transform_2, window_bounds = array<i64: 16, 32>}]} {
    %c0 = arith.constant 0 : index
    %c0_0 = arith.constant 0 : index
    %0 = vector.load %arg1[%c0, %c0_0] : memref<16x288xbf16, #tpu.memory_space<vmem>>, vector<16x288xbf16>
    %c0_1 = arith.constant 0 : index
    %c0_2 = arith.constant 0 : index
    %1 = vector.load %arg2[%c0_1, %c0_2] : memref<288x32xbf16, #tpu.memory_space<vmem>>, vector<288x32xbf16>
    %cst = arith.constant dense<0.000000e+00> : vector<16x32xf32>
    %2 = tpu.matmul %0, %1, %cst {dimension_numbers = #tpu.dot_dimension_numbers<[1], [0], [0], [1], [0, 0, 1, 1], [], []>} : vector<16x288xbf16>, vector<288x32xbf16>, vector<16x32xf32> -> vector<16x32xf32>
    %cst_3 = arith.constant 0.000000e+00 : f32
    %3 = vector.broadcast %cst_3 : f32 to vector<16x32xf32>
    %4 = arith.maximumf %2, %3 : vector<16x32xf32>
    %5 = arith.truncf %4 : vector<16x32xf32> to vector<16x32xbf16>
    %c0_4 = arith.constant 0 : index
    %c0_5 = arith.constant 0 : index
    %6 = vector.load %arg3[%c0_4, %c0_5] : memref<16x32xbf16, #tpu.memory_space<vmem>>, vector<16x32xbf16>
    tpu.vector_store %arg3[%c0_4, %c0_5], %5 {strides = array<i32>} : memref<16x32xbf16, #tpu.memory_space<vmem>>, vector<16x32xbf16>,
    return
  }
  func.func @transform_0(%arg0: i32) -> (i32, i32) {
    %c0_i32 = arith.constant 0 : i32
    %c0_i32_0 = arith.constant 0 : i32
    return %arg0, %c0_i32 : i32, i32
  }
  func.func @transform_1(%arg0: i32) -> (i32, i32) {
    %c0_i32 = arith.constant 0 : i32
    %c0_i32_0 = arith.constant 0 : i32
    %c0_i32_1 = arith.constant 0 : i32
    return %c0_i32, %c0_i32_0 : i32, i32
  }
  func.func @transform_2(%arg0: i32) -> (i32, i32) {
    %c0_i32 = arith.constant 0 : i32
    %c0_i32_0 = arith.constant 0 : i32
    return %arg0, %c0_i32 : i32, i32
  }
}

module attributes {stable_mosaic.version = 11 : i64} {
  func.func @_deconv_pred_kernel(%arg0: i32, %arg1: memref<4x16x256xbf16, #tpu.memory_space<vmem>>, %arg2: memref<4x256x16xbf16, #tpu.memory_space<vmem>>, %arg3: memref<16x2xbf16, #tpu.memory_space<vmem>>, %arg4: memref<4x16x16xbf16, #tpu.memory_space<vmem>>, %arg5: memref<4x16x2xf32, #tpu.memory_space<vmem>>) attributes {dimension_semantics = [#tpu.dimension_semantics<parallel>], iteration_bounds = array<i64: 2>, scalar_prefetch = 0 : i64, scratch_operands = 0 : i64, tpu.core_type = #tpu.core_type<tc>, window_params = [{transform_indices = @transform_0, window_bounds = array<i64: 4, 16, 256>}, {pipeline_mode = #tpu.pipeline_mode<synchronous>, transform_indices = @transform_1, window_bounds = array<i64: 4, 256, 16>}, {pipeline_mode = #tpu.pipeline_mode<synchronous>, transform_indices = @transform_2, window_bounds = array<i64: 16, 2>}, {transform_indices = @transform_3, window_bounds = array<i64: 4, 16, 16>}, {transform_indices = @transform_4, window_bounds = array<i64: 4, 16, 2>}]} {
    %c0 = arith.constant 0 : index
    %c0_0 = arith.constant 0 : index
    %0 = vector.load %arg3[%c0, %c0_0] : memref<16x2xbf16, #tpu.memory_space<vmem>>, vector<16x2xbf16>
    %c0_1 = arith.constant 0 : index
    %c0_2 = arith.constant 0 : index
    %c0_3 = arith.constant 0 : index
    %1 = vector.load %arg1[%c0_1, %c0_2, %c0_3] : memref<4x16x256xbf16, #tpu.memory_space<vmem>>, vector<1x16x256xbf16>
    %2 = vector.shape_cast %1 : vector<1x16x256xbf16> to vector<16x256xbf16>
    %c0_4 = arith.constant 0 : index
    %c0_5 = arith.constant 0 : index
    %c0_6 = arith.constant 0 : index
    %3 = vector.load %arg2[%c0_4, %c0_5, %c0_6] : memref<4x256x16xbf16, #tpu.memory_space<vmem>>, vector<1x256x16xbf16>
    %4 = vector.shape_cast %3 : vector<1x256x16xbf16> to vector<256x16xbf16>
    %cst = arith.constant dense<0.000000e+00> : vector<16x16xf32>
    %5 = tpu.matmul %2, %4, %cst {dimension_numbers = #tpu.dot_dimension_numbers<[1], [0], [0], [1], [0, 0, 1, 1], [], []>} : vector<16x256xbf16>, vector<256x16xbf16>, vector<16x16xf32> -> vector<16x16xf32>
    %cst_7 = arith.constant 0.000000e+00 : f32
    %6 = vector.broadcast %cst_7 : f32 to vector<16x16xf32>
    %7 = arith.maximumf %5, %6 : vector<16x16xf32>
    %8 = arith.truncf %7 : vector<16x16xf32> to vector<16x16xbf16>
    %c0_8 = arith.constant 0 : index
    %c0_9 = arith.constant 0 : index
    %c0_10 = arith.constant 0 : index
    %9 = vector.load %arg4[%c0_8, %c0_9, %c0_10] : memref<4x16x16xbf16, #tpu.memory_space<vmem>>, vector<1x16x16xbf16>
    %10 = vector.shape_cast %9 : vector<1x16x16xbf16> to vector<16x16xbf16>
    %11 = vector.shape_cast %8 : vector<16x16xbf16> to vector<1x16x16xbf16>
    tpu.vector_store %arg4[%c0_8, %c0_9, %c0_10], %11 {strides = array<i32>} : memref<4x16x16xbf16, #tpu.memory_space<vmem>>, vector<1x16x16xbf16>,
    %12 = arith.truncf %7 : vector<16x16xf32> to vector<16x16xbf16>
    %cst_11 = arith.constant dense<0.000000e+00> : vector<16x2xf32>
    %13 = tpu.matmul %12, %0, %cst_11 {dimension_numbers = #tpu.dot_dimension_numbers<[1], [0], [0], [1], [0, 0, 1, 1], [], []>} : vector<16x16xbf16>, vector<16x2xbf16>, vector<16x2xf32> -> vector<16x2xf32>
    %c0_12 = arith.constant 0 : index
    %c0_13 = arith.constant 0 : index
    %c0_14 = arith.constant 0 : index
    %14 = vector.load %arg5[%c0_12, %c0_13, %c0_14] : memref<4x16x2xf32, #tpu.memory_space<vmem>>, vector<1x16x2xf32>
    %15 = vector.shape_cast %14 : vector<1x16x2xf32> to vector<16x2xf32>
    %16 = vector.shape_cast %13 : vector<16x2xf32> to vector<1x16x2xf32>
    tpu.vector_store %arg5[%c0_12, %c0_13, %c0_14], %16 {strides = array<i32>} : memref<4x16x2xf32, #tpu.memory_space<vmem>>, vector<1x16x2xf32>,
    %c1 = arith.constant 1 : index
    %c0_15 = arith.constant 0 : index
    %c0_16 = arith.constant 0 : index
    %17 = vector.load %arg1[%c1, %c0_15, %c0_16] : memref<4x16x256xbf16, #tpu.memory_space<vmem>>, vector<1x16x256xbf16>
    %18 = vector.shape_cast %17 : vector<1x16x256xbf16> to vector<16x256xbf16>
    %c1_17 = arith.constant 1 : index
    %c0_18 = arith.constant 0 : index
    %c0_19 = arith.constant 0 : index
    %19 = vector.load %arg2[%c1_17, %c0_18, %c0_19] : memref<4x256x16xbf16, #tpu.memory_space<vmem>>, vector<1x256x16xbf16>
    %20 = vector.shape_cast %19 : vector<1x256x16xbf16> to vector<256x16xbf16>
    %cst_20 = arith.constant dense<0.000000e+00> : vector<16x16xf32>
    %21 = tpu.matmul %18, %20, %cst_20 {dimension_numbers = #tpu.dot_dimension_numbers<[1], [0], [0], [1], [0, 0, 1, 1], [], []>} : vector<16x256xbf16>, vector<256x16xbf16>, vector<16x16xf32> -> vector<16x16xf32>
    %cst_21 = arith.constant 0.000000e+00 : f32
    %22 = vector.broadcast %cst_21 : f32 to vector<16x16xf32>
    %23 = arith.maximumf %21, %22 : vector<16x16xf32>
    %24 = arith.truncf %23 : vector<16x16xf32> to vector<16x16xbf16>
    %c1_22 = arith.constant 1 : index
    %c0_23 = arith.constant 0 : index
    %c0_24 = arith.constant 0 : index
    %25 = vector.load %arg4[%c1_22, %c0_23, %c0_24] : memref<4x16x16xbf16, #tpu.memory_space<vmem>>, vector<1x16x16xbf16>
    %26 = vector.shape_cast %25 : vector<1x16x16xbf16> to vector<16x16xbf16>
    %27 = vector.shape_cast %24 : vector<16x16xbf16> to vector<1x16x16xbf16>
    tpu.vector_store %arg4[%c1_22, %c0_23, %c0_24], %27 {strides = array<i32>} : memref<4x16x16xbf16, #tpu.memory_space<vmem>>, vector<1x16x16xbf16>,
    %28 = arith.truncf %23 : vector<16x16xf32> to vector<16x16xbf16>
    %cst_25 = arith.constant dense<0.000000e+00> : vector<16x2xf32>
    %29 = tpu.matmul %28, %0, %cst_25 {dimension_numbers = #tpu.dot_dimension_numbers<[1], [0], [0], [1], [0, 0, 1, 1], [], []>} : vector<16x16xbf16>, vector<16x2xbf16>, vector<16x2xf32> -> vector<16x2xf32>
    %c1_26 = arith.constant 1 : index
    %c0_27 = arith.constant 0 : index
    %c0_28 = arith.constant 0 : index
    %30 = vector.load %arg5[%c1_26, %c0_27, %c0_28] : memref<4x16x2xf32, #tpu.memory_space<vmem>>, vector<1x16x2xf32>
    %31 = vector.shape_cast %30 : vector<1x16x2xf32> to vector<16x2xf32>
    %32 = vector.shape_cast %29 : vector<16x2xf32> to vector<1x16x2xf32>
    tpu.vector_store %arg5[%c1_26, %c0_27, %c0_28], %32 {strides = array<i32>} : memref<4x16x2xf32, #tpu.memory_space<vmem>>, vector<1x16x2xf32>,
    %c2 = arith.constant 2 : index
    %c0_29 = arith.constant 0 : index
    %c0_30 = arith.constant 0 : index
    %33 = vector.load %arg1[%c2, %c0_29, %c0_30] : memref<4x16x256xbf16, #tpu.memory_space<vmem>>, vector<1x16x256xbf16>
    %34 = vector.shape_cast %33 : vector<1x16x256xbf16> to vector<16x256xbf16>
    %c2_31 = arith.constant 2 : index
    %c0_32 = arith.constant 0 : index
    %c0_33 = arith.constant 0 : index
    %35 = vector.load %arg2[%c2_31, %c0_32, %c0_33] : memref<4x256x16xbf16, #tpu.memory_space<vmem>>, vector<1x256x16xbf16>
    %36 = vector.shape_cast %35 : vector<1x256x16xbf16> to vector<256x16xbf16>
    %cst_34 = arith.constant dense<0.000000e+00> : vector<16x16xf32>
    %37 = tpu.matmul %34, %36, %cst_34 {dimension_numbers = #tpu.dot_dimension_numbers<[1], [0], [0], [1], [0, 0, 1, 1], [], []>} : vector<16x256xbf16>, vector<256x16xbf16>, vector<16x16xf32> -> vector<16x16xf32>
    %cst_35 = arith.constant 0.000000e+00 : f32
    %38 = vector.broadcast %cst_35 : f32 to vector<16x16xf32>
    %39 = arith.maximumf %37, %38 : vector<16x16xf32>
    %40 = arith.truncf %39 : vector<16x16xf32> to vector<16x16xbf16>
    %c2_36 = arith.constant 2 : index
    %c0_37 = arith.constant 0 : index
    %c0_38 = arith.constant 0 : index
    %41 = vector.load %arg4[%c2_36, %c0_37, %c0_38] : memref<4x16x16xbf16, #tpu.memory_space<vmem>>, vector<1x16x16xbf16>
    %42 = vector.shape_cast %41 : vector<1x16x16xbf16> to vector<16x16xbf16>
    %43 = vector.shape_cast %40 : vector<16x16xbf16> to vector<1x16x16xbf16>
    tpu.vector_store %arg4[%c2_36, %c0_37, %c0_38], %43 {strides = array<i32>} : memref<4x16x16xbf16, #tpu.memory_space<vmem>>, vector<1x16x16xbf16>,
    %44 = arith.truncf %39 : vector<16x16xf32> to vector<16x16xbf16>
    %cst_39 = arith.constant dense<0.000000e+00> : vector<16x2xf32>
    %45 = tpu.matmul %44, %0, %cst_39 {dimension_numbers = #tpu.dot_dimension_numbers<[1], [0], [0], [1], [0, 0, 1, 1], [], []>} : vector<16x16xbf16>, vector<16x2xbf16>, vector<16x2xf32> -> vector<16x2xf32>
    %c2_40 = arith.constant 2 : index
    %c0_41 = arith.constant 0 : index
    %c0_42 = arith.constant 0 : index
    %46 = vector.load %arg5[%c2_40, %c0_41, %c0_42] : memref<4x16x2xf32, #tpu.memory_space<vmem>>, vector<1x16x2xf32>
    %47 = vector.shape_cast %46 : vector<1x16x2xf32> to vector<16x2xf32>
    %48 = vector.shape_cast %45 : vector<16x2xf32> to vector<1x16x2xf32>
    tpu.vector_store %arg5[%c2_40, %c0_41, %c0_42], %48 {strides = array<i32>} : memref<4x16x2xf32, #tpu.memory_space<vmem>>, vector<1x16x2xf32>,
    %c3 = arith.constant 3 : index
    %c0_43 = arith.constant 0 : index
    %c0_44 = arith.constant 0 : index
    %49 = vector.load %arg1[%c3, %c0_43, %c0_44] : memref<4x16x256xbf16, #tpu.memory_space<vmem>>, vector<1x16x256xbf16>
    %50 = vector.shape_cast %49 : vector<1x16x256xbf16> to vector<16x256xbf16>
    %c3_45 = arith.constant 3 : index
    %c0_46 = arith.constant 0 : index
    %c0_47 = arith.constant 0 : index
    %51 = vector.load %arg2[%c3_45, %c0_46, %c0_47] : memref<4x256x16xbf16, #tpu.memory_space<vmem>>, vector<1x256x16xbf16>
    %52 = vector.shape_cast %51 : vector<1x256x16xbf16> to vector<256x16xbf16>
    %cst_48 = arith.constant dense<0.000000e+00> : vector<16x16xf32>
    %53 = tpu.matmul %50, %52, %cst_48 {dimension_numbers = #tpu.dot_dimension_numbers<[1], [0], [0], [1], [0, 0, 1, 1], [], []>} : vector<16x256xbf16>, vector<256x16xbf16>, vector<16x16xf32> -> vector<16x16xf32>
    %cst_49 = arith.constant 0.000000e+00 : f32
    %54 = vector.broadcast %cst_49 : f32 to vector<16x16xf32>
    %55 = arith.maximumf %53, %54 : vector<16x16xf32>
    %56 = arith.truncf %55 : vector<16x16xf32> to vector<16x16xbf16>
    %c3_50 = arith.constant 3 : index
    %c0_51 = arith.constant 0 : index
    %c0_52 = arith.constant 0 : index
    %57 = vector.load %arg4[%c3_50, %c0_51, %c0_52] : memref<4x16x16xbf16, #tpu.memory_space<vmem>>, vector<1x16x16xbf16>
    %58 = vector.shape_cast %57 : vector<1x16x16xbf16> to vector<16x16xbf16>
    %59 = vector.shape_cast %56 : vector<16x16xbf16> to vector<1x16x16xbf16>
    tpu.vector_store %arg4[%c3_50, %c0_51, %c0_52], %59 {strides = array<i32>} : memref<4x16x16xbf16, #tpu.memory_space<vmem>>, vector<1x16x16xbf16>,
    %60 = arith.truncf %55 : vector<16x16xf32> to vector<16x16xbf16>
    %cst_53 = arith.constant dense<0.000000e+00> : vector<16x2xf32>
    %61 = tpu.matmul %60, %0, %cst_53 {dimension_numbers = #tpu.dot_dimension_numbers<[1], [0], [0], [1], [0, 0, 1, 1], [], []>} : vector<16x16xbf16>, vector<16x2xbf16>, vector<16x2xf32> -> vector<16x2xf32>
    %c3_54 = arith.constant 3 : index
    %c0_55 = arith.constant 0 : index
    %c0_56 = arith.constant 0 : index
    %62 = vector.load %arg5[%c3_54, %c0_55, %c0_56] : memref<4x16x2xf32, #tpu.memory_space<vmem>>, vector<1x16x2xf32>
    %63 = vector.shape_cast %62 : vector<1x16x2xf32> to vector<16x2xf32>
    %64 = vector.shape_cast %61 : vector<16x2xf32> to vector<1x16x2xf32>
    tpu.vector_store %arg5[%c3_54, %c0_55, %c0_56], %64 {strides = array<i32>} : memref<4x16x2xf32, #tpu.memory_space<vmem>>, vector<1x16x2xf32>,
    return
  }
  func.func @transform_0(%arg0: i32) -> (i32, i32, i32) {
    %c0_i32 = arith.constant 0 : i32
    %c0_i32_0 = arith.constant 0 : i32
    %c0_i32_1 = arith.constant 0 : i32
    return %c0_i32, %arg0, %c0_i32_0 : i32, i32, i32
  }
  func.func @transform_1(%arg0: i32) -> (i32, i32, i32) {
    %c0_i32 = arith.constant 0 : i32
    %c0_i32_0 = arith.constant 0 : i32
    %c0_i32_1 = arith.constant 0 : i32
    %c0_i32_2 = arith.constant 0 : i32
    return %c0_i32, %c0_i32_0, %c0_i32_1 : i32, i32, i32
  }
  func.func @transform_2(%arg0: i32) -> (i32, i32) {
    %c0_i32 = arith.constant 0 : i32
    %c0_i32_0 = arith.constant 0 : i32
    %c0_i32_1 = arith.constant 0 : i32
    return %c0_i32, %c0_i32_0 : i32, i32
  }
  func.func @transform_3(%arg0: i32) -> (i32, i32, i32) {
    %c0_i32 = arith.constant 0 : i32
    %c0_i32_0 = arith.constant 0 : i32
    %c0_i32_1 = arith.constant 0 : i32
    return %c0_i32, %arg0, %c0_i32_0 : i32, i32, i32
  }
  func.func @transform_4(%arg0: i32) -> (i32, i32, i32) {
    %c0_i32 = arith.constant 0 : i32
    %c0_i32_0 = arith.constant 0 : i32
    %c0_i32_1 = arith.constant 0 : i32
    return %c0_i32, %arg0, %c0_i32_0 : i32, i32, i32
  }
}

module attributes {stable_mosaic.version = 11 : i64} {
  func.func @_deconv_pred_kernel(%arg0: i32, %arg1: memref<4x64x136xbf16, #tpu.memory_space<vmem>>, %arg2: memref<4x136x8xbf16, #tpu.memory_space<vmem>>, %arg3: memref<8x2xbf16, #tpu.memory_space<vmem>>, %arg4: memref<4x64x8xbf16, #tpu.memory_space<vmem>>, %arg5: memref<4x64x2xf32, #tpu.memory_space<vmem>>) attributes {dimension_semantics = [#tpu.dimension_semantics<parallel>], iteration_bounds = array<i64: 2>, scalar_prefetch = 0 : i64, scratch_operands = 0 : i64, tpu.core_type = #tpu.core_type<tc>, window_params = [{transform_indices = @transform_0, window_bounds = array<i64: 4, 64, 136>}, {pipeline_mode = #tpu.pipeline_mode<synchronous>, transform_indices = @transform_1, window_bounds = array<i64: 4, 136, 8>}, {pipeline_mode = #tpu.pipeline_mode<synchronous>, transform_indices = @transform_2, window_bounds = array<i64: 8, 2>}, {transform_indices = @transform_3, window_bounds = array<i64: 4, 64, 8>}, {transform_indices = @transform_4, window_bounds = array<i64: 4, 64, 2>}]} {
    %c0 = arith.constant 0 : index
    %c0_0 = arith.constant 0 : index
    %0 = vector.load %arg3[%c0, %c0_0] : memref<8x2xbf16, #tpu.memory_space<vmem>>, vector<8x2xbf16>
    %c0_1 = arith.constant 0 : index
    %c0_2 = arith.constant 0 : index
    %c0_3 = arith.constant 0 : index
    %1 = vector.load %arg1[%c0_1, %c0_2, %c0_3] : memref<4x64x136xbf16, #tpu.memory_space<vmem>>, vector<1x64x136xbf16>
    %2 = vector.shape_cast %1 : vector<1x64x136xbf16> to vector<64x136xbf16>
    %c0_4 = arith.constant 0 : index
    %c0_5 = arith.constant 0 : index
    %c0_6 = arith.constant 0 : index
    %3 = vector.load %arg2[%c0_4, %c0_5, %c0_6] : memref<4x136x8xbf16, #tpu.memory_space<vmem>>, vector<1x136x8xbf16>
    %4 = vector.shape_cast %3 : vector<1x136x8xbf16> to vector<136x8xbf16>
    %cst = arith.constant dense<0.000000e+00> : vector<64x8xf32>
    %5 = tpu.matmul %2, %4, %cst {dimension_numbers = #tpu.dot_dimension_numbers<[1], [0], [0], [1], [0, 0, 1, 1], [], []>} : vector<64x136xbf16>, vector<136x8xbf16>, vector<64x8xf32> -> vector<64x8xf32>
    %cst_7 = arith.constant 0.000000e+00 : f32
    %6 = vector.broadcast %cst_7 : f32 to vector<64x8xf32>
    %7 = arith.maximumf %5, %6 : vector<64x8xf32>
    %8 = arith.truncf %7 : vector<64x8xf32> to vector<64x8xbf16>
    %c0_8 = arith.constant 0 : index
    %c0_9 = arith.constant 0 : index
    %c0_10 = arith.constant 0 : index
    %9 = vector.load %arg4[%c0_8, %c0_9, %c0_10] : memref<4x64x8xbf16, #tpu.memory_space<vmem>>, vector<1x64x8xbf16>
    %10 = vector.shape_cast %9 : vector<1x64x8xbf16> to vector<64x8xbf16>
    %11 = vector.shape_cast %8 : vector<64x8xbf16> to vector<1x64x8xbf16>
    tpu.vector_store %arg4[%c0_8, %c0_9, %c0_10], %11 {strides = array<i32>} : memref<4x64x8xbf16, #tpu.memory_space<vmem>>, vector<1x64x8xbf16>,
    %12 = arith.truncf %7 : vector<64x8xf32> to vector<64x8xbf16>
    %cst_11 = arith.constant dense<0.000000e+00> : vector<64x2xf32>
    %13 = tpu.matmul %12, %0, %cst_11 {dimension_numbers = #tpu.dot_dimension_numbers<[1], [0], [0], [1], [0, 0, 1, 1], [], []>} : vector<64x8xbf16>, vector<8x2xbf16>, vector<64x2xf32> -> vector<64x2xf32>
    %c0_12 = arith.constant 0 : index
    %c0_13 = arith.constant 0 : index
    %c0_14 = arith.constant 0 : index
    %14 = vector.load %arg5[%c0_12, %c0_13, %c0_14] : memref<4x64x2xf32, #tpu.memory_space<vmem>>, vector<1x64x2xf32>
    %15 = vector.shape_cast %14 : vector<1x64x2xf32> to vector<64x2xf32>
    %16 = vector.shape_cast %13 : vector<64x2xf32> to vector<1x64x2xf32>
    tpu.vector_store %arg5[%c0_12, %c0_13, %c0_14], %16 {strides = array<i32>} : memref<4x64x2xf32, #tpu.memory_space<vmem>>, vector<1x64x2xf32>,
    %c1 = arith.constant 1 : index
    %c0_15 = arith.constant 0 : index
    %c0_16 = arith.constant 0 : index
    %17 = vector.load %arg1[%c1, %c0_15, %c0_16] : memref<4x64x136xbf16, #tpu.memory_space<vmem>>, vector<1x64x136xbf16>
    %18 = vector.shape_cast %17 : vector<1x64x136xbf16> to vector<64x136xbf16>
    %c1_17 = arith.constant 1 : index
    %c0_18 = arith.constant 0 : index
    %c0_19 = arith.constant 0 : index
    %19 = vector.load %arg2[%c1_17, %c0_18, %c0_19] : memref<4x136x8xbf16, #tpu.memory_space<vmem>>, vector<1x136x8xbf16>
    %20 = vector.shape_cast %19 : vector<1x136x8xbf16> to vector<136x8xbf16>
    %cst_20 = arith.constant dense<0.000000e+00> : vector<64x8xf32>
    %21 = tpu.matmul %18, %20, %cst_20 {dimension_numbers = #tpu.dot_dimension_numbers<[1], [0], [0], [1], [0, 0, 1, 1], [], []>} : vector<64x136xbf16>, vector<136x8xbf16>, vector<64x8xf32> -> vector<64x8xf32>
    %cst_21 = arith.constant 0.000000e+00 : f32
    %22 = vector.broadcast %cst_21 : f32 to vector<64x8xf32>
    %23 = arith.maximumf %21, %22 : vector<64x8xf32>
    %24 = arith.truncf %23 : vector<64x8xf32> to vector<64x8xbf16>
    %c1_22 = arith.constant 1 : index
    %c0_23 = arith.constant 0 : index
    %c0_24 = arith.constant 0 : index
    %25 = vector.load %arg4[%c1_22, %c0_23, %c0_24] : memref<4x64x8xbf16, #tpu.memory_space<vmem>>, vector<1x64x8xbf16>
    %26 = vector.shape_cast %25 : vector<1x64x8xbf16> to vector<64x8xbf16>
    %27 = vector.shape_cast %24 : vector<64x8xbf16> to vector<1x64x8xbf16>
    tpu.vector_store %arg4[%c1_22, %c0_23, %c0_24], %27 {strides = array<i32>} : memref<4x64x8xbf16, #tpu.memory_space<vmem>>, vector<1x64x8xbf16>,
    %28 = arith.truncf %23 : vector<64x8xf32> to vector<64x8xbf16>
    %cst_25 = arith.constant dense<0.000000e+00> : vector<64x2xf32>
    %29 = tpu.matmul %28, %0, %cst_25 {dimension_numbers = #tpu.dot_dimension_numbers<[1], [0], [0], [1], [0, 0, 1, 1], [], []>} : vector<64x8xbf16>, vector<8x2xbf16>, vector<64x2xf32> -> vector<64x2xf32>
    %c1_26 = arith.constant 1 : index
    %c0_27 = arith.constant 0 : index
    %c0_28 = arith.constant 0 : index
    %30 = vector.load %arg5[%c1_26, %c0_27, %c0_28] : memref<4x64x2xf32, #tpu.memory_space<vmem>>, vector<1x64x2xf32>
    %31 = vector.shape_cast %30 : vector<1x64x2xf32> to vector<64x2xf32>
    %32 = vector.shape_cast %29 : vector<64x2xf32> to vector<1x64x2xf32>
    tpu.vector_store %arg5[%c1_26, %c0_27, %c0_28], %32 {strides = array<i32>} : memref<4x64x2xf32, #tpu.memory_space<vmem>>, vector<1x64x2xf32>,
    %c2 = arith.constant 2 : index
    %c0_29 = arith.constant 0 : index
    %c0_30 = arith.constant 0 : index
    %33 = vector.load %arg1[%c2, %c0_29, %c0_30] : memref<4x64x136xbf16, #tpu.memory_space<vmem>>, vector<1x64x136xbf16>
    %34 = vector.shape_cast %33 : vector<1x64x136xbf16> to vector<64x136xbf16>
    %c2_31 = arith.constant 2 : index
    %c0_32 = arith.constant 0 : index
    %c0_33 = arith.constant 0 : index
    %35 = vector.load %arg2[%c2_31, %c0_32, %c0_33] : memref<4x136x8xbf16, #tpu.memory_space<vmem>>, vector<1x136x8xbf16>
    %36 = vector.shape_cast %35 : vector<1x136x8xbf16> to vector<136x8xbf16>
    %cst_34 = arith.constant dense<0.000000e+00> : vector<64x8xf32>
    %37 = tpu.matmul %34, %36, %cst_34 {dimension_numbers = #tpu.dot_dimension_numbers<[1], [0], [0], [1], [0, 0, 1, 1], [], []>} : vector<64x136xbf16>, vector<136x8xbf16>, vector<64x8xf32> -> vector<64x8xf32>
    %cst_35 = arith.constant 0.000000e+00 : f32
    %38 = vector.broadcast %cst_35 : f32 to vector<64x8xf32>
    %39 = arith.maximumf %37, %38 : vector<64x8xf32>
    %40 = arith.truncf %39 : vector<64x8xf32> to vector<64x8xbf16>
    %c2_36 = arith.constant 2 : index
    %c0_37 = arith.constant 0 : index
    %c0_38 = arith.constant 0 : index
    %41 = vector.load %arg4[%c2_36, %c0_37, %c0_38] : memref<4x64x8xbf16, #tpu.memory_space<vmem>>, vector<1x64x8xbf16>
    %42 = vector.shape_cast %41 : vector<1x64x8xbf16> to vector<64x8xbf16>
    %43 = vector.shape_cast %40 : vector<64x8xbf16> to vector<1x64x8xbf16>
    tpu.vector_store %arg4[%c2_36, %c0_37, %c0_38], %43 {strides = array<i32>} : memref<4x64x8xbf16, #tpu.memory_space<vmem>>, vector<1x64x8xbf16>,
    %44 = arith.truncf %39 : vector<64x8xf32> to vector<64x8xbf16>
    %cst_39 = arith.constant dense<0.000000e+00> : vector<64x2xf32>
    %45 = tpu.matmul %44, %0, %cst_39 {dimension_numbers = #tpu.dot_dimension_numbers<[1], [0], [0], [1], [0, 0, 1, 1], [], []>} : vector<64x8xbf16>, vector<8x2xbf16>, vector<64x2xf32> -> vector<64x2xf32>
    %c2_40 = arith.constant 2 : index
    %c0_41 = arith.constant 0 : index
    %c0_42 = arith.constant 0 : index
    %46 = vector.load %arg5[%c2_40, %c0_41, %c0_42] : memref<4x64x2xf32, #tpu.memory_space<vmem>>, vector<1x64x2xf32>
    %47 = vector.shape_cast %46 : vector<1x64x2xf32> to vector<64x2xf32>
    %48 = vector.shape_cast %45 : vector<64x2xf32> to vector<1x64x2xf32>
    tpu.vector_store %arg5[%c2_40, %c0_41, %c0_42], %48 {strides = array<i32>} : memref<4x64x2xf32, #tpu.memory_space<vmem>>, vector<1x64x2xf32>,
    %c3 = arith.constant 3 : index
    %c0_43 = arith.constant 0 : index
    %c0_44 = arith.constant 0 : index
    %49 = vector.load %arg1[%c3, %c0_43, %c0_44] : memref<4x64x136xbf16, #tpu.memory_space<vmem>>, vector<1x64x136xbf16>
    %50 = vector.shape_cast %49 : vector<1x64x136xbf16> to vector<64x136xbf16>
    %c3_45 = arith.constant 3 : index
    %c0_46 = arith.constant 0 : index
    %c0_47 = arith.constant 0 : index
    %51 = vector.load %arg2[%c3_45, %c0_46, %c0_47] : memref<4x136x8xbf16, #tpu.memory_space<vmem>>, vector<1x136x8xbf16>
    %52 = vector.shape_cast %51 : vector<1x136x8xbf16> to vector<136x8xbf16>
    %cst_48 = arith.constant dense<0.000000e+00> : vector<64x8xf32>
    %53 = tpu.matmul %50, %52, %cst_48 {dimension_numbers = #tpu.dot_dimension_numbers<[1], [0], [0], [1], [0, 0, 1, 1], [], []>} : vector<64x136xbf16>, vector<136x8xbf16>, vector<64x8xf32> -> vector<64x8xf32>
    %cst_49 = arith.constant 0.000000e+00 : f32
    %54 = vector.broadcast %cst_49 : f32 to vector<64x8xf32>
    %55 = arith.maximumf %53, %54 : vector<64x8xf32>
    %56 = arith.truncf %55 : vector<64x8xf32> to vector<64x8xbf16>
    %c3_50 = arith.constant 3 : index
    %c0_51 = arith.constant 0 : index
    %c0_52 = arith.constant 0 : index
    %57 = vector.load %arg4[%c3_50, %c0_51, %c0_52] : memref<4x64x8xbf16, #tpu.memory_space<vmem>>, vector<1x64x8xbf16>
    %58 = vector.shape_cast %57 : vector<1x64x8xbf16> to vector<64x8xbf16>
    %59 = vector.shape_cast %56 : vector<64x8xbf16> to vector<1x64x8xbf16>
    tpu.vector_store %arg4[%c3_50, %c0_51, %c0_52], %59 {strides = array<i32>} : memref<4x64x8xbf16, #tpu.memory_space<vmem>>, vector<1x64x8xbf16>,
    %60 = arith.truncf %55 : vector<64x8xf32> to vector<64x8xbf16>
    %cst_53 = arith.constant dense<0.000000e+00> : vector<64x2xf32>
    %61 = tpu.matmul %60, %0, %cst_53 {dimension_numbers = #tpu.dot_dimension_numbers<[1], [0], [0], [1], [0, 0, 1, 1], [], []>} : vector<64x8xbf16>, vector<8x2xbf16>, vector<64x2xf32> -> vector<64x2xf32>
    %c3_54 = arith.constant 3 : index
    %c0_55 = arith.constant 0 : index
    %c0_56 = arith.constant 0 : index
    %62 = vector.load %arg5[%c3_54, %c0_55, %c0_56] : memref<4x64x2xf32, #tpu.memory_space<vmem>>, vector<1x64x2xf32>
    %63 = vector.shape_cast %62 : vector<1x64x2xf32> to vector<64x2xf32>
    %64 = vector.shape_cast %61 : vector<64x2xf32> to vector<1x64x2xf32>
    tpu.vector_store %arg5[%c3_54, %c0_55, %c0_56], %64 {strides = array<i32>} : memref<4x64x2xf32, #tpu.memory_space<vmem>>, vector<1x64x2xf32>,
    return
  }
  func.func @transform_0(%arg0: i32) -> (i32, i32, i32) {
    %c0_i32 = arith.constant 0 : i32
    %c0_i32_0 = arith.constant 0 : i32
    %c0_i32_1 = arith.constant 0 : i32
    return %c0_i32, %arg0, %c0_i32_0 : i32, i32, i32
  }
  func.func @transform_1(%arg0: i32) -> (i32, i32, i32) {
    %c0_i32 = arith.constant 0 : i32
    %c0_i32_0 = arith.constant 0 : i32
    %c0_i32_1 = arith.constant 0 : i32
    %c0_i32_2 = arith.constant 0 : i32
    return %c0_i32, %c0_i32_0, %c0_i32_1 : i32, i32, i32
  }
  func.func @transform_2(%arg0: i32) -> (i32, i32) {
    %c0_i32 = arith.constant 0 : i32
    %c0_i32_0 = arith.constant 0 : i32
    %c0_i32_1 = arith.constant 0 : i32
    return %c0_i32, %c0_i32_0 : i32, i32
  }
  func.func @transform_3(%arg0: i32) -> (i32, i32, i32) {
    %c0_i32 = arith.constant 0 : i32
    %c0_i32_0 = arith.constant 0 : i32
    %c0_i32_1 = arith.constant 0 : i32
    return %c0_i32, %arg0, %c0_i32_0 : i32, i32, i32
  }
  func.func @transform_4(%arg0: i32) -> (i32, i32, i32) {
    %c0_i32 = arith.constant 0 : i32
    %c0_i32_0 = arith.constant 0 : i32
    %c0_i32_1 = arith.constant 0 : i32
    return %c0_i32, %arg0, %c0_i32_0 : i32, i32, i32
  }
}

</mosaic_0001>

<bundles_post_ra>
// kernel: _lambda_.6
= control target key start
LH: loop header
LB: loop body
LE: loop exit
PB: predicated region body
PF: predicated region fallthrough
CT: control target
= control target key end

     0   :  { %s488_s9 = smov 0   ;;  %s522_s0 = inlined_call_operand.vmem [shape: bf16[128,36], index: 0, kind: input, shape index: {}]   ;;  %s523_s1 = inlined_call_operand.vmem [shape: bf16[36,16], index: 1, kind: input, shape index: {}]   ;;  %s524_s2 = inlined_call_operand.vmem [shape: bf16[128,16], index: 2, kind: output, shape index: {}]  }
   0x1 LB: > { %s383_s10 = sadd.s32 4294967295, %s471_s9   ;;  %p387_p0 = scmp.ge.s32.totalorder %s471_s9, 1  ;;  %s471_s9 = sphi %s488_s9, %s12_s9  }
   0x2   : > { %p113_p1 = scmp.lt.s32.totalorder %s471_s9, 3 }
   0x4   : > { %p114_p2 = pnand %p387_p0, %p113_p1 }
   0x5   : > { %v458_v0 = vld [vmem:[%s523_s1] sm:$0xff] (!%p114_p2)   ;;  %v459_v1 = vld [vmem:[%s523_s1 + $0x8] sm:$0xff] (!%p114_p2)   ;;  %s388_s15 = sshll.u32 (!%p114_p2), %s383_s10, 3  ;;  %v460_v2 = vld [vmem:[%s523_s1 + $0x10] ss:$0 sps:$4 sm:$0x33] (!%p114_p2)  }
   0x6   : > { %117 = sbr.rel (%p114_p2) target bundleno = 238 (0xee), region = 28  ;;  %428 = vmatprep.subr.bf16.mxu0 (!%p114_p2), %v458_v0  ;;  %442 = vmatprep.subr.bf16.mxu1 (!%p114_p2), %v458_v0  ;;  %p136_p3 = scmp.lt.s32.totalorder (!%p114_p2), %s388_s15, 15  ;;  %vm209_vm0 = vcmask (!%p114_p2), 1041408   ;;  %vm196_vm1 = vcmask (!%p114_p2), 293888   ;;  %vm318_vm2 = vcmask (!%p114_p2), 125952  }
   0x7   : > { %429 = vmatpush3.bf16.msra.mxu0 (!%p114_p2), %v458_v0  ;;  %445 = vmatpush3.bf16.msra.mxu1 (!%p114_p2), %v458_v0  ;;  %v211_v3 = vsel (!%p114_p2), %vm209_vm0, %v460_v2, 0 }
   0x8   : > { %430 = vmatprep.subr.bf16.mxu0 (!%p114_p2), %v459_v1  ;;  %443 = vmatprep.subr.bf16.mxu1 (!%p114_p2), %v459_v1 }
   0xb   : > { %431 = vmatpush3.bf16.msra.mxu0 (!%p114_p2), %v459_v1  ;;  %446 = vmatpush3.bf16.msra.mxu1 (!%p114_p2), %v459_v1 }
   0xc   : > { %448 = vmatprep.subr.msk.bf16.mxu0 (!%p114_p2), %vm209_vm0, %v460_v2  ;;  %449 = vmatprep.subr.msk.bf16.mxu1 (!%p114_p2), %vm209_vm0, %v460_v2 }
   0xd   : > { %s526_s15 = smov (!%p136_p3, %s388_s15), 15 }
   0xe   : > { %s389_s18 = sshll.u32 %s526_s15, 2 }
   0xf   : > { %s139_s21 = scalar_lea.vmem %s522_s0, %s389_s18  ;;  %433 = vmatpush3.bf16.msra.mxu0 %v211_v3  ;;  %447 = vmatpush3.bf16.msra.mxu1 %v211_v3  ;;  %s145_s24 = scalar_lea.vmem %s524_s2, %s389_s18 }
  0x10   : > { %v461_v4 = vld [vmem:[%s139_s21] sm:$0xff]   ;;  %v462_v5 = vld [vmem:[%s139_s21 + $0x10] sm:$0xff]   ;;  %v463_v6 = vld [vmem:[%s139_s21 + $0x8] sm:$0xff]  }
  0x11   : > { %434 = vmatprep.mubr.msk.bf16.mxu0 %vm196_vm1, %v461_v4  ;;  %v464_v7 = vld [vmem:[%s139_s21 + $0x18] sm:$0xff]   ;;  %438 = vmatprep.mubr.msk.bf16.mxu1 %vm196_vm1, %v462_v5 }
  0x12   : > { %435 = vmatmul.mubr.msk.bf16.vlgmr.msra.gmra.mrb[0].mxu0 %vm196_vm1, %v463_v6  ;;  %439 = vmatmul.mubr.msk.bf16.vlgmr.msra.gmra.mrb[0].mxu1 %vm196_vm1, %v464_v7 }
  0xe5   : > { %v436_v8 = vpop.f32.mrb[0].mxu0  ;;  %v440_v9 = vpop.f32.mrb[0].mxu1 }
  0xe6   : > { %v280_v10 = vmax.f32 %v436_v8, 0.0  ;;  %v284_v11 = vmax.f32 %v440_v9, 0.0  ;;  %v247_v12 = vpop.f32.mrb[1].mxu0  ;;  %v263_v13 = vpop.f32.mrb[1].mxu1 }
  0xe7   : > { %v278_v14 = vmax.f32 %v247_v12, 0.0  ;;  %v282_v15 = vmax.f32 %v263_v13, 0.0  ;;  %v437_v16 = vpop.f32.mrb[2].mxu0  ;;  %v441_v17 = vpop.f32.mrb[2].mxu1 }
  0xe8   : > { %v415_v18 = vpack.c.bf16 %v280_v10, %v280_v10  ;;  %v419_v19 = vpack.c.bf16 %v284_v11, %v284_v11  ;;  %v281_v20 = vmax.f32 %v437_v16, 0.0  ;;  %v285_v21 = vmax.f32 %v441_v17, 0.0  ;;  %v250_v22 = vpop.f32.mrb[3].mxu0  ;;  %v266_v23 = vpop.f32.mrb[3].mxu1 }
  0xe9   : > { %v413_v24 = vpack.c.bf16 %v278_v14, %v278_v14  ;;  %v417_v25 = vpack.c.bf16 %v282_v15, %v282_v15  ;;  %v279_v26 = vmax.f32 %v250_v22, 0.0  ;;  %v283_v27 = vmax.f32 %v266_v23, 0.0 }
  0xea   : > { %321 = vst.msk [vmem:[%s145_s24 + $0x8] sm:$0xf] %vm318_vm2, %v415_v18  ;;  %325 = vst.msk [vmem:[%s145_s24 + $0x18] sm:$0xf] %vm318_vm2, %v419_v19  ;;  %v416_v28 = vpack.c.bf16 %v281_v20, %v281_v20  ;;  %v420_v29 = vpack.c.bf16 %v285_v21, %v285_v21 }
  0xeb   : > { %319 = vst.msk [vmem:[%s145_s24] sm:$0xf] %vm318_vm2, %v413_v24  ;;  %323 = vst.msk [vmem:[%s145_s24 + $0x10] sm:$0xf] %vm318_vm2, %v417_v25  ;;  %v414_v30 = vpack.c.bf16 %v279_v26, %v279_v26  ;;  %v418_v31 = vpack.c.bf16 %v283_v27, %v283_v27 }
  0xec   : > { %322 = vst.msk [vmem:[%s145_s24 + $0xc] sm:$0xf] %vm318_vm2, %v416_v28  ;;  %326 = vst.msk [vmem:[%s145_s24 + $0x1c] sm:$0xf] %vm318_vm2, %v420_v29 }
  0xed   : > { %320 = vst.msk [vmem:[%s145_s24 + $0x4] sm:$0xf] %vm318_vm2, %v414_v30  ;;  %324 = vst.msk [vmem:[%s145_s24 + $0x14] sm:$0xf] %vm318_vm2, %v418_v31 }
  0xee PF: > { %s12_s9 = sadd.s32 1, %s471_s9  }
  0xef   : > { %p9_p4 = scmp.ge.s32.totalorder %s12_s9, 4  }
  0xf1   :  { %11 = sbr.rel (!%p9_p4) target bundleno = 1 (0x1), region = 58 }

// kernel: _lambda_.7
= control target key start
LH: loop header
LB: loop body
LE: loop exit
PB: predicated region body
PF: predicated region fallthrough
CT: control target
= control target key end

     0   :  { %s422_s9 = smov 0   ;;  %s470_s0 = inlined_call_operand.vmem [shape: bf16[32,144], index: 0, kind: input, shape index: {}]   ;;  %s471_s1 = inlined_call_operand.vmem [shape: bf16[144,32], index: 1, kind: input, shape index: {}]   ;;  %s472_s2 = inlined_call_operand.vmem [shape: bf16[32,32], index: 2, kind: output, shape index: {}]  }
   0x1 LB: > { %s348_s10 = sadd.s32 4294967295, %s404_s9   ;;  %p352_p0 = scmp.ge.s32.totalorder %s404_s9, 1  ;;  %s404_s9 = sphi %s422_s9, %s12_s9  }
   0x2   : > { %p114_p1 = scmp.lt.s32.totalorder %s404_s9, 3 }
   0x4   : > { %p115_p2 = pnand %p352_p0, %p114_p1 }
   0x5   : > { %v386_v0 = vld [vmem:[%s471_s1] sm:$0xff] (!%p115_p2)   ;;  %v406_v1 = vmov (!%p115_p2), 0   ;;  %s353_s13 = sshll.u32 (!%p115_p2), %s348_s10, 1  ;;  %v387_v2 = vld [vmem:[%s471_s1 + $0x8] sm:$0xff] (!%p115_p2)   ;;  %v388_v3 = vld [vmem:[%s471_s1 + $0x10] sm:$0xff] (!%p115_p2)   ;;  %vm234_vm0 = vcmask (!%p115_p2), 130048  }
   0x6   : > { %118 = sbr.rel (%p115_p2) target bundleno = 261 (0x105), region = 28  ;;  %238 = vmatprep.subr.bf16.mxu0 (!%p115_p2), %v406_v1  ;;  %p138_p3 = scmp.lt.s32.totalorder (!%p115_p2), %s353_s13, 3  ;;  %v389_v4 = vld [vmem:[%s471_s1 + $0x18] sm:$0xff] (!%p115_p2)   ;;  %v390_v6 = vld [vmem:[%s471_s1 + $0x20] sm:$0xff] (!%p115_p2)   ;;  %v391_v7 = vld [vmem:[%s471_s1 + $0x28] sm:$0xff] (!%p115_p2)   ;;  %vm289_vm1 = vcmask (!%p115_p2), 257024  }
   0x7   : > { %239 = vmatpush1.bf16.msra.mxu0 (!%p115_p2), %v386_v0  ;;  %v392_v8 = vld [vmem:[%s471_s1 + $0x30] sm:$0xff] (!%p115_p2)   ;;  %v393_v9 = vld [vmem:[%s471_s1 + $0x38] sm:$0xff] (!%p115_p2)   ;;  %v394_v10 = vld [vmem:[%s471_s1 + $0x40] sm:$0xff] (!%p115_p2)  }
   0x8   : > { %240 = vmatprep.subr.bf16.mxu0 (!%p115_p2), %v406_v1 }
   0xb   : > { %241 = vmatpush1.bf16.msra.mxu0 (!%p115_p2), %v387_v2 }
   0xc   : > { %242 = vmatprep.subr.bf16.mxu0 (!%p115_p2), %v406_v1 }
   0xd   : > { %s474_s13 = smov (!%p138_p3, %s353_s13), 3 }
   0xe   : > { %s374_s18 = sshll.u32 %s474_s13, 3  ;;  %s357_s6 = sshll.u32 %s474_s13, 2 }
   0xf   : > { %s142_s21 = scalar_lea.vmem %s470_s0, %s374_s18  ;;  %243 = vmatpush1.bf16.msra.mxu0 %v388_v3  ;;  %s148_s10 = scalar_lea.vmem %s472_s2, %s357_s6 }
  0x10   : > { %v397_v5 = vld [vmem:[%s142_s21 + $0x4] ss:$8 sps:$4 sm:$0xff]   ;;  %244 = vmatprep.subr.bf16.mxu0 %v406_v1  ;;  %v395_v11 = vld [vmem:[%s142_s21] ss:$8 sps:$4 sm:$0xff]  }
  0x11   : > { %369 = vmatprep.mubr.msk.bf16.mxu0 %vm234_vm0, %v397_v5 }
  0x13   : > { %245 = vmatpush1.bf16.msra.mxu0 %v389_v4 }
  0x14   : > { %246 = vmatprep.subr.bf16.mxu0 %v406_v1 }
  0x17   : > { %247 = vmatpush1.bf16.msra.mxu0 %v390_v6 }
  0x18   : > { %248 = vmatprep.subr.bf16.mxu0 %v406_v1 }
  0x1b   : > { %249 = vmatpush1.bf16.msra.mxu0 %v391_v7 }
  0x1c   : > { %250 = vmatprep.subr.bf16.mxu0 %v406_v1 }
  0x1f   : > { %251 = vmatpush1.bf16.msra.mxu0 %v392_v8 }
  0x20   : > { %252 = vmatprep.subr.bf16.mxu0 %v406_v1 }
  0x23   : > { %253 = vmatpush1.bf16.msra.mxu0 %v393_v9 }
  0x24   : > { %254 = vmatprep.subr.bf16.mxu0 %v406_v1 }
  0x27   : > { %255 = vmatpush1.bf16.msra.mxu0 %v394_v10 }
  0x2a   : > { %271 = vmatmul.mubr.bf16.vlgmr.msra.gmra.mrb[0].mxu0 %v395_v11 }
  0xfd   : > { %v272_v12 = vpop.f32.mrb[0].mxu0 }
  0xfe   : > { %v279_v13 = vmax.f32 %v272_v12, 0.0  ;;  %v274_v14 = vpop.f32.mrb[1].mxu0 }
  0xff   : > { %v275_v15 = vpop.f32.mrb[2].mxu0 }
 0x100   : > { %v375_v16 = vpack.c.bf16 %v279_v13, %v279_v13  ;;  %v280_v17 = vmax.f32 %v275_v15, 0.0  ;;  %v277_v18 = vpop.f32.mrb[3].mxu0 }
 0x102   : > { %290 = vst.msk [vmem:[%s148_s10] sm:$0xf] %vm289_vm1, %v375_v16  ;;  %v376_v19 = vpack.c.bf16 %v280_v17, %v280_v17 }
 0x104   : > { %291 = vst.msk [vmem:[%s148_s10 + $0x4] sm:$0xf] %vm289_vm1, %v376_v19 }
 0x105 PF: > { %s12_s9 = sadd.s32 1, %s404_s9  }
 0x106   : > { %p9_p4 = scmp.ge.s32.totalorder %s12_s9, 4  }
 0x108   :  { %11 = sbr.rel (!%p9_p4) target bundleno = 1 (0x1), region = 58 }

// kernel: _lambda_.9
= control target key start
LH: loop header
LB: loop body
LE: loop exit
PB: predicated region body
PF: predicated region fallthrough
CT: control target
= control target key end

     0   :  { %s673_s12 = smov 0   ;;  %s751_s0 = inlined_call_operand.vmem [shape: bf16[32,288], index: 0, kind: input, shape index: {}]   ;;  %s752_s1 = inlined_call_operand.vmem [shape: bf16[288,32], index: 1, kind: input, shape index: {}]   ;;  %s753_s2 = inlined_call_operand.vmem [shape: bf16[32,32], index: 2, kind: input, shape index: {}]   ;;  %s754_s3 = inlined_call_operand.vmem [shape: bf16[32,32], index: 3, kind: output, shape index: {}]  }
   0x1 LB: > { %s534_s13 = sadd.s32 4294967295, %s649_s12   ;;  %p538_p0 = scmp.ge.s32.totalorder %s649_s12, 1  ;;  %s649_s12 = sphi %s673_s12, %s13_s12  }
   0x2   : > { %p150_p1 = scmp.lt.s32.totalorder %s649_s12, 3 }
   0x4   : > { %p151_p2 = pnand %p538_p0, %p150_p1 }
   0x5   : > { %v621_v0 = vld [vmem:[%s752_s1 + $0x40] sm:$0xff] (!%p151_p2)   ;;  %v651_v2 = vmov (!%p151_p2), 0.0   ;;  %s539_s18 = sshll.u32 (!%p151_p2), %s534_s13, 1  ;;  %v623_v3 = vld [vmem:[%s752_s1 + $0x48] sm:$0xff] (!%p151_p2)   ;;  %v625_v5 = vld [vmem:[%s752_s1 + $0x50] sm:$0xff] (!%p151_p2)   ;;  %vm652_vm0 = vmmov (!%p151_p2), 0  }
   0x6   : > { %154 = sbr.rel (%p151_p2) target bundleno = 264 (0x108), region = 32  ;;  %v622_v1 = vld [vmem:[%s752_s1] sm:$0xff] (!%p151_p2)   ;;  %602 = vmatprep.subr.bf16.mxu1 (!%p151_p2), %v651_v2  ;;  %577 = vmatprep.subr.bf16.mxu0 (!%p151_p2), %v621_v0  ;;  %p181_p3 = scmp.lt.s32.totalorder (!%p151_p2), %s539_s18, 3  ;;  %v624_v4 = vld [vmem:[%s752_s1 + $0x8] sm:$0xff] (!%p151_p2)   ;;  %v626_v6 = vld [vmem:[%s752_s1 + $0x10] sm:$0xff] (!%p151_p2)   ;;  %vm367_vm1 = vcmask (!%p151_p2), 261120  }
   0x7   : > { %578 = vmatpush3.bf16.msra.mxu0 (!%p151_p2), %v622_v1  ;;  %606 = vmatprep.mubr.msk.bf16.mxu1 (!%p151_p2), %vm652_vm0, %v651_v2  ;;  %v627_v7 = vld [vmem:[%s752_s1 + $0x58] sm:$0xff] (!%p151_p2)   ;;  %v629_v9 = vld [vmem:[%s752_s1 + $0x60] sm:$0xff] (!%p151_p2)   ;;  %v631_v12 = vld [vmem:[%s752_s1 + $0x68] sm:$0xff] (!%p151_p2)   ;;  %vm463_vm2 = vcmask (!%p151_p2), 257024  }
   0x8   : > { %579 = vmatprep.subr.bf16.mxu0 (!%p151_p2), %v623_v3  ;;  %v628_v8 = vld [vmem:[%s752_s1 + $0x18] sm:$0xff] (!%p151_p2)   ;;  %v635_v10 = vld [vmem:[%s752_s1 + $0x80] sm:$0xff] (!%p151_p2)   ;;  %v632_v13 = vld [vmem:[%s752_s1 + $0x28] sm:$0xff] (!%p151_p2)  }
   0x9   : > { %v630_v11 = vld [vmem:[%s752_s1 + $0x20] sm:$0xff] (!%p151_p2)   ;;  %603 = vmatpush3.bf16.msra.mxu1 (!%p151_p2), %v635_v10  ;;  %v641_v15 = vld [vmem:[%s752_s1 + $0x88] sm:$0xff] (!%p151_p2)   ;;  %v633_v16 = vld [vmem:[%s752_s1 + $0x70] sm:$0xff] (!%p151_p2)  }
   0xa   : > { %604 = vmatprep.subr.bf16.mxu1 (!%p151_p2), %v651_v2  ;;  %v634_v18 = vld [vmem:[%s752_s1 + $0x30] sm:$0xff] (!%p151_p2)   ;;  %v636_v19 = vld [vmem:[%s752_s1 + $0x78] sm:$0xff] (!%p151_p2)  }
   0xb   : > { %580 = vmatpush3.bf16.msra.mxu0 (!%p151_p2), %v624_v4  ;;  %v637_v20 = vld [vmem:[%s752_s1 + $0x38] sm:$0xff] (!%p151_p2)  }
   0xc   : > { %581 = vmatprep.subr.bf16.mxu0 (!%p151_p2), %v625_v5 }
   0xd   : > { %s756_s18 = smov (!%p181_p3, %s539_s18), 3  ;;  %605 = vmatpush3.bf16.msra.mxu1 %v641_v15 }
   0xe   : > { %s610_s4 = smul.u32 12, %s756_s18  ;;  %s542_s30 = sshll.u32 %s756_s18, 2 }
   0xf   : > { %582 = vmatpush3.bf16.msra.mxu0 %v626_v6  ;;  %s191_s6 = scalar_lea.vmem %s753_s2, %s542_s30  ;;  %s197_s8 = scalar_lea.vmem %s754_s3, %s542_s30 }
  0x10   : > { %583 = vmatprep.subr.bf16.mxu0 %v627_v7  ;;  %s185_s14 = scalar_lea.vmem %s751_s0, %s610_s4  ;;  %v574_v26 = vld [vmem:[%s191_s6] sm:$0xff]  }
  0x11   : > { %v640_v14 = vld [vmem:[%s185_s14 + $0x4] ss:$12 sps:$4 sm:$0xff]   ;;  %v642_v17 = vld [vmem:[%s185_s14 + $0x8] ss:$12 sps:$4 sm:$0xff]   ;;  %v638_v21 = vld [vmem:[%s185_s14] ss:$12 sps:$4 sm:$0xff]   ;;  %v575_v28 = vunpack.c.l.bf16 %v574_v26  ;;  %v576_v32 = vunpack.c.h.bf16 %v574_v26 }
  0x12   : > { %403 = vmatprep.mubr.bf16.mxu0 %v640_v14  ;;  %607 = vmatmul.mubr.msk.bf16.vlgmr.msra.gmra.mrb[0].mxu1 %vm367_vm1, %v642_v17 }
  0x13   : > { %584 = vmatpush3.bf16.msra.mxu0 %v628_v8 }
  0x14   : > { %585 = vmatprep.subr.bf16.mxu0 %v629_v9 }
  0x17   : > { %586 = vmatpush3.bf16.msra.mxu0 %v630_v11 }
  0x18   : > { %587 = vmatprep.subr.bf16.mxu0 %v631_v12 }
  0x1b   : > { %588 = vmatpush3.bf16.msra.mxu0 %v632_v13 }
  0x1c   : > { %589 = vmatprep.subr.bf16.mxu0 %v633_v16 }
  0x1f   : > { %590 = vmatpush3.bf16.msra.mxu0 %v634_v18 }
  0x20   : > { %591 = vmatprep.subr.bf16.mxu0 %v636_v19 }
  0x23   : > { %592 = vmatpush3.bf16.msra.mxu0 %v637_v20 }
  0x26   : > { %404 = vmatmul.mubr.bf16.vlgmr.msra.gmra.mrb[0].mxu0 %v638_v21 }
  0xe5   : > { %v446_v22 = vpop.f32.mrb[0].mxu1 }
  0xe6   : > { %v608_v23 = vpop.f32.mrb[1].mxu1 }
  0xe7   : > { %v449_v24 = vpop.f32.mrb[2].mxu1 }
  0xe8   : > { %v609_v25 = vpop.f32.mrb[3].mxu1 }
  0xf9   : > { %v593_v27 = vpop.f32.mrb[0].mxu0 }
  0xfa   : > { %v594_v29 = vpop.f32.mrb[1].mxu0 }
  0xfb   : > { %v595_v30 = vadd.f32 %v594_v29, %v593_v27  ;;  %v596_v31 = vpop.f32.mrb[2].mxu0 }
  0xfc   : > { %v597_v33 = vpop.f32.mrb[3].mxu0 }
  0xfd   : > { %v406_v34 = vadd.f32 %v595_v30, %v575_v28  ;;  %v598_v35 = vadd.f32 %v597_v33, %v596_v31 }
  0xff   : > { %v447_v36 = vadd.f32 %v446_v22, %v406_v34  ;;  %v409_v37 = vadd.f32 %v598_v35, %v576_v32 }
 0x101   : > { %v453_v38 = vmax.f32 %v447_v36, 0.0  ;;  %v450_v39 = vadd.f32 %v449_v24, %v409_v37 }
 0x103   : > { %v571_v40 = vpack.c.bf16 %v453_v38, %v453_v38  ;;  %v454_v41 = vmax.f32 %v450_v39, 0.0 }
 0x105   : > { %464 = vst.msk [vmem:[%s197_s8] sm:$0xf] %vm463_vm2, %v571_v40  ;;  %v572_v42 = vpack.c.bf16 %v454_v41, %v454_v41 }
 0x107   : > { %465 = vst.msk [vmem:[%s197_s8 + $0x4] sm:$0xf] %vm463_vm2, %v572_v42 }
 0x108 PF: > { %s13_s12 = sadd.s32 1, %s649_s12  }
 0x109   : > { %p10_p4 = scmp.ge.s32.totalorder %s13_s12, 4  }
 0x10b   :  { %12 = sbr.rel (!%p10_p4) target bundleno = 1 (0x1), region = 65 }

// kernel: _lambda_.8
= control target key start
LH: loop header
LB: loop body
LE: loop exit
PB: predicated region body
PF: predicated region fallthrough
CT: control target
= control target key end

     0   :  { %s597_s9 = smov 0   ;;  %s672_s0 = inlined_call_operand.vmem [shape: bf16[32,288], index: 0, kind: input, shape index: {}]   ;;  %s673_s1 = inlined_call_operand.vmem [shape: bf16[288,32], index: 1, kind: input, shape index: {}]   ;;  %s674_s2 = inlined_call_operand.vmem [shape: bf16[32,32], index: 2, kind: output, shape index: {}]  }
   0x1 LB: > { %s469_s10 = sadd.s32 4294967295, %s578_s9   ;;  %p473_p0 = scmp.ge.s32.totalorder %s578_s9, 1  ;;  %s578_s9 = sphi %s597_s9, %s12_s9  }
   0x2   : > { %p114_p1 = scmp.lt.s32.totalorder %s578_s9, 3 }
   0x4   : > { %p115_p2 = pnand %p473_p0, %p114_p1 }
   0x5   : > { %v550_v0 = vld [vmem:[%s673_s1 + $0x40] sm:$0xff] (!%p115_p2)   ;;  %v580_v2 = vmov (!%p115_p2), 0.0   ;;  %s474_s15 = sshll.u32 (!%p115_p2), %s469_s10, 1  ;;  %v552_v3 = vld [vmem:[%s673_s1 + $0x48] sm:$0xff] (!%p115_p2)   ;;  %v554_v5 = vld [vmem:[%s673_s1 + $0x50] sm:$0xff] (!%p115_p2)   ;;  %vm581_vm0 = vmmov (!%p115_p2), 0  }
   0x6   : > { %118 = sbr.rel (%p115_p2) target bundleno = 262 (0x106), region = 28  ;;  %v551_v1 = vld [vmem:[%s673_s1] sm:$0xff] (!%p115_p2)   ;;  %531 = vmatprep.subr.bf16.mxu1 (!%p115_p2), %v580_v2  ;;  %506 = vmatprep.subr.bf16.mxu0 (!%p115_p2), %v550_v0  ;;  %v553_v4 = vld [vmem:[%s673_s1 + $0x8] sm:$0xff] (!%p115_p2)   ;;  %p138_p3 = scmp.lt.s32.totalorder (!%p115_p2), %s474_s15, 3  ;;  %v555_v6 = vld [vmem:[%s673_s1 + $0x10] sm:$0xff] (!%p115_p2)   ;;  %vm314_vm1 = vcmask (!%p115_p2), 261120  }
   0x7   : > { %507 = vmatpush3.bf16.msra.mxu0 (!%p115_p2), %v551_v1  ;;  %535 = vmatprep.mubr.msk.bf16.mxu1 (!%p115_p2), %vm581_vm0, %v580_v2  ;;  %v556_v7 = vld [vmem:[%s673_s1 + $0x58] sm:$0xff] (!%p115_p2)   ;;  %v558_v9 = vld [vmem:[%s673_s1 + $0x60] sm:$0xff] (!%p115_p2)   ;;  %v560_v12 = vld [vmem:[%s673_s1 + $0x68] sm:$0xff] (!%p115_p2)   ;;  %vm410_vm2 = vcmask (!%p115_p2), 257024  }
   0x8   : > { %508 = vmatprep.subr.bf16.mxu0 (!%p115_p2), %v552_v3  ;;  %v557_v8 = vld [vmem:[%s673_s1 + $0x18] sm:$0xff] (!%p115_p2)   ;;  %v564_v10 = vld [vmem:[%s673_s1 + $0x80] sm:$0xff] (!%p115_p2)   ;;  %v567_v13 = vld [vmem:[%s673_s1 + $0x88] sm:$0xff] (!%p115_p2)  }
   0x9   : > { %v559_v11 = vld [vmem:[%s673_s1 + $0x20] sm:$0xff] (!%p115_p2)   ;;  %532 = vmatpush3.bf16.msra.mxu1 (!%p115_p2), %v564_v10  ;;  %v561_v14 = vld [vmem:[%s673_s1 + $0x28] sm:$0xff] (!%p115_p2)   ;;  %v562_v16 = vld [vmem:[%s673_s1 + $0x70] sm:$0xff] (!%p115_p2)  }
   0xa   : > { %533 = vmatprep.subr.bf16.mxu1 (!%p115_p2), %v580_v2  ;;  %v563_v18 = vld [vmem:[%s673_s1 + $0x30] sm:$0xff] (!%p115_p2)   ;;  %v565_v19 = vld [vmem:[%s673_s1 + $0x78] sm:$0xff] (!%p115_p2)  }
   0xb   : > { %509 = vmatpush3.bf16.msra.mxu0 (!%p115_p2), %v553_v4  ;;  %v566_v20 = vld [vmem:[%s673_s1 + $0x38] sm:$0xff] (!%p115_p2)  }
   0xc   : > { %510 = vmatprep.subr.bf16.mxu0 (!%p115_p2), %v554_v5 }
   0xd   : > { %s676_s15 = smov (!%p138_p3, %s474_s15), 3  ;;  %534 = vmatpush3.bf16.msra.mxu1 %v567_v13 }
   0xe   : > { %s539_s30 = smul.u32 12, %s676_s15  ;;  %s477_s26 = sshll.u32 %s676_s15, 2 }
   0xf   : > { %511 = vmatpush3.bf16.msra.mxu0 %v555_v6  ;;  %s148_s29 = scalar_lea.vmem %s674_s2, %s477_s26 }
  0x10   : > { %512 = vmatprep.subr.bf16.mxu0 %v556_v7  ;;  %s142_s12 = scalar_lea.vmem %s672_s0, %s539_s30 }
  0x11   : > { %v570_v15 = vld [vmem:[%s142_s12 + $0x4] ss:$12 sps:$4 sm:$0xff]   ;;  %v571_v17 = vld [vmem:[%s142_s12 + $0x8] ss:$12 sps:$4 sm:$0xff]   ;;  %v568_v21 = vld [vmem:[%s142_s12] ss:$12 sps:$4 sm:$0xff]  }
  0x12   : > { %350 = vmatprep.mubr.bf16.mxu0 %v570_v15  ;;  %536 = vmatmul.mubr.msk.bf16.vlgmr.msra.gmra.mrb[0].mxu1 %vm314_vm1, %v571_v17 }
  0x13   : > { %513 = vmatpush3.bf16.msra.mxu0 %v557_v8 }
  0x14   : > { %514 = vmatprep.subr.bf16.mxu0 %v558_v9 }
  0x17   : > { %515 = vmatpush3.bf16.msra.mxu0 %v559_v11 }
  0x18   : > { %516 = vmatprep.subr.bf16.mxu0 %v560_v12 }
  0x1b   : > { %517 = vmatpush3.bf16.msra.mxu0 %v561_v14 }
  0x1c   : > { %518 = vmatprep.subr.bf16.mxu0 %v562_v16 }
  0x1f   : > { %519 = vmatpush3.bf16.msra.mxu0 %v563_v18 }
  0x20   : > { %520 = vmatprep.subr.bf16.mxu0 %v565_v19 }
  0x23   : > { %521 = vmatpush3.bf16.msra.mxu0 %v566_v20 }
  0x26   : > { %351 = vmatmul.mubr.bf16.vlgmr.msra.gmra.mrb[0].mxu0 %v568_v21 }
  0xe5   : > { %v393_v22 = vpop.f32.mrb[0].mxu1 }
  0xe6   : > { %v537_v23 = vpop.f32.mrb[1].mxu1 }
  0xe7   : > { %v396_v24 = vpop.f32.mrb[2].mxu1 }
  0xe8   : > { %v538_v25 = vpop.f32.mrb[3].mxu1 }
  0xf9   : > { %v522_v26 = vpop.f32.mrb[0].mxu0 }
  0xfa   : > { %v523_v27 = vpop.f32.mrb[1].mxu0 }
  0xfb   : > { %v524_v28 = vadd.f32 %v523_v27, %v522_v26  ;;  %v525_v29 = vpop.f32.mrb[2].mxu0 }
  0xfc   : > { %v526_v30 = vpop.f32.mrb[3].mxu0 }
  0xfd   : > { %v394_v31 = vadd.f32 %v524_v28, %v393_v22  ;;  %v527_v32 = vadd.f32 %v526_v30, %v525_v29 }
  0xff   : > { %v400_v33 = vmax.f32 %v394_v31, 0.0  ;;  %v397_v34 = vadd.f32 %v527_v32, %v396_v24 }
 0x101   : > { %v504_v35 = vpack.c.bf16 %v400_v33, %v400_v33  ;;  %v401_v36 = vmax.f32 %v397_v34, 0.0 }
 0x103   : > { %411 = vst.msk [vmem:[%s148_s29] sm:$0xf] %vm410_vm2, %v504_v35  ;;  %v505_v37 = vpack.c.bf16 %v401_v36, %v401_v36 }
 0x105   : > { %412 = vst.msk [vmem:[%s148_s29 + $0x4] sm:$0xf] %vm410_vm2, %v505_v37 }
 0x106 PF: > { %s12_s9 = sadd.s32 1, %s578_s9  }
 0x107   : > { %p9_p4 = scmp.ge.s32.totalorder %s12_s9, 4  }
 0x109   :  { %11 = sbr.rel (!%p9_p4) target bundleno = 1 (0x1), region = 58 }

// kernel: _lambda_.10
= control target key start
LH: loop header
LB: loop body
LE: loop exit
PB: predicated region body
PF: predicated region fallthrough
CT: control target
= control target key end

     0   :  { %s1982_s15 = smov 0   ;;  %s1984_s16 = smov 0   ;;  %s2331_s0 = inlined_call_operand.vmem [shape: bf16[4,32,256], index: 0, kind: input, shape index: {}]   ;;  %s2332_s1 = inlined_call_operand.vmem [shape: bf16[4,256,16], index: 1, kind: input, shape index: {}]   ;;  %s2333_s2 = inlined_call_operand.vmem [shape: bf16[16,2], index: 2, kind: input, shape index: {}]   ;;  %s2334_s3 = inlined_call_operand.vmem [shape: bf16[4,32,16], index: 3, kind: output, shape index: {0}]   ;;  %s2335_s4 = inlined_call_operand.vmem [shape: f32[4,32,2], index: 4, kind: output, shape index: {1}]  }
   0x1   :  { %s1986_s17 = smov 0  }
   0x2 LB: > { %s1998_s18 = sadd.s32 4294967295, %s1953_s17   ;;  %s2001_s19 = sadd.s32 1, %s1953_s17   ;;  %s1953_s17 = sphi %s1986_s17, %s2339_s17   ;;  %s1949_s16 = sphi %s1984_s16, %s2338_s16   ;;  %s1945_s15 = sphi %s1982_s15, %s2337_s15  }
   0x3   : > { %s19_s20 = ssub.s32 %s1953_s17, %s2001_s19  ;;  %s22_s21 = sadd.s32 1, %s1949_s16 }
   0x4   : > { %p20_p0 = scmp.eq.s32.totalorder %s19_s20, 0  ;;  %p29_p1 = scmp.ne.s32.totalorder %s1949_s16, %s1945_s15 }
   0x5   : > { %p30_p2 = scmp.eq.s32.totalorder %s1953_s17, 0  ;;  %p101_p3 = scmp.eq.s32.totalorder %s1998_s18, 1 }
   0x6   : > { %s2011_s22 = scalar_select %p20_p0, %s1949_s16, %s22_s21  }
   0x7   : > { %p31_p4 = por %p30_p2, %p29_p1  ;;  %p2013_p5 = por %p101_p3, %p29_p1 }
   0x8   : > { %p1480_p6 = scmp.ge.s32.totalorder %s1953_s17, 2 }
   0xa   : > { %155 = sbr.rel (%p1480_p6) target bundleno = 25 (0x19), region = 24 }
  0x11   : > { %158 = sbr.rel (!%p31_p4) target bundleno = 25 (0x19), region = 28  ;;  %s160_s24 = sand.u32 (%p31_p4), 1, %s1949_s16  }
  0x12   : > { %s1697_s25 = sshll.u32 (%p31_p4), %s1953_s17, 4  ;;  %s1481_s26 = sshll.u32 (%p31_p4), %s160_s24, 6 }
  0x13   : > { %s166_s29 = scalar_lea.vmem (%p31_p4), %s2331_s0, %s1697_s25  ;;  %s162_s30 = scalar_lea.vmem (%p31_p4), [#allocation2], %s1481_s26 }
  0x14   : > { %v208_v0 = vld [vmem:[%s166_s29] sm:$0xff] (%p31_p4)  ;;  %v210_v1 = vld [vmem:[%s166_s29 + $0x8] sm:$0xff] (%p31_p4) }
  0x15   : > { %v212_v2 = vld [vmem:[%s166_s29 + $0x20] sm:$0xff] (%p31_p4)  ;;  %209 = vst [vmem:[%s162_s30] sm:$0xff] (%p31_p4), %v208_v0  ;;  %211 = vst [vmem:[%s162_s30 + $0x8] sm:$0xff] (%p31_p4), %v210_v1  ;;  %v214_v3 = vld [vmem:[%s166_s29 + $0x28] sm:$0xff] (%p31_p4) }
  0x16   : > { %213 = vst [vmem:[%s162_s30 + $0x10] sm:$0xff] (%p31_p4), %v212_v2  ;;  %v216_v4 = vld [vmem:[%s166_s29 + $0x40] sm:$0xff] (%p31_p4)  ;;  %v218_v5 = vld [vmem:[%s166_s29 + $0x48] sm:$0xff] (%p31_p4)  ;;  %215 = vst [vmem:[%s162_s30 + $0x18] sm:$0xff] (%p31_p4), %v214_v3 }
  0x17   : > { %217 = vst [vmem:[%s162_s30 + $0x20] sm:$0xff] (%p31_p4), %v216_v4  ;;  %219 = vst [vmem:[%s162_s30 + $0x28] sm:$0xff] (%p31_p4), %v218_v5  ;;  %v220_v6 = vld [vmem:[%s166_s29 + $0x60] sm:$0xff] (%p31_p4)  ;;  %v222_v7 = vld [vmem:[%s166_s29 + $0x68] sm:$0xff] (%p31_p4) }
  0x18   : > { %221 = vst [vmem:[%s162_s30 + $0x30] sm:$0xff] %v220_v6  ;;  %223 = vst [vmem:[%s162_s30 + $0x38] sm:$0xff] %v222_v7 }
  0x19 PF: > { %p1485_p7 = scmp.ge.s32.totalorder %s1953_s17, 1  ;;  %p228_p8 = scmp.lt.s32.totalorder %s1953_s17, 3 }
  0x1b   : > { %p229_p9 = pnand %p1485_p7, %p228_p8 }
  0x1c   : > { %v1854_v8 = vld [vmem:[%s2332_s1 + $0x40] sm:$0xff] (!%p229_p9)   ;;  %v1856_v10 = vld [vmem:[%s2332_s1 + $0x48] sm:$0xff] (!%p229_p9)   ;;  %v1858_v12 = vld [vmem:[%s2332_s1 + $0x50] sm:$0xff] (!%p229_p9)   ;;  %s235_s25 = sand.u32 (!%p229_p9), 1, %s1945_s15   ;;  %v1955_v27 = vmov (!%p229_p9), 0.0   ;;  %vm1956_vm0 = vmmov (!%p229_p9), 0  }
  0x1d   : > { %232 = sbr.rel (%p229_p9) target bundleno = 1043 (0x413), region = 66  ;;  %v1855_v9 = vld [vmem:[%s2332_s1] sm:$0xff] (!%p229_p9)   ;;  %1708 = vmatprep.subr.bf16.mxu0 (!%p229_p9), %v1854_v8  ;;  %v1857_v11 = vld [vmem:[%s2332_s1 + $0x8] sm:$0xff] (!%p229_p9)   ;;  %v1859_v13 = vld [vmem:[%s2332_s1 + $0x10] sm:$0xff] (!%p229_p9)   ;;  %s2052_s28 = sshll.u32 (!%p229_p9), %s235_s25, 6  ;;  %1804 = vmatprep.subr.bf16.mxu1 (!%p229_p9), %v1955_v27  ;;  %vm460_vm1 = vcmask (!%p229_p9), 125952  }
  0x1e   : > { %1709 = vmatpush3.bf16.msra.mxu0 (!%p229_p9), %v1855_v9  ;;  %v1860_v14 = vld [vmem:[%s2332_s1 + $0x58] sm:$0xff] (!%p229_p9)   ;;  %v1862_v16 = vld [vmem:[%s2332_s1 + $0x60] sm:$0xff] (!%p229_p9)   ;;  %v1864_v18 = vld [vmem:[%s2332_s1 + $0x68] sm:$0xff] (!%p229_p9)   ;;  %s2064_s9 = scalar_lea.vmem (!%p229_p9), [#allocation2], %s2052_s28  ;;  %1806 = vmatprep.mubr.msk.bf16.mxu1 (!%p229_p9), %vm1956_vm0, %v1955_v27  ;;  %s1487_s6 = sshll.u32 (!%p229_p9), %s235_s25, 5  ;;  %vm469_vm2 = vcmask (!%p229_p9), 130048  }
  0x1f   : > { %1710 = vmatprep.subr.bf16.mxu0 (!%p229_p9), %v1856_v10  ;;  %v1861_v15 = vld [vmem:[%s2332_s1 + $0x18] sm:$0xff] (!%p229_p9)   ;;  %v1863_v17 = vld [vmem:[%s2332_s1 + $0x20] sm:$0xff] (!%p229_p9)   ;;  %v1865_v19 = vld [vmem:[%s2332_s1 + $0x28] sm:$0xff] (!%p229_p9)   ;;  %s2106_s10 = scalar_lea.vmem (!%p229_p9), [#allocation3], %s1487_s6  ;;  %vm514_vm3 = vcmask (!%p229_p9), 15360   ;;  %s2211_s17 = scalar_lea.vmem (!%p229_p9), [#allocation4], %s2052_s28 }
  0x20   : > { %v1872_v20 = vld [vmem:[%s2064_s9 + $0x4] ss:$8 sps:$4 sm:$0xff] (!%p229_p9)   ;;  %v1866_v21 = vld [vmem:[%s2332_s1 + $0x70] sm:$0xff] (!%p229_p9)   ;;  %v1868_v23 = vld [vmem:[%s2332_s1 + $0x78] sm:$0xff] (!%p229_p9)  }
  0x21   : > { %441 = vmatprep.mubr.bf16.mxu0 (!%p229_p9), %v1872_v20  ;;  %v1867_v22 = vld [vmem:[%s2332_s1 + $0x30] sm:$0xff] (!%p229_p9)   ;;  %v1869_v24 = vld [vmem:[%s2332_s1 + $0x38] sm:$0xff] (!%p229_p9)   ;;  %v1870_v25 = vld [vmem:[%s2064_s9] ss:$8 sps:$4 sm:$0xff] (!%p229_p9)  }
  0x22   : > { %1711 = vmatpush3.bf16.msra.mxu0 (!%p229_p9), %v1857_v11  ;;  %v2086_v26 = vld [vmem:[%s2333_s2] sm:$0xff] (!%p229_p9)   ;;  %v1892_v39 = vld [vmem:[%s2064_s9 + $0x14] ss:$8 sps:$4 sm:$0xff] (!%p229_p9)   ;;  %v1876_v42 = vld [vmem:[%s2332_s1 + $0xc8] sm:$0xff] (!%p229_p9)  }
  0x23   : > { %1712 = vmatprep.subr.bf16.mxu0 (!%p229_p9), %v1858_v12  ;;  %1805 = vmatpush3.bf16.msra.mxu1 (!%p229_p9), %v2086_v26  ;;  %v1874_v28 = vld [vmem:[%s2332_s1 + $0xc0] sm:$0xff] (!%p229_p9)   ;;  %v1877_v43 = vld [vmem:[%s2332_s1 + $0x88] sm:$0xff] (!%p229_p9)   ;;  %v1878_v44 = vld [vmem:[%s2332_s1 + $0xd0] sm:$0xff] (!%p229_p9)  }
  0x24   : > { %1732 = vmatprep.subr.bf16.mxu1 %v1874_v28  ;;  %v1875_v38 = vld [vmem:[%s2332_s1 + $0x80] sm:$0xff]   ;;  %v1879_v45 = vld [vmem:[%s2332_s1 + $0x90] sm:$0xff]   ;;  %v1880_v46 = vld [vmem:[%s2332_s1 + $0xd8] sm:$0xff]  }
  0x25   : > { %v1881_v47 = vld [vmem:[%s2332_s1 + $0x98] sm:$0xff]   ;;  %v1882_v48 = vld [vmem:[%s2332_s1 + $0xe0] sm:$0xff]   ;;  %v1884_v50 = vld [vmem:[%s2332_s1 + $0xe8] sm:$0xff]  }
  0x26   : > { %1713 = vmatpush3.bf16.msra.mxu0 %v1859_v13  ;;  %v1883_v49 = vld [vmem:[%s2332_s1 + $0xa0] sm:$0xff]   ;;  %v1885_v51 = vld [vmem:[%s2332_s1 + $0xa8] sm:$0xff]   ;;  %v1886_v52 = vld [vmem:[%s2332_s1 + $0xf0] sm:$0xff]  }
  0x27   : > { %1714 = vmatprep.subr.bf16.mxu0 %v1860_v14  ;;  %v1887_v53 = vld [vmem:[%s2332_s1 + $0xb0] sm:$0xff]   ;;  %v1888_v54 = vld [vmem:[%s2332_s1 + $0xf8] sm:$0xff]   ;;  %v1893_v56 = vld [vmem:[%s2332_s1 + $0x140] sm:$0xff]  }
  0x28   : > { %v1889_v55 = vld [vmem:[%s2332_s1 + $0xb8] sm:$0xff]   ;;  %v1894_v58 = vld [vmem:[%s2332_s1 + $0x100] sm:$0xff]   ;;  %v1895_v60 = vld [vmem:[%s2332_s1 + $0x148] sm:$0xff]  }
  0x29   : > { %v1890_v57 = vld [vmem:[%s2064_s9 + $0x10] ss:$8 sps:$4 sm:$0xff]   ;;  %v1911_v59 = vld [vmem:[%s2064_s9 + $0x24] ss:$8 sps:$4 sm:$0xff]   ;;  %v1909_v10 = vld [vmem:[%s2064_s9 + $0x20] ss:$8 sps:$4 sm:$0xff]  }
  0x2a   : > { %1715 = vmatpush3.bf16.msra.mxu0 %v1861_v15  ;;  %v1896_v61 = vld [vmem:[%s2332_s1 + $0x108] sm:$0xff]   ;;  %v1897_v62 = vld [vmem:[%s2332_s1 + $0x150] sm:$0xff]   ;;  %v1899_v0 = vld [vmem:[%s2332_s1 + $0x158] sm:$0xff]  }
  0x2b   : > { %1716 = vmatprep.subr.bf16.mxu0 %v1862_v16  ;;  %v1898_v63 = vld [vmem:[%s2332_s1 + $0x110] sm:$0xff]   ;;  %v1900_v1 = vld [vmem:[%s2332_s1 + $0x118] sm:$0xff]   ;;  %v1901_v2 = vld [vmem:[%s2332_s1 + $0x160] sm:$0xff]  }
  0x2c   : > { %v1902_v3 = vld [vmem:[%s2332_s1 + $0x120] sm:$0xff]   ;;  %v1903_v4 = vld [vmem:[%s2332_s1 + $0x168] sm:$0xff]   ;;  %v1905_v6 = vld [vmem:[%s2332_s1 + $0x170] sm:$0xff]  }
  0x2d   : > { %v1904_v5 = vld [vmem:[%s2332_s1 + $0x128] sm:$0xff]   ;;  %v1906_v7 = vld [vmem:[%s2332_s1 + $0x130] sm:$0xff]   ;;  %v1907_v8 = vld [vmem:[%s2332_s1 + $0x178] sm:$0xff]  }
  0x2e   : > { %1717 = vmatpush3.bf16.msra.mxu0 %v1863_v17  ;;  %v1908_v9 = vld [vmem:[%s2332_s1 + $0x138] sm:$0xff]   ;;  %v1912_v28 = vld [vmem:[%s2332_s1 + $0x1c0] sm:$0xff]  }
  0x2f   : > { %1718 = vmatprep.subr.bf16.mxu0 %v1864_v18 }
  0x32   : > { %1719 = vmatpush3.bf16.msra.mxu0 %v1865_v19 }
  0x33   : > { %1720 = vmatprep.subr.bf16.mxu0 %v1866_v21 }
  0x36   : > { %1721 = vmatpush3.bf16.msra.mxu0 %v1867_v22 }
  0x37   : > { %1722 = vmatprep.subr.bf16.mxu0 %v1868_v23 }
  0x3a   : > { %1723 = vmatpush3.bf16.msra.mxu0 %v1869_v24 }
  0x3b   : > { %1810 = vmatprep.subr.bf16.mxu0 %v1955_v27 }
  0x3d   : > { %442 = vmatmul.mubr.bf16.vlgmr.msra.gmra.mrb[0].mxu0 %v1870_v25 }
  0x3e   : > { %1811 = vmatpush3.bf16.msra.mxu0 %v2086_v26  ;;  %1812 = vmatprep.mubr.msk.bf16.mxu0 %vm1956_vm0, %v1955_v27 }
  0x3f   : > { %1816 = vmatprep.subr.bf16.mxu0 %v1955_v27 }
 0x110   : > { %v1724_v29 = vpop.f32.mrb[0].mxu0 }
 0x111   : > { %v1725_v30 = vpop.f32.mrb[1].mxu0 }
 0x112   : > { %v1726_v31 = vadd.f32 %v1725_v30, %v1724_v29  ;;  %v1727_v32 = vpop.f32.mrb[2].mxu0 }
 0x113   : > { %v1728_v33 = vpop.f32.mrb[3].mxu0 }
 0x114   : > { %v450_v34 = vmax.f32 %v1726_v31, 0.0  ;;  %v1729_v35 = vadd.f32 %v1728_v33, %v1727_v32 }
 0x116   : > { %v1698_v36 = vpack.c.bf16 %v450_v34, %v450_v34  ;;  %v451_v37 = vmax.f32 %v1729_v35, 0.0 }
 0x118   : > { %461 = vst.msk [vmem:[%s2106_s10] sm:$0xf] %vm460_vm1, %v1698_v36  ;;  %v452_v40 = vpack.c.bf16 %v451_v37, %v450_v34  ;;  %v1699_v41 = vpack.c.bf16 %v451_v37, %v451_v37 }
 0x11a   : > { %462 = vst.msk [vmem:[%s2106_s10 + $0x4] sm:$0xf] %vm460_vm1, %v1699_v41  ;;  %1807 = vmatmul.mubr.msk.bf16.vlgmr.msra.gmra.mrb[0].mxu1 %vm469_vm2, %v452_v40  ;;  %v1914_v40 = vld [vmem:[%s2332_s1 + $0x1c8] sm:$0xff]  }
 0x11b   : > { %1733 = vmatpush3.bf16.msra.mxu1 %v1875_v38  ;;  %691 = vmatprep.mubr.bf16.mxu1 %v1892_v39  ;;  %v1913_v38 = vld [vmem:[%s2332_s1 + $0x180] sm:$0xff]   ;;  %v1930_v39 = vld [vmem:[%s2064_s9 + $0x34] ss:$8 sps:$4 sm:$0xff]   ;;  %v1915_v41 = vld [vmem:[%s2332_s1 + $0x188] sm:$0xff]  }
 0x11c   : > { %1734 = vmatprep.subr.bf16.mxu1 %v1876_v42  ;;  %v1916_v42 = vld [vmem:[%s2332_s1 + $0x1d0] sm:$0xff]  }
 0x11f   : > { %1735 = vmatpush3.bf16.msra.mxu1 %v1877_v43  ;;  %v1917_v43 = vld [vmem:[%s2332_s1 + $0x190] sm:$0xff]  }
 0x120   : > { %1736 = vmatprep.subr.bf16.mxu1 %v1878_v44  ;;  %v1918_v44 = vld [vmem:[%s2332_s1 + $0x1d8] sm:$0xff]  }
 0x123   : > { %1737 = vmatpush3.bf16.msra.mxu1 %v1879_v45  ;;  %v1919_v45 = vld [vmem:[%s2332_s1 + $0x198] sm:$0xff]  }
 0x124   : > { %1738 = vmatprep.subr.bf16.mxu1 %v1880_v46  ;;  %v1920_v46 = vld [vmem:[%s2332_s1 + $0x1e0] sm:$0xff]  }
 0x127   : > { %1739 = vmatpush3.bf16.msra.mxu1 %v1881_v47  ;;  %v1921_v47 = vld [vmem:[%s2332_s1 + $0x1a0] sm:$0xff]  }
 0x128   : > { %1740 = vmatprep.subr.bf16.mxu1 %v1882_v48  ;;  %v1922_v48 = vld [vmem:[%s2332_s1 + $0x1e8] sm:$0xff]  }
 0x12b   : > { %1741 = vmatpush3.bf16.msra.mxu1 %v1883_v49  ;;  %v1923_v49 = vld [vmem:[%s2332_s1 + $0x1a8] sm:$0xff]  }
 0x12c   : > { %1742 = vmatprep.subr.bf16.mxu1 %v1884_v50  ;;  %v1924_v50 = vld [vmem:[%s2332_s1 + $0x1f0] sm:$0xff]  }
 0x12f   : > { %1743 = vmatpush3.bf16.msra.mxu1 %v1885_v51  ;;  %v1925_v51 = vld [vmem:[%s2332_s1 + $0x1b0] sm:$0xff]  }
 0x130   : > { %1744 = vmatprep.subr.bf16.mxu1 %v1886_v52  ;;  %v1926_v52 = vld [vmem:[%s2332_s1 + $0x1f8] sm:$0xff]  }
 0x133   : > { %1745 = vmatpush3.bf16.msra.mxu1 %v1887_v53  ;;  %v1927_v53 = vld [vmem:[%s2332_s1 + $0x1b8] sm:$0xff]  }
 0x134   : > { %1746 = vmatprep.subr.bf16.mxu1 %v1888_v54  ;;  %v1928_v54 = vld [vmem:[%s2064_s9 + $0x30] ss:$8 sps:$4 sm:$0xff]   ;;  %s1706_s9 = sshll.u32 (%p2013_p5), %s1998_s18, 3 }
 0x135   : > { %s1259_s13 = scalar_lea.vmem (%p2013_p5), %s2334_s3, %s1706_s9 }
 0x137   : > { %1747 = vmatpush3.bf16.msra.mxu1 %v1889_v55 }
 0x138   : > { %1756 = vmatprep.subr.bf16.mxu1 %v1893_v56 }
 0x13a   : > { %692 = vmatmul.mubr.bf16.vlgmr.msra.gmra.mrb[4].mxu1 %v1890_v57 }
 0x13b   : > { %1757 = vmatpush3.bf16.msra.mxu1 %v1894_v58  ;;  %934 = vmatprep.mubr.bf16.mxu1 %v1911_v59 }
 0x13c   : > { %1758 = vmatprep.subr.bf16.mxu1 %v1895_v60 }
 0x13f   : > { %1759 = vmatpush3.bf16.msra.mxu1 %v1896_v61 }
 0x140   : > { %1760 = vmatprep.subr.bf16.mxu1 %v1897_v62 }
 0x143   : > { %1761 = vmatpush3.bf16.msra.mxu1 %v1898_v63 }
 0x144   : > { %1762 = vmatprep.subr.bf16.mxu1 %v1899_v0 }
 0x147   : > { %1763 = vmatpush3.bf16.msra.mxu1 %v1900_v1 }
 0x148   : > { %1764 = vmatprep.subr.bf16.mxu1 %v1901_v2 }
 0x14b   : > { %1765 = vmatpush3.bf16.msra.mxu1 %v1902_v3 }
 0x14c   : > { %1766 = vmatprep.subr.bf16.mxu1 %v1903_v4 }
 0x14f   : > { %1767 = vmatpush3.bf16.msra.mxu1 %v1904_v5 }
 0x150   : > { %1768 = vmatprep.subr.bf16.mxu1 %v1905_v6 }
 0x153   : > { %1769 = vmatpush3.bf16.msra.mxu1 %v1906_v7 }
 0x154   : > { %1770 = vmatprep.subr.bf16.mxu1 %v1907_v8 }
 0x157   : > { %1771 = vmatpush3.bf16.msra.mxu1 %v1908_v9 }
 0x158   : > { %1822 = vmatprep.subr.bf16.mxu1 %v1955_v27 }
 0x15a   : > { %935 = vmatmul.mubr.bf16.vlgmr.msra.gmra.mrb[8].mxu1 %v1909_v10 }
 0x15b   : > { %1823 = vmatpush3.bf16.msra.mxu1 %v2086_v26  ;;  %1824 = vmatprep.mubr.msk.bf16.mxu1 %vm1956_vm0, %v1955_v27 }
 0x1ed   : > { %v507_v11 = vpop.f32.mrb[0].mxu1 }
 0x1ee   : > { %515 = vst.msk [vmem:[%s2211_s17] sm:$0xff] %vm514_vm3, %v507_v11  ;;  %v1808_v12 = vpop.f32.mrb[1].mxu1 }
 0x1ef   : > { %v510_v13 = vpop.f32.mrb[2].mxu1 }
 0x1f0   : > { %516 = vst.msk [vmem:[%s2211_s17 + $0x8] sm:$0xff] %vm514_vm3, %v510_v13  ;;  %v1809_v14 = vpop.f32.mrb[3].mxu1 }
 0x1f1   : > { %v1275_v14 = vld [vmem:[%s2106_s10] sm:$0xff] (%p2013_p5)  }
 0x1f2   : > { %1276 = vst [vmem:[%s1259_s13] sm:$0xff] (%p2013_p5), %v1275_v14  }
 0x20d   : > { %v1748_v15 = vpop.f32.mrb[4].mxu1 }
 0x20e   : > { %v1749_v16 = vpop.f32.mrb[5].mxu1 }
 0x20f   : > { %v1750_v17 = vadd.f32 %v1749_v16, %v1748_v15  ;;  %v1751_v18 = vpop.f32.mrb[6].mxu1 }
 0x210   : > { %v1752_v19 = vpop.f32.mrb[7].mxu1 }
 0x211   : > { %v700_v20 = vmax.f32 %v1750_v17, 0.0  ;;  %v1753_v21 = vadd.f32 %v1752_v19, %v1751_v18 }
 0x213   : > { %v1700_v22 = vpack.c.bf16 %v700_v20, %v700_v20  ;;  %v701_v23 = vmax.f32 %v1753_v21, 0.0 }
 0x215   : > { %1565 = vst.msk [vmem:[%s2106_s10 + $0x8] sm:$0xf] %vm460_vm1, %v1700_v22  ;;  %v702_v24 = vpack.c.bf16 %v701_v23, %v700_v20  ;;  %v1701_v25 = vpack.c.bf16 %v701_v23, %v701_v23 }
 0x217   : > { %1566 = vst.msk [vmem:[%s2106_s10 + $0xc] sm:$0xf] %vm460_vm1, %v1701_v25  ;;  %1813 = vmatmul.mubr.msk.bf16.vlgmr.msra.gmra.mrb[4].mxu0 %vm469_vm2, %v702_v24 }
 0x218   : > { %1817 = vmatpush3.bf16.msra.mxu0 %v2086_v26  ;;  %1818 = vmatprep.mubr.msk.bf16.mxu0 %vm1956_vm0, %v1955_v27 }
 0x219   : > { %1780 = vmatprep.subr.bf16.mxu0 %v1912_v28 }
 0x21e   : > { %v1279_v15 = vld [vmem:[%s2106_s10 + $0x8] sm:$0xff] (%p2013_p5)  }
 0x21f   : > { %1280 = vst [vmem:[%s1259_s13 + $0x10] sm:$0xff] (%p2013_p5), %v1279_v15  }
 0x22d   : > { %v1772_v29 = vpop.f32.mrb[8].mxu1 }
 0x22e   : > { %v1773_v30 = vpop.f32.mrb[9].mxu1 }
 0x22f   : > { %v1774_v31 = vadd.f32 %v1773_v30, %v1772_v29  ;;  %v1775_v32 = vpop.f32.mrb[10].mxu1 }
 0x230   : > { %v1776_v33 = vpop.f32.mrb[11].mxu1 }
 0x231   : > { %v943_v34 = vmax.f32 %v1774_v31, 0.0  ;;  %v1777_v35 = vadd.f32 %v1776_v33, %v1775_v32 }
 0x233   : > { %v1702_v36 = vpack.c.bf16 %v943_v34, %v943_v34  ;;  %v944_v37 = vmax.f32 %v1777_v35, 0.0 }
 0x235   : > { %1624 = vst.msk [vmem:[%s2106_s10 + $0x10] sm:$0xf] %vm460_vm1, %v1702_v36  ;;  %v945_v26 = vpack.c.bf16 %v944_v37, %v943_v34  ;;  %v1703_v27 = vpack.c.bf16 %v944_v37, %v944_v37 }
 0x237   : > { %1625 = vst.msk [vmem:[%s2106_s10 + $0x14] sm:$0xf] %vm460_vm1, %v1703_v27  ;;  %1819 = vmatmul.mubr.msk.bf16.vlgmr.msra.gmra.mrb[8].mxu0 %vm469_vm2, %v945_v26 }
 0x238   : > { %1781 = vmatpush3.bf16.msra.mxu0 %v1913_v38  ;;  %1177 = vmatprep.mubr.bf16.mxu0 %v1930_v39 }
 0x239   : > { %1782 = vmatprep.subr.bf16.mxu0 %v1914_v40 }
 0x23c   : > { %1783 = vmatpush3.bf16.msra.mxu0 %v1915_v41 }
 0x23d   : > { %1784 = vmatprep.subr.bf16.mxu0 %v1916_v42 }
 0x23e   : > { %v1283_v16 = vld [vmem:[%s2106_s10 + $0x10] sm:$0xff] (%p2013_p5)  }
 0x23f   : > { %1284 = vst [vmem:[%s1259_s13 + $0x20] sm:$0xff] (%p2013_p5), %v1283_v16  }
 0x240   : > { %1785 = vmatpush3.bf16.msra.mxu0 %v1917_v43 }
 0x241   : > { %1786 = vmatprep.subr.bf16.mxu0 %v1918_v44 }
 0x244   : > { %1787 = vmatpush3.bf16.msra.mxu0 %v1919_v45 }
 0x245   : > { %1788 = vmatprep.subr.bf16.mxu0 %v1920_v46 }
 0x248   : > { %1789 = vmatpush3.bf16.msra.mxu0 %v1921_v47 }
 0x249   : > { %1790 = vmatprep.subr.bf16.mxu0 %v1922_v48 }
 0x24c   : > { %1791 = vmatpush3.bf16.msra.mxu0 %v1923_v49 }
 0x24d   : > { %1792 = vmatprep.subr.bf16.mxu0 %v1924_v50 }
 0x250   : > { %1793 = vmatpush3.bf16.msra.mxu0 %v1925_v51 }
 0x251   : > { %1794 = vmatprep.subr.bf16.mxu0 %v1926_v52 }
 0x254   : > { %1795 = vmatpush3.bf16.msra.mxu0 %v1927_v53 }
 0x257   : > { %1178 = vmatmul.mubr.bf16.vlgmr.msra.gmra.mrb[12].mxu0 %v1928_v54 }
 0x2ea   : > { %v750_v55 = vpop.f32.mrb[4].mxu0 }
 0x2eb   : > { %1568 = vst.msk [vmem:[%s2211_s17 + $0x10] sm:$0xff] %vm514_vm3, %v750_v55  ;;  %v1814_v56 = vpop.f32.mrb[5].mxu0 }
 0x2ec   : > { %v753_v57 = vpop.f32.mrb[6].mxu0 }
 0x2ed   : > { %1569 = vst.msk [vmem:[%s2211_s17 + $0x18] sm:$0xff] %vm514_vm3, %v753_v57  ;;  %v1815_v58 = vpop.f32.mrb[7].mxu0 }
 0x30a   : > { %v993_v59 = vpop.f32.mrb[8].mxu0 }
 0x30b   : > { %1627 = vst.msk [vmem:[%s2211_s17 + $0x20] sm:$0xff] %vm514_vm3, %v993_v59  ;;  %v1820_v60 = vpop.f32.mrb[9].mxu0 }
 0x30c   : > { %v996_v61 = vpop.f32.mrb[10].mxu0 }
 0x30d   : > { %1628 = vst.msk [vmem:[%s2211_s17 + $0x28] sm:$0xff] %vm514_vm3, %v996_v61  ;;  %v1821_v62 = vpop.f32.mrb[11].mxu0 }
 0x32a   : > { %v1796_v63 = vpop.f32.mrb[12].mxu0 }
 0x32b   : > { %v1797_v0 = vpop.f32.mrb[13].mxu0 }
 0x32c   : > { %v1798_v1 = vadd.f32 %v1797_v0, %v1796_v63  ;;  %v1799_v2 = vpop.f32.mrb[14].mxu0 }
 0x32d   : > { %v1800_v3 = vpop.f32.mrb[15].mxu0 }
 0x32e   : > { %v1186_v4 = vmax.f32 %v1798_v1, 0.0  ;;  %v1801_v5 = vadd.f32 %v1800_v3, %v1799_v2 }
 0x330   : > { %v1704_v6 = vpack.c.bf16 %v1186_v4, %v1186_v4  ;;  %v1187_v7 = vmax.f32 %v1801_v5, 0.0 }
 0x332   : > { %1683 = vst.msk [vmem:[%s2106_s10 + $0x18] sm:$0xf] %vm460_vm1, %v1704_v6  ;;  %v1188_v8 = vpack.c.bf16 %v1187_v7, %v1186_v4  ;;  %v1705_v9 = vpack.c.bf16 %v1187_v7, %v1187_v7 }
 0x334   : > { %1684 = vst.msk [vmem:[%s2106_s10 + $0x1c] sm:$0xf] %vm460_vm1, %v1705_v9  ;;  %1825 = vmatmul.mubr.msk.bf16.vlgmr.msra.gmra.mrb[12].mxu1 %vm469_vm2, %v1188_v8 }
 0x33b   : > { %v1287_v17 = vld [vmem:[%s2106_s10 + $0x18] sm:$0xff] (%p2013_p5)  }
 0x33c   : > { %1288 = vst [vmem:[%s1259_s13 + $0x30] sm:$0xff] (%p2013_p5), %v1287_v17  }
 0x404   : > { %1256 = sbr.rel (!%p2013_p5) target bundleno = 1035 (0x40b), region = 74 }
 0x407   : > { %v1236_v10 = vpop.f32.mrb[12].mxu1 }
 0x408   : > { %1686 = vst.msk [vmem:[%s2211_s17 + $0x30] sm:$0xff] %vm514_vm3, %v1236_v10  ;;  %v1826_v11 = vpop.f32.mrb[13].mxu1 }
 0x409   : > { %v1239_v12 = vpop.f32.mrb[14].mxu1 }
 0x40a   : > { %1687 = vst.msk [vmem:[%s2211_s17 + $0x38] sm:$0xff] %vm514_vm3, %v1239_v12  ;;  %v1827_v13 = vpop.f32.mrb[15].mxu1 }
 0x40b PF: > { %1329 = sbr.rel (!%p2013_p5) target bundleno = 1043 (0x413), region = 115  ;;  %s1707_s14 = sshll.u32 (%p2013_p5), %s1998_s18, 4  ;;  %v1374_v18 = vld [vmem:[%s2211_s17] sm:$0xff] (%p2013_p5)  ;;  %v1376_v19 = vld [vmem:[%s2211_s17 + $0x8] sm:$0xff] (%p2013_p5)  ;;  %v1378_v20 = vld [vmem:[%s2211_s17 + $0x10] sm:$0xff] (%p2013_p5) }
 0x40c   : > { %s1332_s20 = scalar_lea.vmem (%p2013_p5), %s2335_s4, %s1707_s14  ;;  %v1380_v21 = vld [vmem:[%s2211_s17 + $0x18] sm:$0xff] (%p2013_p5)  ;;  %v1382_v22 = vld [vmem:[%s2211_s17 + $0x20] sm:$0xff] (%p2013_p5)  ;;  %v1384_v23 = vld [vmem:[%s2211_s17 + $0x28] sm:$0xff] (%p2013_p5) }
 0x40d   : > { %1375 = vst [vmem:[%s1332_s20] sm:$0xff] (%p2013_p5), %v1374_v18  ;;  %1377 = vst [vmem:[%s1332_s20 + $0x8] sm:$0xff] (%p2013_p5), %v1376_v19 }
 0x40e   : > { %1379 = vst [vmem:[%s1332_s20 + $0x20] sm:$0xff] (%p2013_p5), %v1378_v20  ;;  %1381 = vst [vmem:[%s1332_s20 + $0x28] sm:$0xff] (%p2013_p5), %v1380_v21 }
 0x40f   : > { %1383 = vst [vmem:[%s1332_s20 + $0x40] sm:$0xff] (%p2013_p5), %v1382_v22  ;;  %1385 = vst [vmem:[%s1332_s20 + $0x48] sm:$0xff] (%p2013_p5), %v1384_v23  ;;  %v1386_v24 = vld [vmem:[%s2211_s17 + $0x30] sm:$0xff] (%p2013_p5) }
 0x410   : > { %1387 = vst [vmem:[%s1332_s20 + $0x60] sm:$0xff] (%p2013_p5), %v1386_v24 }
 0x411   : > { %v1388_v25 = vld [vmem:[%s2211_s17 + $0x38] sm:$0xff] (%p2013_p5) }
 0x412   : > { %1389 = vst [vmem:[%s1332_s20 + $0x68] sm:$0xff] %v1388_v25 }
 0x413 PF: > { %p12_p10 = scmp.ge.s32.totalorder %s2001_s19, 4   ;;  %s2337_s15 = smov %s1949_s16 }
 0x414   : > { %s2338_s16 = smov %s2011_s22  ;;  %s2339_s17 = smov %s2001_s19 }
 0x415   :  { %14 = sbr.rel (!%p12_p10) target bundleno = 2 (0x2), region = 208 }

// kernel: _lambda_.11
= control target key start
LH: loop header
LB: loop body
LE: loop exit
PB: predicated region body
PF: predicated region fallthrough
CT: control target
= control target key end

     0   :  { %10 = vsyncpa [#allocation4], 0  ;;  %s3206_s0 = inlined_call_operand.vmem [shape: bf16[4,128,136], index: 0, kind: input, shape index: {}]   ;;  %s3207_s1 = inlined_call_operand.vmem [shape: bf16[4,136,8], index: 1, kind: input, shape index: {}]   ;;  %s3208_s2 = inlined_call_operand.vmem [shape: bf16[8,2], index: 2, kind: input, shape index: {}]   ;;  %s3209_s3 = inlined_call_operand.hbm [shape: bf16[4,128,8], index: 3, kind: output, shape index: {0}]   ;;  %s3210_s4 = inlined_call_operand.vmem [shape: f32[4,128,2], index: 4, kind: output, shape index: {1}]  }
   0x1   :  { %12 = vsyncpa [#allocation4 + $0x1], 0  ;;  %s2572_s15 = smov 0   ;;  %s2574_s16 = smov 0  }
   0x2   :  { %s2576_s17 = smov 0   ;;  %s2578_s18 = smov 0  }
   0x3 LB: > { %s2593_s19 = sadd.s32 4294967295, %s2537_s18   ;;  %s1992_s20 = sadd.s32 4294967294, %s2537_s18   ;;  %s2537_s18 = sphi %s2578_s18, %s3216_s18   ;;  %s2533_s17 = sphi %s2576_s17, %s3215_s17   ;;  %s2529_s16 = sphi %s2574_s16, %s3214_s16   ;;  %s2525_s15 = sphi %s2572_s15, %s3213_s15  }
   0x4   : > { %s2597_s21 = sadd.s32 1, %s2537_s18   ;;  %s25_s22 = sadd.s32 1, %s2533_s17 }
   0x5   : > { %s22_s23 = ssub.s32 %s2537_s18, %s2597_s21  ;;  %p32_p0 = scmp.ne.s32.totalorder %s2533_s17, %s2529_s16 }
   0x6   : > { %p23_p1 = scmp.eq.s32.totalorder %s22_s23, 0  ;;  %p33_p2 = scmp.eq.s32.totalorder %s2537_s18, 0 }
   0x7   : > { %p104_p3 = scmp.eq.s32.totalorder %s2593_s19, 1  ;;  %p109_p4 = scmp.ne.s32.totalorder %s2529_s16, %s2525_s15 }
   0x8   : > { %s2609_s24 = scalar_select %p23_p1, %s2533_s17, %s25_s22  }
   0x9   : > { %p34_p5 = por %p33_p2, %p32_p0  ;;  %p2611_p6 = por %p104_p3, %p32_p0 }
   0xa   : > { %p110_p7 = scmp.eq.s32.totalorder %s1992_s20, 1  ;;  %p1994_p9 = scmp.ge.s32.totalorder %s2537_s18, 2 }
   0xc   : > { %p2615_p8 = por %p110_p7, %p109_p4  ;;  %158 = sbr.rel (%p1994_p9) target bundleno = 39 (0x27), region = 24 }
  0x13   : > { %161 = sbr.rel (!%p34_p5) target bundleno = 39 (0x27), region = 28  ;;  %s163_s27 = sand.u32 (%p34_p5), 1, %s2533_s17  }
  0x14   : > { %s2267_s28 = sshll.u32 (%p34_p5), %s2537_s18, 6  ;;  %s1995_s29 = sshll.u32 (%p34_p5), %s163_s27, 8 }
  0x15   : > { %s2627_s6 = scalar_lea.vmem (%p34_p5), %s3206_s0, %s2267_s28  ;;  %s2632_s7 = scalar_lea.vmem (%p34_p5), [#allocation2], %s1995_s29 }
  0x16   : > { %v259_v0 = vld [vmem:[%s2627_s6] sm:$0xff] (%p34_p5)  ;;  %v261_v1 = vld [vmem:[%s2627_s6 + $0x8] sm:$0xff] (%p34_p5)  ;;  %v263_v2 = vld [vmem:[%s2627_s6 + $0x10] sm:$0xff] (%p34_p5) }
  0x17   : > { %260 = vst [vmem:[%s2632_s7] sm:$0xff] (%p34_p5), %v259_v0  ;;  %262 = vst [vmem:[%s2632_s7 + $0x8] sm:$0xff] (%p34_p5), %v261_v1  ;;  %v265_v3 = vld [vmem:[%s2627_s6 + $0x18] sm:$0xff] (%p34_p5)  ;;  %v267_v4 = vld [vmem:[%s2627_s6 + $0x20] sm:$0xff] (%p34_p5) }
  0x18   : > { %264 = vst [vmem:[%s2632_s7 + $0x10] sm:$0xff] (%p34_p5), %v263_v2  ;;  %v269_v5 = vld [vmem:[%s2627_s6 + $0x28] sm:$0xff] (%p34_p5)  ;;  %266 = vst [vmem:[%s2632_s7 + $0x18] sm:$0xff] (%p34_p5), %v265_v3  ;;  %v271_v6 = vld [vmem:[%s2627_s6 + $0x30] sm:$0xff] (%p34_p5) }
  0x19   : > { %268 = vst [vmem:[%s2632_s7 + $0x20] sm:$0xff] (%p34_p5), %v267_v4  ;;  %270 = vst [vmem:[%s2632_s7 + $0x28] sm:$0xff] (%p34_p5), %v269_v5  ;;  %v273_v7 = vld [vmem:[%s2627_s6 + $0x38] sm:$0xff] (%p34_p5)  ;;  %v275_v8 = vld [vmem:[%s2627_s6 + $0x80] sm:$0xff] (%p34_p5) }
  0x1a   : > { %272 = vst [vmem:[%s2632_s7 + $0x30] sm:$0xff] %v271_v6  ;;  %274 = vst [vmem:[%s2632_s7 + $0x38] sm:$0xff] %v273_v7  ;;  %v277_v9 = vld [vmem:[%s2627_s6 + $0x88] sm:$0xff]  ;;  %v279_v10 = vld [vmem:[%s2627_s6 + $0x90] sm:$0xff] }
  0x1b   : > { %276 = vst [vmem:[%s2632_s7 + $0x40] sm:$0xff] %v275_v8  ;;  %v281_v11 = vld [vmem:[%s2627_s6 + $0x98] sm:$0xff]  ;;  %278 = vst [vmem:[%s2632_s7 + $0x48] sm:$0xff] %v277_v9  ;;  %v283_v12 = vld [vmem:[%s2627_s6 + $0xa0] sm:$0xff] }
  0x1c   : > { %280 = vst [vmem:[%s2632_s7 + $0x50] sm:$0xff] %v279_v10  ;;  %282 = vst [vmem:[%s2632_s7 + $0x58] sm:$0xff] %v281_v11  ;;  %v285_v13 = vld [vmem:[%s2627_s6 + $0xa8] sm:$0xff]  ;;  %v287_v14 = vld [vmem:[%s2627_s6 + $0xb0] sm:$0xff] }
  0x1d   : > { %284 = vst [vmem:[%s2632_s7 + $0x60] sm:$0xff] %v283_v12  ;;  %286 = vst [vmem:[%s2632_s7 + $0x68] sm:$0xff] %v285_v13  ;;  %v289_v15 = vld [vmem:[%s2627_s6 + $0xb8] sm:$0xff]  ;;  %v291_v16 = vld [vmem:[%s2627_s6 + $0x100] sm:$0xff] }
  0x1e   : > { %288 = vst [vmem:[%s2632_s7 + $0x70] sm:$0xff] %v287_v14  ;;  %v293_v17 = vld [vmem:[%s2627_s6 + $0x108] sm:$0xff]  ;;  %290 = vst [vmem:[%s2632_s7 + $0x78] sm:$0xff] %v289_v15  ;;  %v295_v18 = vld [vmem:[%s2627_s6 + $0x110] sm:$0xff] }
  0x1f   : > { %292 = vst [vmem:[%s2632_s7 + $0x80] sm:$0xff] %v291_v16  ;;  %294 = vst [vmem:[%s2632_s7 + $0x88] sm:$0xff] %v293_v17  ;;  %v297_v19 = vld [vmem:[%s2627_s6 + $0x118] sm:$0xff]  ;;  %v299_v20 = vld [vmem:[%s2627_s6 + $0x120] sm:$0xff] }
  0x20   : > { %296 = vst [vmem:[%s2632_s7 + $0x90] sm:$0xff] %v295_v18  ;;  %298 = vst [vmem:[%s2632_s7 + $0x98] sm:$0xff] %v297_v19  ;;  %v301_v21 = vld [vmem:[%s2627_s6 + $0x128] sm:$0xff]  ;;  %v303_v22 = vld [vmem:[%s2627_s6 + $0x130] sm:$0xff] }
  0x21   : > { %300 = vst [vmem:[%s2632_s7 + $0xa0] sm:$0xff] %v299_v20  ;;  %v305_v23 = vld [vmem:[%s2627_s6 + $0x138] sm:$0xff]  ;;  %302 = vst [vmem:[%s2632_s7 + $0xa8] sm:$0xff] %v301_v21  ;;  %v307_v24 = vld [vmem:[%s2627_s6 + $0x180] sm:$0xff] }
  0x22   : > { %304 = vst [vmem:[%s2632_s7 + $0xb0] sm:$0xff] %v303_v22  ;;  %306 = vst [vmem:[%s2632_s7 + $0xb8] sm:$0xff] %v305_v23  ;;  %v309_v25 = vld [vmem:[%s2627_s6 + $0x188] sm:$0xff]  ;;  %v311_v26 = vld [vmem:[%s2627_s6 + $0x190] sm:$0xff] }
  0x23   : > { %308 = vst [vmem:[%s2632_s7 + $0xc0] sm:$0xff] %v307_v24  ;;  %310 = vst [vmem:[%s2632_s7 + $0xc8] sm:$0xff] %v309_v25  ;;  %v313_v27 = vld [vmem:[%s2627_s6 + $0x198] sm:$0xff]  ;;  %v315_v28 = vld [vmem:[%s2627_s6 + $0x1a0] sm:$0xff] }
  0x24   : > { %312 = vst [vmem:[%s2632_s7 + $0xd0] sm:$0xff] %v311_v26  ;;  %v317_v29 = vld [vmem:[%s2627_s6 + $0x1a8] sm:$0xff]  ;;  %314 = vst [vmem:[%s2632_s7 + $0xd8] sm:$0xff] %v313_v27  ;;  %v319_v30 = vld [vmem:[%s2627_s6 + $0x1b0] sm:$0xff] }
  0x25   : > { %316 = vst [vmem:[%s2632_s7 + $0xe0] sm:$0xff] %v315_v28  ;;  %318 = vst [vmem:[%s2632_s7 + $0xe8] sm:$0xff] %v317_v29  ;;  %v321_v31 = vld [vmem:[%s2627_s6 + $0x1b8] sm:$0xff] }
  0x26   : > { %320 = vst [vmem:[%s2632_s7 + $0xf0] sm:$0xff] %v319_v30  ;;  %322 = vst [vmem:[%s2632_s7 + $0xf8] sm:$0xff] %v321_v31 }
  0x27 PF: > { %p1999_p10 = scmp.ge.s32.totalorder %s2537_s18, 1  ;;  %p327_p11 = scmp.lt.s32.totalorder %s2537_s18, 3 }
  0x29   : > { %p328_p12 = pnand %p1999_p10, %p327_p11 }
  0x2a   : > { %v2419_v32 = vld [vmem:[%s3207_s1] sm:$0xff] (!%p328_p12)   ;;  %v2539_v33 = vmov (!%p328_p12), 0   ;;  %v2421_v35 = vld [vmem:[%s3207_s1 + $0x8] sm:$0xff] (!%p328_p12)   ;;  %s2714_s22 = sand.u32 (!%p328_p12), 1, %s2529_s16   ;;  %v2423_v37 = vld [vmem:[%s3207_s1 + $0x10] sm:$0xff] (!%p328_p12)   ;;  %vm480_vm0 = vcmask (!%p328_p12), 64512  }
  0x2b   : > { %331 = sbr.rel (%p328_p12) target bundleno = 636 (0x27c), region = 66  ;;  %497 = vmatprep.subr.bf16.mxu0 (!%p328_p12), %v2539_v33  ;;  %829 = vmatprep.subr.bf16.mxu1 (!%p328_p12), %v2539_v33  ;;  %v2420_v34 = vld [vmem:[%s3207_s1 + $0x44] sm:$0xff] (!%p328_p12)   ;;  %v2422_v36 = vld [vmem:[%s3207_s1 + $0x4c] sm:$0xff] (!%p328_p12)   ;;  %v2424_v38 = vld [vmem:[%s3207_s1 + $0x54] sm:$0xff] (!%p328_p12)   ;;  %s2000_s8 = sshll.u32 (!%p328_p12), %s2714_s22, 8  ;;  %vm493_vm1 = vcmask (!%p328_p12), 1043456  }
  0x2c   : > { %498 = vmatpush1.bf16.msra.mxu0 (!%p328_p12), %v2419_v32  ;;  %830 = vmatpush1.bf16.msra.mxu1 (!%p328_p12), %v2420_v34  ;;  %v2425_v39 = vld [vmem:[%s3207_s1 + $0x18] sm:$0xff] (!%p328_p12)   ;;  %v2427_v41 = vld [vmem:[%s3207_s1 + $0x20] sm:$0xff] (!%p328_p12)   ;;  %s2743_s13 = scalar_lea.vmem (!%p328_p12), [#allocation2], %s2000_s8  ;;  %v2429_v43 = vld [vmem:[%s3207_s1 + $0x28] sm:$0xff] (!%p328_p12)   ;;  %s2001_s11 = sshll.u32 (!%p328_p12), %s2714_s22, 7  ;;  %vm602_vm2 = vcmask (!%p328_p12), 60416  }
  0x2d   : > { %499 = vmatprep.subr.bf16.mxu0 (!%p328_p12), %v2539_v33  ;;  %831 = vmatprep.subr.bf16.mxu1 (!%p328_p12), %v2539_v33  ;;  %v2426_v40 = vld [vmem:[%s3207_s1 + $0x5c] sm:$0xff] (!%p328_p12)   ;;  %v2428_v42 = vld [vmem:[%s3207_s1 + $0x64] sm:$0xff] (!%p328_p12)   ;;  %v2430_v45 = vld [vmem:[%s3207_s1 + $0x6c] sm:$0xff] (!%p328_p12)   ;;  %vm691_vm3 = vcmask (!%p328_p12), 15360   ;;  %s3030_s12 = scalar_lea.vmem (!%p328_p12), [#allocation5], %s2000_s8  ;;  %s1688_s8 = scalar_lea.sflag (!%p328_p12), [#allocation4], %s2714_s22 }
  0x2e   : > { %v2439_v44 = vld [vmem:[%s2743_s13 + $0x4] ss:$8 sps:$4 sm:$0xff] (!%p328_p12)   ;;  %v2431_v47 = vld [vmem:[%s3207_s1 + $0x30] sm:$0xff] (!%p328_p12)   ;;  %v2433_v49 = vld [vmem:[%s3207_s1 + $0x38] sm:$0xff] (!%p328_p12)  }
  0x2f   : > { %v2442_v46 = vld [vmem:[%s2743_s13 + $0x44] ss:$8 sps:$4 sm:$0xff] (!%p328_p12)   ;;  %2020 = vmatprep.mubr.msk.bf16.mxu0 (!%p328_p12), %vm480_vm0, %v2439_v44  ;;  %v2432_v48 = vld [vmem:[%s3207_s1 + $0x74] sm:$0xff] (!%p328_p12)   ;;  %v2434_v50 = vld [vmem:[%s3207_s1 + $0x7c] sm:$0xff] (!%p328_p12)  }
  0x30   : > { %500 = vmatpush1.bf16.msra.mxu0 (!%p328_p12), %v2421_v35  ;;  %832 = vmatpush1.bf16.msra.mxu1 (!%p328_p12), %v2422_v36  ;;  %v2435_v51 = vld [vmem:[%s3207_s1 + $0x40] ss:$0 sps:$4 sm:$0xff] (!%p328_p12)   ;;  %v2436_v52 = vld [vmem:[%s3207_s1 + $0x84] ss:$0 sps:$4 sm:$0xff] (!%p328_p12)   ;;  %v2443_v57 = vld [vmem:[%s3207_s1 + $0x88] sm:$0xff] (!%p328_p12)  }
  0x31   : > { %501 = vmatprep.subr.bf16.mxu0 (!%p328_p12), %v2539_v33  ;;  %833 = vmatprep.subr.bf16.mxu1 (!%p328_p12), %v2539_v33  ;;  %v495_v53 = vsel (!%p328_p12), %vm493_vm1, %v2435_v51, 0  ;;  %v827_v54 = vsel (!%p328_p12), %vm493_vm1, %v2436_v52, 0  ;;  %v2437_v55 = vld [vmem:[%s2743_s13] ss:$8 sps:$4 sm:$0xff] (!%p328_p12)   ;;  %v2445_v58 = vld [vmem:[%s2743_s13 + $0x14] ss:$8 sps:$4 sm:$0xff] (!%p328_p12)  }
  0x32   : > { %2078 = vmatprep.mubr.msk.bf16.mxu1 %vm480_vm0, %v2442_v46  ;;  %v2440_v56 = vld [vmem:[%s2743_s13 + $0x40] ss:$8 sps:$4 sm:$0xff]   ;;  %v2448_v59 = vld [vmem:[%s2743_s13 + $0x54] ss:$8 sps:$4 sm:$0xff]   ;;  %v2447_v61 = vld [vmem:[%s2743_s13 + $0x10] ss:$8 sps:$4 sm:$0xff]  }
  0x33   : > { %v2444_v60 = vld [vmem:[%s3207_s1 + $0x90] sm:$0xff]   ;;  %v2450_v62 = vld [vmem:[%s3207_s1 + $0x98] sm:$0xff]   ;;  %v2453_v0 = vld [vmem:[%s2743_s13 + $0x24] ss:$8 sps:$4 sm:$0xff]  }
  0x34   : > { %502 = vmatpush1.bf16.msra.mxu0 %v2423_v37  ;;  %834 = vmatpush1.bf16.msra.mxu1 %v2424_v38  ;;  %v2451_v63 = vld [vmem:[%s2743_s13 + $0x50] ss:$8 sps:$4 sm:$0xff]   ;;  %v2456_v1 = vld [vmem:[%s2743_s13 + $0x64] ss:$8 sps:$4 sm:$0xff]   ;;  %v2455_v3 = vld [vmem:[%s2743_s13 + $0x20] ss:$8 sps:$4 sm:$0xff]  }
  0x35   : > { %503 = vmatprep.subr.bf16.mxu0 %v2539_v33  ;;  %835 = vmatprep.subr.bf16.mxu1 %v2539_v33  ;;  %v2452_v2 = vld [vmem:[%s3207_s1 + $0xa0] sm:$0xff]   ;;  %v2461_v5 = vld [vmem:[%s2743_s13 + $0x34] ss:$8 sps:$4 sm:$0xff]   ;;  %v2458_v6 = vld [vmem:[%s3207_s1 + $0xa8] sm:$0xff]  }
  0x36   : > { %v2459_v4 = vld [vmem:[%s2743_s13 + $0x60] ss:$8 sps:$4 sm:$0xff]   ;;  %v2464_v7 = vld [vmem:[%s2743_s13 + $0x74] ss:$8 sps:$4 sm:$0xff]   ;;  %v2463_v9 = vld [vmem:[%s2743_s13 + $0x30] ss:$8 sps:$4 sm:$0xff]  }
  0x37   : > { %v2460_v8 = vld [vmem:[%s3207_s1 + $0xb0] sm:$0xff]   ;;  %v2466_v11 = vld [vmem:[%s3207_s1 + $0xb8] sm:$0xff]   ;;  %v2472_v12 = vld [vmem:[%s2743_s13 + $0x84] ss:$8 sps:$4 sm:$0xff]  }
  0x38   : > { %504 = vmatpush1.bf16.msra.mxu0 %v2425_v39  ;;  %836 = vmatpush1.bf16.msra.mxu1 %v2426_v40  ;;  %v2467_v10 = vld [vmem:[%s2743_s13 + $0x70] ss:$8 sps:$4 sm:$0xff]   ;;  %v2468_v13 = vld [vmem:[%s3207_s1 + $0xc0] sm:$0xff]   ;;  %v2469_v14 = vld [vmem:[%s3207_s1 + $0xc8] ss:$0 sps:$4 sm:$0xff]  }
  0x39   : > { %505 = vmatprep.subr.bf16.mxu0 %v2539_v33  ;;  %837 = vmatprep.subr.bf16.mxu1 %v2539_v33  ;;  %v1156_v15 = vsel %vm493_vm1, %v2469_v14, 0  ;;  %v2470_v16 = vld [vmem:[%s2743_s13 + $0x80] ss:$8 sps:$4 sm:$0xff]   ;;  %v2473_v17 = vld [vmem:[%s3207_s1 + $0xcc] sm:$0xff]   ;;  %v2475_v18 = vld [vmem:[%s2743_s13 + $0x94] ss:$8 sps:$4 sm:$0xff]  }
  0x3a   : > { %v2474_v19 = vld [vmem:[%s3207_s1 + $0xd4] sm:$0xff]   ;;  %v2478_v21 = vld [vmem:[%s3207_s1 + $0xdc] sm:$0xff]   ;;  %v2480_v22 = vld [vmem:[%s2743_s13 + $0xa4] ss:$8 sps:$4 sm:$0xff]  }
  0x3b   : > { %v2477_v20 = vld [vmem:[%s2743_s13 + $0x90] ss:$8 sps:$4 sm:$0xff]   ;;  %v2479_v23 = vld [vmem:[%s3207_s1 + $0xe4] sm:$0xff]   ;;  %v2485_v26 = vld [vmem:[%s2743_s13 + $0xb4] ss:$8 sps:$4 sm:$0xff]  }
  0x3c   : > { %506 = vmatpush1.bf16.msra.mxu0 %v2427_v41  ;;  %838 = vmatpush1.bf16.msra.mxu1 %v2428_v42  ;;  %v2482_v24 = vld [vmem:[%s2743_s13 + $0xa0] ss:$8 sps:$4 sm:$0xff]   ;;  %v2483_v25 = vld [vmem:[%s3207_s1 + $0xec] sm:$0xff]   ;;  %v2484_v27 = vld [vmem:[%s3207_s1 + $0xf4] sm:$0xff]  }
  0x3d   : > { %507 = vmatprep.subr.bf16.mxu0 %v2539_v33  ;;  %839 = vmatprep.subr.bf16.mxu1 %v2539_v33  ;;  %v2487_v28 = vld [vmem:[%s2743_s13 + $0xb0] ss:$8 sps:$4 sm:$0xff]   ;;  %v2488_v29 = vld [vmem:[%s3207_s1 + $0xfc] sm:$0xff]   ;;  %v2493_v30 = vld [vmem:[%s2743_s13 + $0xc4] ss:$8 sps:$4 sm:$0xff]  }
  0x3e   : > { %v2489_v31 = vld [vmem:[%s3207_s1 + $0x104] sm:$0xff]   ;;  %v2490_v32 = vld [vmem:[%s3207_s1 + $0x10c] ss:$0 sps:$4 sm:$0xff]   ;;  %v2494_v36 = vld [vmem:[%s2743_s13 + $0xd4] ss:$8 sps:$4 sm:$0xff]  }
  0x3f   : > { %v1485_v34 = vsel %vm493_vm1, %v2490_v32, 0  ;;  %v2491_v35 = vld [vmem:[%s2743_s13 + $0xc0] ss:$8 sps:$4 sm:$0xff]   ;;  %v2496_v37 = vld [vmem:[%s2743_s13 + $0xd0] ss:$8 sps:$4 sm:$0xff]  }
  0x40   : > { %508 = vmatpush1.bf16.msra.mxu0 %v2429_v43  ;;  %840 = vmatpush1.bf16.msra.mxu1 %v2430_v45  ;;  %v2497_v38 = vld [vmem:[%s2743_s13 + $0xe4] ss:$8 sps:$4 sm:$0xff]   ;;  %v2499_v39 = vld [vmem:[%s2743_s13 + $0xe0] ss:$8 sps:$4 sm:$0xff]   ;;  %v2500_v40 = vld [vmem:[%s2743_s13 + $0xf4] ss:$8 sps:$4 sm:$0xff]  }
  0x41   : > { %509 = vmatprep.subr.bf16.mxu0 %v2539_v33  ;;  %841 = vmatprep.subr.bf16.mxu1 %v2539_v33  ;;  %v2904_v41 = vld [vmem:[%s3208_s2] sm:$0xf] }
  0x42   : > { %v2910_v42 = vsel %vm493_vm1, %v2904_v41, 0 }
  0x44   : > { %510 = vmatpush1.bf16.msra.mxu0 %v2431_v47  ;;  %842 = vmatpush1.bf16.msra.mxu1 %v2432_v48 }
  0x45   : > { %511 = vmatprep.subr.bf16.mxu0 %v2539_v33  ;;  %843 = vmatprep.subr.bf16.mxu1 %v2539_v33 }
  0x48   : > { %512 = vmatpush1.bf16.msra.mxu0 %v2433_v49  ;;  %844 = vmatpush1.bf16.msra.mxu1 %v2434_v50 }
  0x49   : > { %513 = vmatprep.subr.bf16.mxu0 %v2539_v33  ;;  %845 = vmatprep.subr.bf16.mxu1 %v2539_v33 }
  0x4c   : > { %514 = vmatpush1.bf16.msra.mxu0 %v495_v53  ;;  %846 = vmatpush1.bf16.msra.mxu1 %v827_v54 }
  0x4d   : > { %1158 = vmatprep.subr.bf16.mxu1 %v2539_v33  ;;  %2362 = vmatprep.subr.msk.bf16.mxu0 %vm493_vm1, %v2904_v41 }
  0x4f   : > { %530 = vmatmul.mubr.bf16.vlgmr.msra.gmra.mrb[0].mxu0 %v2437_v55  ;;  %862 = vmatmul.mubr.bf16.vlgmr.msra.gmra.mrb[0].mxu1 %v2440_v56 }
  0x50   : > { %2021 = vmatprep.mubr.msk.bf16.mxu0 %vm480_vm0, %v2445_v58  ;;  %1159 = vmatpush1.bf16.msra.mxu1 %v2443_v57 }
  0x51   : > { %2079 = vmatprep.mubr.msk.bf16.mxu1 %vm480_vm0, %v2448_v59  ;;  %1160 = vmatprep.subr.bf16.mxu1 %v2539_v33 }
  0x52   : > { %2323 = vmatpush3.bf16.msra.mxu0 %v2910_v42 }
  0x53   : > { %2363 = vmatprep.subr.msk.bf16.mxu0 %vm493_vm1, %v2904_v41 }
  0x54   : > { %1161 = vmatpush1.bf16.msra.mxu1 %v2444_v60 }
  0x55   : > { %1162 = vmatprep.subr.bf16.mxu1 %v2539_v33 }
  0x57   : > { %538 = vmatmul.mubr.bf16.gmra.mrb[4].mxu0 %v2447_v61  ;;  %870 = vmatmul.mubr.bf16.gmra.mrb[4].mxu1 %v2451_v63 }
  0x58   : > { %2022 = vmatprep.mubr.msk.bf16.mxu0 %vm480_vm0, %v2453_v0  ;;  %1163 = vmatpush1.bf16.msra.mxu1 %v2450_v62 }
  0x59   : > { %2080 = vmatprep.mubr.msk.bf16.mxu1 %vm480_vm0, %v2456_v1  ;;  %1164 = vmatprep.subr.bf16.mxu1 %v2539_v33 }
  0x5c   : > { %1165 = vmatpush1.bf16.msra.mxu1 %v2452_v2 }
  0x5d   : > { %1166 = vmatprep.subr.bf16.mxu1 %v2539_v33 }
  0x5f   : > { %546 = vmatmul.mubr.bf16.gmra.mrb[8].mxu0 %v2455_v3  ;;  %878 = vmatmul.mubr.bf16.gmra.mrb[8].mxu1 %v2459_v4 }
  0x60   : > { %2023 = vmatprep.mubr.msk.bf16.mxu0 %vm480_vm0, %v2461_v5  ;;  %1167 = vmatpush1.bf16.msra.mxu1 %v2458_v6 }
  0x61   : > { %2081 = vmatprep.mubr.msk.bf16.mxu1 %vm480_vm0, %v2464_v7  ;;  %1168 = vmatprep.subr.bf16.mxu1 %v2539_v33 }
  0x64   : > { %1169 = vmatpush1.bf16.msra.mxu1 %v2460_v8 }
  0x65   : > { %1170 = vmatprep.subr.bf16.mxu1 %v2539_v33 }
  0x67   : > { %554 = vmatmul.mubr.bf16.gmra.mrb[12].mxu0 %v2463_v9  ;;  %886 = vmatmul.mubr.bf16.gmra.mrb[12].mxu1 %v2467_v10 }
  0x68   : > { %1171 = vmatpush1.bf16.msra.mxu1 %v2466_v11  ;;  %2152 = vmatprep.mubr.msk.bf16.mxu1 %vm480_vm0, %v2472_v12 }
  0x69   : > { %1172 = vmatprep.subr.bf16.mxu1 %v2539_v33 }
  0x6c   : > { %1173 = vmatpush1.bf16.msra.mxu1 %v2468_v13 }
  0x6d   : > { %1174 = vmatprep.subr.bf16.mxu1 %v2539_v33 }
  0x70   : > { %1175 = vmatpush1.bf16.msra.mxu1 %v1156_v15 }
  0x71   : > { %1487 = vmatprep.subr.bf16.mxu1 %v2539_v33 }
  0x73   : > { %1191 = vmatmul.mubr.bf16.vlgmr.msra.gmra.mrb[16].mxu1 %v2470_v16 }
  0x74   : > { %1488 = vmatpush1.bf16.msra.mxu1 %v2473_v17  ;;  %2153 = vmatprep.mubr.msk.bf16.mxu1 %vm480_vm0, %v2475_v18 }
  0x75   : > { %1489 = vmatprep.subr.bf16.mxu1 %v2539_v33 }
  0x78   : > { %1490 = vmatpush1.bf16.msra.mxu1 %v2474_v19 }
  0x79   : > { %1491 = vmatprep.subr.bf16.mxu1 %v2539_v33 }
  0x7b   : > { %1199 = vmatmul.mubr.bf16.gmra.mrb[20].mxu1 %v2477_v20 }
  0x7c   : > { %1492 = vmatpush1.bf16.msra.mxu1 %v2478_v21  ;;  %2154 = vmatprep.mubr.msk.bf16.mxu1 %vm480_vm0, %v2480_v22 }
  0x7d   : > { %1493 = vmatprep.subr.bf16.mxu1 %v2539_v33 }
  0x80   : > { %1494 = vmatpush1.bf16.msra.mxu1 %v2479_v23 }
  0x81   : > { %1495 = vmatprep.subr.bf16.mxu1 %v2539_v33 }
  0x83   : > { %1207 = vmatmul.mubr.bf16.gmra.mrb[24].mxu1 %v2482_v24 }
  0x84   : > { %1496 = vmatpush1.bf16.msra.mxu1 %v2483_v25  ;;  %2155 = vmatprep.mubr.msk.bf16.mxu1 %vm480_vm0, %v2485_v26 }
  0x85   : > { %1497 = vmatprep.subr.bf16.mxu1 %v2539_v33 }
  0x88   : > { %1498 = vmatpush1.bf16.msra.mxu1 %v2484_v27 }
  0x89   : > { %1499 = vmatprep.subr.bf16.mxu1 %v2539_v33 }
  0x8b   : > { %1215 = vmatmul.mubr.bf16.gmra.mrb[28].mxu1 %v2487_v28 }
  0x8c   : > { %1500 = vmatpush1.bf16.msra.mxu1 %v2488_v29  ;;  %2226 = vmatprep.mubr.msk.bf16.mxu1 %vm480_vm0, %v2493_v30 }
  0x8d   : > { %1501 = vmatprep.subr.bf16.mxu1 %v2539_v33 }
  0x90   : > { %1502 = vmatpush1.bf16.msra.mxu1 %v2489_v31 }
  0x91   : > { %1503 = vmatprep.subr.bf16.mxu1 %v2539_v33  ;;  %v2502_v33 = vld [vmem:[%s2743_s13 + $0xf0] ss:$8 sps:$4 sm:$0xff]   ;;  %s2922_s13 = scalar_lea.vmem [#allocation3], %s2001_s11 }
  0x94   : > { %1504 = vmatpush1.bf16.msra.mxu1 %v1485_v34 }
  0x97   : > { %1520 = vmatmul.mubr.bf16.vlgmr.msra.gmra.mrb[32].mxu1 %v2491_v35 }
  0x98   : > { %2227 = vmatprep.mubr.msk.bf16.mxu1 %vm480_vm0, %v2494_v36 }
  0x9f   : > { %1528 = vmatmul.mubr.bf16.gmra.mrb[36].mxu1 %v2496_v37 }
  0xa0   : > { %2228 = vmatprep.mubr.msk.bf16.mxu1 %vm480_vm0, %v2497_v38 }
  0xa7   : > { %1536 = vmatmul.mubr.bf16.gmra.mrb[40].mxu1 %v2499_v39 }
  0xa8   : > { %2229 = vmatprep.mubr.msk.bf16.mxu1 %vm480_vm0, %v2500_v40 }
  0xaf   : > { %1544 = vmatmul.mubr.bf16.gmra.mrb[44].mxu1 %v2502_v33 }
 0x122   : > { %v531_v43 = vpop.f32.mrb[0].mxu0  ;;  %v863_v44 = vpop.f32.mrb[0].mxu1 }
 0x123   : > { %v562_v45 = vmax.f32 %v531_v43, 0.0  ;;  %v533_v46 = vpop.f32.mrb[1].mxu0  ;;  %v2916_v47 = vmax.f32 %v863_v44, 0.0  ;;  %v865_v48 = vpop.f32.mrb[1].mxu1 }
 0x124   : > { %v534_v49 = vpop.f32.mrb[2].mxu0  ;;  %v866_v50 = vpop.f32.mrb[2].mxu1 }
 0x125   : > { %v2268_v51 = vpack.c.bf16 %v562_v45, %v562_v45  ;;  %v563_v52 = vmax.f32 %v534_v49, 0.0  ;;  %v536_v53 = vpop.f32.mrb[3].mxu0  ;;  %v2276_v54 = vpack.c.bf16 %v2916_v47, %v2916_v47  ;;  %v2920_v55 = vmax.f32 %v866_v50, 0.0  ;;  %v868_v56 = vpop.f32.mrb[3].mxu1 }
 0x127   : > { %603 = vst.msk [vmem:[%s2922_s13] sm:$0xf] %vm602_vm2, %v2268_v51  ;;  %v570_v57 = vpack.c.bf16 %v563_v52, %v562_v45  ;;  %v2269_v58 = vpack.c.bf16 %v563_v52, %v563_v52  ;;  %2090 = vst.msk [vmem:[%s2922_s13 + $0x20] sm:$0xf] %vm602_vm2, %v2276_v54  ;;  %v902_v59 = vpack.c.bf16 %v2920_v55, %v2916_v47 }
 0x128   : > { %v2277_v60 = vpack.c.bf16 %v2920_v55, %v2920_v55 }
 0x129   : > { %604 = vst.msk [vmem:[%s2922_s13 + $0x4] sm:$0xf] %vm602_vm2, %v2269_v58  ;;  %2324 = vmatprep.mubr.msk.bf16.mxu0 %vm480_vm0, %v570_v57 }
 0x12a   : > { %2091 = vst.msk [vmem:[%s2922_s13 + $0x24] sm:$0xf] %vm602_vm2, %v2277_v60  ;;  %v539_v61 = vpop.f32.mrb[4].mxu0  ;;  %v871_v62 = vpop.f32.mrb[4].mxu1 }
 0x12b   : > { %v564_v63 = vmax.f32 %v539_v61, 0.0  ;;  %v541_v0 = vpop.f32.mrb[5].mxu0  ;;  %v2937_v1 = vmax.f32 %v871_v62, 0.0  ;;  %v873_v2 = vpop.f32.mrb[5].mxu1 }
 0x12c   : > { %v542_v3 = vpop.f32.mrb[6].mxu0  ;;  %v874_v4 = vpop.f32.mrb[6].mxu1 }
 0x12d   : > { %v2270_v5 = vpack.c.bf16 %v564_v63, %v564_v63  ;;  %v565_v6 = vmax.f32 %v542_v3, 0.0  ;;  %v544_v7 = vpop.f32.mrb[7].mxu0  ;;  %v2278_v8 = vpack.c.bf16 %v2937_v1, %v2937_v1  ;;  %v2941_v9 = vmax.f32 %v874_v4, 0.0  ;;  %v876_v10 = vpop.f32.mrb[7].mxu1 }
 0x12f   : > { %605 = vst.msk [vmem:[%s2922_s13 + $0x8] sm:$0xf] %vm602_vm2, %v2270_v5  ;;  %v571_v11 = vpack.c.bf16 %v565_v6, %v564_v63  ;;  %v2271_v12 = vpack.c.bf16 %v565_v6, %v565_v6  ;;  %2092 = vst.msk [vmem:[%s2922_s13 + $0x28] sm:$0xf] %vm602_vm2, %v2278_v8  ;;  %v903_v13 = vpack.c.bf16 %v2941_v9, %v2937_v1 }
 0x130   : > { %v2279_v14 = vpack.c.bf16 %v2941_v9, %v2941_v9 }
 0x131   : > { %606 = vst.msk [vmem:[%s2922_s13 + $0xc] sm:$0xf] %vm602_vm2, %v2271_v12  ;;  %2325 = vmatmul.mubr.msk.bf16.vlgmr.msra.gmra.mrb[16].mxu0 %vm480_vm0, %v571_v11 }
 0x132   : > { %2093 = vst.msk [vmem:[%s2922_s13 + $0x2c] sm:$0xf] %vm602_vm2, %v2279_v14  ;;  %v547_v15 = vpop.f32.mrb[8].mxu0  ;;  %2333 = vmatpush3.bf16.msra.mxu0 %v2910_v42  ;;  %v879_v16 = vpop.f32.mrb[8].mxu1 }
 0x133   : > { %v566_v17 = vmax.f32 %v547_v15, 0.0  ;;  %v549_v18 = vpop.f32.mrb[9].mxu0  ;;  %2364 = vmatprep.subr.msk.bf16.mxu0 %vm493_vm1, %v2904_v41  ;;  %v898_v19 = vmax.f32 %v879_v16, 0.0  ;;  %v881_v20 = vpop.f32.mrb[9].mxu1 }
 0x134   : > { %v550_v21 = vpop.f32.mrb[10].mxu0  ;;  %v882_v23 = vpop.f32.mrb[10].mxu1 }
 0x135   : > { %v2272_v22 = vpack.c.bf16 %v566_v17, %v566_v17  ;;  %v567_v24 = vmax.f32 %v550_v21, 0.0  ;;  %v552_v25 = vpop.f32.mrb[11].mxu0  ;;  %v2280_v26 = vpack.c.bf16 %v898_v19, %v898_v19  ;;  %v899_v27 = vmax.f32 %v882_v23, 0.0  ;;  %v884_v28 = vpop.f32.mrb[11].mxu1 }
 0x137   : > { %607 = vst.msk [vmem:[%s2922_s13 + $0x10] sm:$0xf] %vm602_vm2, %v2272_v22  ;;  %v572_v29 = vpack.c.bf16 %v567_v24, %v566_v17  ;;  %v2273_v30 = vpack.c.bf16 %v567_v24, %v567_v24  ;;  %2094 = vst.msk [vmem:[%s2922_s13 + $0x30] sm:$0xf] %vm602_vm2, %v2280_v26  ;;  %v904_v31 = vpack.c.bf16 %v899_v27, %v898_v19 }
 0x138   : > { %v2281_v32 = vpack.c.bf16 %v899_v27, %v899_v27 }
 0x139   : > { %608 = vst.msk [vmem:[%s2922_s13 + $0x14] sm:$0xf] %vm602_vm2, %v2273_v30  ;;  %2328 = vmatprep.mubr.msk.bf16.mxu0 %vm480_vm0, %v572_v29 }
 0x13a   : > { %2095 = vst.msk [vmem:[%s2922_s13 + $0x34] sm:$0xf] %vm602_vm2, %v2281_v32  ;;  %v555_v34 = vpop.f32.mrb[12].mxu0  ;;  %v887_v37 = vpop.f32.mrb[12].mxu1 }
 0x13b   : > { %v568_v35 = vmax.f32 %v555_v34, 0.0  ;;  %v557_v36 = vpop.f32.mrb[13].mxu0  ;;  %v900_v39 = vmax.f32 %v887_v37, 0.0  ;;  %v889_v40 = vpop.f32.mrb[13].mxu1 }
 0x13c   : > { %v558_v38 = vpop.f32.mrb[14].mxu0  ;;  %v890_v44 = vpop.f32.mrb[14].mxu1 }
 0x13d   : > { %v2274_v33 = vpack.c.bf16 %v568_v35, %v568_v35  ;;  %v569_v43 = vmax.f32 %v558_v38, 0.0  ;;  %v560_v45 = vpop.f32.mrb[15].mxu0  ;;  %v2282_v46 = vpack.c.bf16 %v900_v39, %v900_v39  ;;  %v901_v48 = vmax.f32 %v890_v44, 0.0  ;;  %v892_v49 = vpop.f32.mrb[15].mxu1 }
 0x13f   : > { %609 = vst.msk [vmem:[%s2922_s13 + $0x18] sm:$0xf] %vm602_vm2, %v2274_v33  ;;  %v573_v50 = vpack.c.bf16 %v569_v43, %v568_v35  ;;  %v2275_v51 = vpack.c.bf16 %v569_v43, %v569_v43  ;;  %2096 = vst.msk [vmem:[%s2922_s13 + $0x38] sm:$0xf] %vm602_vm2, %v2282_v46  ;;  %v905_v52 = vpack.c.bf16 %v901_v48, %v900_v39 }
 0x140   : > { %v2283_v53 = vpack.c.bf16 %v901_v48, %v901_v48 }
 0x141   : > { %610 = vst.msk [vmem:[%s2922_s13 + $0x1c] sm:$0xf] %vm602_vm2, %v2275_v51  ;;  %2329 = vmatmul.mubr.msk.bf16.gmra.mrb[20].mxu0 %vm480_vm0, %v573_v50 }
 0x142   : > { %2097 = vst.msk [vmem:[%s2922_s13 + $0x3c] sm:$0xf] %vm602_vm2, %v2283_v53  ;;  %2334 = vmatprep.mubr.msk.bf16.mxu0 %vm480_vm0, %v902_v59 }
 0x146   : > { %v1192_v54 = vpop.f32.mrb[16].mxu1 }
 0x147   : > { %v1223_v56 = vmax.f32 %v1192_v54, 0.0  ;;  %v1194_v57 = vpop.f32.mrb[17].mxu1 }
 0x148   : > { %v1195_v58 = vpop.f32.mrb[18].mxu1 }
 0x149   : > { %2335 = vmatmul.mubr.msk.bf16.vlgmr.msra.gmra.mrb[24].mxu0 %vm480_vm0, %v903_v13  ;;  %v2284_v60 = vpack.c.bf16 %v1223_v56, %v1223_v56  ;;  %v1224_v61 = vmax.f32 %v1195_v58, 0.0  ;;  %v1197_v62 = vpop.f32.mrb[19].mxu1 }
 0x14a   : > { %2338 = vmatprep.mubr.msk.bf16.mxu0 %vm480_vm0, %v904_v31  ;;  %2343 = vmatpush3.bf16.msra.mxu0 %v2910_v42 }
 0x14b   : > { %2365 = vmatprep.subr.msk.bf16.mxu0 %vm493_vm1, %v2904_v41  ;;  %2164 = vst.msk [vmem:[%s2922_s13 + $0x40] sm:$0xf] %vm602_vm2, %v2284_v60  ;;  %v1231_v47 = vpack.c.bf16 %v1224_v61, %v1223_v56  ;;  %v2285_v55 = vpack.c.bf16 %v1224_v61, %v1224_v61 }
 0x14d   : > { %2165 = vst.msk [vmem:[%s2922_s13 + $0x44] sm:$0xf] %vm602_vm2, %v2285_v55 }
 0x14e   : > { %v1200_v59 = vpop.f32.mrb[20].mxu1 }
 0x14f   : > { %v1225_v63 = vmax.f32 %v1200_v59, 0.0  ;;  %v1202_v0 = vpop.f32.mrb[21].mxu1 }
 0x150   : > { %v1203_v1 = vpop.f32.mrb[22].mxu1 }
 0x151   : > { %2339 = vmatmul.mubr.msk.bf16.gmra.mrb[28].mxu0 %vm480_vm0, %v905_v52  ;;  %v2286_v2 = vpack.c.bf16 %v1225_v63, %v1225_v63  ;;  %v1226_v3 = vmax.f32 %v1203_v1, 0.0  ;;  %v1205_v4 = vpop.f32.mrb[23].mxu1 }
 0x152   : > { %2344 = vmatprep.mubr.msk.bf16.mxu0 %vm480_vm0, %v1231_v47 }
 0x153   : > { %2166 = vst.msk [vmem:[%s2922_s13 + $0x48] sm:$0xf] %vm602_vm2, %v2286_v2  ;;  %v1232_v41 = vpack.c.bf16 %v1226_v3, %v1225_v63  ;;  %v2287_v5 = vpack.c.bf16 %v1226_v3, %v1226_v3 }
 0x155   : > { %2167 = vst.msk [vmem:[%s2922_s13 + $0x4c] sm:$0xf] %vm602_vm2, %v2287_v5 }
 0x156   : > { %v1208_v6 = vpop.f32.mrb[24].mxu1 }
 0x157   : > { %v1227_v7 = vmax.f32 %v1208_v6, 0.0  ;;  %v1210_v8 = vpop.f32.mrb[25].mxu1 }
 0x158   : > { %v1211_v9 = vpop.f32.mrb[26].mxu1 }
 0x159   : > { %2345 = vmatmul.mubr.msk.bf16.vlgmr.msra.gmra.mrb[32].mxu0 %vm480_vm0, %v1232_v41  ;;  %v2288_v10 = vpack.c.bf16 %v1227_v7, %v1227_v7  ;;  %v1228_v11 = vmax.f32 %v1211_v9, 0.0  ;;  %v1213_v12 = vpop.f32.mrb[27].mxu1 }
 0x15a   : > { %2353 = vmatpush3.bf16.msra.mxu0 %v2910_v42 }
 0x15b   : > { %2168 = vst.msk [vmem:[%s2922_s13 + $0x50] sm:$0xf] %vm602_vm2, %v2288_v10  ;;  %v1233_v13 = vpack.c.bf16 %v1228_v11, %v1227_v7  ;;  %v2289_v14 = vpack.c.bf16 %v1228_v11, %v1228_v11 }
 0x15d   : > { %2169 = vst.msk [vmem:[%s2922_s13 + $0x54] sm:$0xf] %vm602_vm2, %v2289_v14  ;;  %2348 = vmatprep.mubr.msk.bf16.mxu0 %vm480_vm0, %v1233_v13 }
 0x15e   : > { %v1216_v15 = vpop.f32.mrb[28].mxu1 }
 0x15f   : > { %v1229_v16 = vmax.f32 %v1216_v15, 0.0  ;;  %v1218_v17 = vpop.f32.mrb[29].mxu1 }
 0x160   : > { %v1219_v18 = vpop.f32.mrb[30].mxu1 }
 0x161   : > { %v2290_v19 = vpack.c.bf16 %v1229_v16, %v1229_v16  ;;  %v1230_v20 = vmax.f32 %v1219_v18, 0.0  ;;  %v1221_v21 = vpop.f32.mrb[31].mxu1 }
 0x163   : > { %2170 = vst.msk [vmem:[%s2922_s13 + $0x58] sm:$0xf] %vm602_vm2, %v2290_v19  ;;  %v1234_v42 = vpack.c.bf16 %v1230_v20, %v1229_v16  ;;  %v2291_v22 = vpack.c.bf16 %v1230_v20, %v1230_v20 }
 0x165   : > { %2171 = vst.msk [vmem:[%s2922_s13 + $0x5c] sm:$0xf] %vm602_vm2, %v2291_v22  ;;  %2349 = vmatmul.mubr.msk.bf16.gmra.mrb[36].mxu0 %vm480_vm0, %v1234_v42 }
 0x16a   : > { %v1521_v23 = vpop.f32.mrb[32].mxu1 }
 0x16b   : > { %v1552_v24 = vmax.f32 %v1521_v23, 0.0  ;;  %v1523_v25 = vpop.f32.mrb[33].mxu1 }
 0x16c   : > { %v1524_v26 = vpop.f32.mrb[34].mxu1 }
 0x16d   : > { %v2292_v27 = vpack.c.bf16 %v1552_v24, %v1552_v24  ;;  %v1553_v28 = vmax.f32 %v1524_v26, 0.0  ;;  %v1526_v29 = vpop.f32.mrb[35].mxu1 }
 0x16f   : > { %2238 = vst.msk [vmem:[%s2922_s13 + $0x60] sm:$0xf] %vm602_vm2, %v2292_v27  ;;  %v1560_v30 = vpack.c.bf16 %v1553_v28, %v1552_v24  ;;  %v2293_v31 = vpack.c.bf16 %v1553_v28, %v1553_v28 }
 0x171   : > { %2239 = vst.msk [vmem:[%s2922_s13 + $0x64] sm:$0xf] %vm602_vm2, %v2293_v31  ;;  %2354 = vmatprep.mubr.msk.bf16.mxu0 %vm480_vm0, %v1560_v30 }
 0x172   : > { %v1529_v32 = vpop.f32.mrb[36].mxu1 }
 0x173   : > { %v1554_v34 = vmax.f32 %v1529_v32, 0.0  ;;  %v1531_v35 = vpop.f32.mrb[37].mxu1 }
 0x174   : > { %v1532_v36 = vpop.f32.mrb[38].mxu1 }
 0x175   : > { %v2294_v37 = vpack.c.bf16 %v1554_v34, %v1554_v34  ;;  %v1555_v38 = vmax.f32 %v1532_v36, 0.0  ;;  %v1534_v39 = vpop.f32.mrb[39].mxu1 }
 0x177   : > { %2240 = vst.msk [vmem:[%s2922_s13 + $0x68] sm:$0xf] %vm602_vm2, %v2294_v37  ;;  %v1561_v40 = vpack.c.bf16 %v1555_v38, %v1554_v34  ;;  %v2295_v33 = vpack.c.bf16 %v1555_v38, %v1555_v38 }
 0x179   : > { %2241 = vst.msk [vmem:[%s2922_s13 + $0x6c] sm:$0xf] %vm602_vm2, %v2295_v33  ;;  %2355 = vmatmul.mubr.msk.bf16.vlgmr.msra.gmra.mrb[40].mxu0 %vm480_vm0, %v1561_v40 }
 0x17a   : > { %v1537_v43 = vpop.f32.mrb[40].mxu1 }
 0x17b   : > { %v1556_v44 = vmax.f32 %v1537_v43, 0.0  ;;  %v1539_v45 = vpop.f32.mrb[41].mxu1 }
 0x17c   : > { %v1540_v46 = vpop.f32.mrb[42].mxu1 }
 0x17d   : > { %v2296_v48 = vpack.c.bf16 %v1556_v44, %v1556_v44  ;;  %v1557_v49 = vmax.f32 %v1540_v46, 0.0  ;;  %v1542_v50 = vpop.f32.mrb[43].mxu1 }
 0x17f   : > { %2242 = vst.msk [vmem:[%s2922_s13 + $0x70] sm:$0xf] %vm602_vm2, %v2296_v48  ;;  %v1562_v51 = vpack.c.bf16 %v1557_v49, %v1556_v44  ;;  %v2297_v52 = vpack.c.bf16 %v1557_v49, %v1557_v49 }
 0x181   : > { %2243 = vst.msk [vmem:[%s2922_s13 + $0x74] sm:$0xf] %vm602_vm2, %v2297_v52  ;;  %2358 = vmatprep.mubr.msk.bf16.mxu0 %vm480_vm0, %v1562_v51 }
 0x182   : > { %v1545_v53 = vpop.f32.mrb[44].mxu1 }
 0x183   : > { %v1558_v54 = vmax.f32 %v1545_v53, 0.0  ;;  %v1547_v56 = vpop.f32.mrb[45].mxu1 }
 0x184   : > { %v1548_v57 = vpop.f32.mrb[46].mxu1 }
 0x185   : > { %v2298_v58 = vpack.c.bf16 %v1558_v54, %v1558_v54  ;;  %v1559_v60 = vmax.f32 %v1548_v57, 0.0  ;;  %v1550_v61 = vpop.f32.mrb[47].mxu1 }
 0x187   : > { %2244 = vst.msk [vmem:[%s2922_s13 + $0x78] sm:$0xf] %vm602_vm2, %v2298_v58  ;;  %v1563_v62 = vpack.c.bf16 %v1559_v60, %v1558_v54  ;;  %v2299_v47 = vpack.c.bf16 %v1559_v60, %v1559_v60 }
 0x189   : > { %2245 = vst.msk [vmem:[%s2922_s13 + $0x7c] sm:$0xf] %vm602_vm2, %v2299_v47  ;;  %2359 = vmatmul.mubr.msk.bf16.gmra.mrb[44].mxu0 %vm480_vm0, %v1563_v62 }
 0x204   : > { %v2326_v55 = vpop.f32.mrb[16].mxu0 }
 0x205   : > { %694 = vst.msk [vmem:[%s3030_s12 + $0x10] sm:$0xff] %vm691_vm3, %v2326_v55  ;;  %v660_v59 = vpop.f32.mrb[17].mxu0 }
 0x206   : > { %692 = vst.msk [vmem:[%s3030_s12] sm:$0xff] %vm691_vm3, %v660_v59  ;;  %v2327_v63 = vpop.f32.mrb[18].mxu0 }
 0x207   : > { %695 = vst.msk [vmem:[%s3030_s12 + $0x18] sm:$0xff] %vm691_vm3, %v2327_v63  ;;  %v663_v0 = vpop.f32.mrb[19].mxu0 }
 0x208   : > { %693 = vst.msk [vmem:[%s3030_s12 + $0x8] sm:$0xff] %vm691_vm3, %v663_v0 }
 0x214   : > { %v2330_v1 = vpop.f32.mrb[20].mxu0 }
 0x215   : > { %698 = vst.msk [vmem:[%s3030_s12 + $0x30] sm:$0xff] %vm691_vm3, %v2330_v1  ;;  %v676_v2 = vpop.f32.mrb[21].mxu0 }
 0x216   : > { %696 = vst.msk [vmem:[%s3030_s12 + $0x20] sm:$0xff] %vm691_vm3, %v676_v2  ;;  %v2331_v3 = vpop.f32.mrb[22].mxu0 }
 0x217   : > { %699 = vst.msk [vmem:[%s3030_s12 + $0x38] sm:$0xff] %vm691_vm3, %v2331_v3  ;;  %v679_v4 = vpop.f32.mrb[23].mxu0 }
 0x218   : > { %697 = vst.msk [vmem:[%s3030_s12 + $0x28] sm:$0xff] %vm691_vm3, %v679_v4 }
 0x21c   : > { %v2336_v41 = vpop.f32.mrb[24].mxu0 }
 0x21d   : > { %2104 = vst.msk [vmem:[%s3030_s12 + $0x50] sm:$0xff] %vm691_vm3, %v2336_v41  ;;  %v989_v5 = vpop.f32.mrb[25].mxu0 }
 0x21e   : > { %2102 = vst.msk [vmem:[%s3030_s12 + $0x40] sm:$0xff] %vm691_vm3, %v989_v5  ;;  %v2337_v6 = vpop.f32.mrb[26].mxu0 }
 0x21f   : > { %2105 = vst.msk [vmem:[%s3030_s12 + $0x58] sm:$0xff] %vm691_vm3, %v2337_v6  ;;  %v992_v7 = vpop.f32.mrb[27].mxu0 }
 0x220   : > { %2103 = vst.msk [vmem:[%s3030_s12 + $0x48] sm:$0xff] %vm691_vm3, %v992_v7 }
 0x224   : > { %v2340_v8 = vpop.f32.mrb[28].mxu0 }
 0x225   : > { %2108 = vst.msk [vmem:[%s3030_s12 + $0x70] sm:$0xff] %vm691_vm3, %v2340_v8  ;;  %v1005_v9 = vpop.f32.mrb[29].mxu0 }
 0x226   : > { %2106 = vst.msk [vmem:[%s3030_s12 + $0x60] sm:$0xff] %vm691_vm3, %v1005_v9  ;;  %v2341_v10 = vpop.f32.mrb[30].mxu0 }
 0x227   : > { %2109 = vst.msk [vmem:[%s3030_s12 + $0x78] sm:$0xff] %vm691_vm3, %v2341_v10  ;;  %v1008_v11 = vpop.f32.mrb[31].mxu0 }
 0x228   : > { %2107 = vst.msk [vmem:[%s3030_s12 + $0x68] sm:$0xff] %vm691_vm3, %v1008_v11 }
 0x22c   : > { %v2346_v12 = vpop.f32.mrb[32].mxu0 }
 0x22d   : > { %2178 = vst.msk [vmem:[%s3030_s12 + $0x90] sm:$0xff] %vm691_vm3, %v2346_v12  ;;  %v1318_v13 = vpop.f32.mrb[33].mxu0 }
 0x22e   : > { %2176 = vst.msk [vmem:[%s3030_s12 + $0x80] sm:$0xff] %vm691_vm3, %v1318_v13  ;;  %v2347_v14 = vpop.f32.mrb[34].mxu0 }
 0x22f   : > { %2179 = vst.msk [vmem:[%s3030_s12 + $0x98] sm:$0xff] %vm691_vm3, %v2347_v14  ;;  %v1321_v15 = vpop.f32.mrb[35].mxu0 }
 0x230   : > { %2177 = vst.msk [vmem:[%s3030_s12 + $0x88] sm:$0xff] %vm691_vm3, %v1321_v15 }
 0x238   : > { %v2350_v16 = vpop.f32.mrb[36].mxu0 }
 0x239   : > { %2182 = vst.msk [vmem:[%s3030_s12 + $0xb0] sm:$0xff] %vm691_vm3, %v2350_v16  ;;  %v1334_v17 = vpop.f32.mrb[37].mxu0 }
 0x23a   : > { %2180 = vst.msk [vmem:[%s3030_s12 + $0xa0] sm:$0xff] %vm691_vm3, %v1334_v17  ;;  %v2351_v18 = vpop.f32.mrb[38].mxu0 }
 0x23b   : > { %2183 = vst.msk [vmem:[%s3030_s12 + $0xb8] sm:$0xff] %vm691_vm3, %v2351_v18  ;;  %v1337_v19 = vpop.f32.mrb[39].mxu0 }
 0x23c   : > { %2181 = vst.msk [vmem:[%s3030_s12 + $0xa8] sm:$0xff] %vm691_vm3, %v1337_v19 }
 0x24c   : > { %v2356_v20 = vpop.f32.mrb[40].mxu0 }
 0x24d   : > { %2252 = vst.msk [vmem:[%s3030_s12 + $0xd0] sm:$0xff] %vm691_vm3, %v2356_v20  ;;  %v1647_v21 = vpop.f32.mrb[41].mxu0 }
 0x24e   : > { %2250 = vst.msk [vmem:[%s3030_s12 + $0xc0] sm:$0xff] %vm691_vm3, %v1647_v21  ;;  %v2357_v42 = vpop.f32.mrb[42].mxu0 }
 0x24f   : > { %2253 = vst.msk [vmem:[%s3030_s12 + $0xd8] sm:$0xff] %vm691_vm3, %v2357_v42  ;;  %v1650_v22 = vpop.f32.mrb[43].mxu0 }
 0x250   : > { %2251 = vst.msk [vmem:[%s3030_s12 + $0xc8] sm:$0xff] %vm691_vm3, %v1650_v22 }
 0x25c   : > { %v2360_v23 = vpop.f32.mrb[44].mxu0 }
 0x25d   : > { %2256 = vst.msk [vmem:[%s3030_s12 + $0xf0] sm:$0xff] %vm691_vm3, %v2360_v23  ;;  %v1663_v24 = vpop.f32.mrb[45].mxu0 }
 0x25e   : > { %2254 = vst.msk [vmem:[%s3030_s12 + $0xe0] sm:$0xff] %vm691_vm3, %v1663_v24  ;;  %v2361_v25 = vpop.f32.mrb[46].mxu0 }
 0x25f   : > { %2257 = vst.msk [vmem:[%s3030_s12 + $0xf8] sm:$0xff] %vm691_vm3, %v2361_v25  ;;  %v1666_v26 = vpop.f32.mrb[47].mxu0 }
 0x260   : > { %2255 = vst.msk [vmem:[%s3030_s12 + $0xe8] sm:$0xff] %vm691_vm3, %v1666_v26 }
 0x261   : > { %s2300_s14 = sshll.u32 %s2593_s19, 9  ;;  %s1721_s20 = sshll.u32 %s2922_s13, 4  ;;  %s1722_s20 = int_to_ptr.vmem [resolvable:$true] %s1721_s20 }
 0x262   : > { %s1704_s28 = scalar_lea.hbm %s3209_s3, %s2300_s14  ;;  %s2540_s29 = smov 512  }
 0x263   : > { %2366 = sst [smem:[#allocation7]] (%p2611_p6), %s2540_s29  ;;  %s2541_s22 = smov 1024  }
 0x264   : > { %2367 = sst [smem:[#allocation7 + $0x1]] (%p2611_p6), %s2541_s22  ;;  %s2542_s30 = smov 8  }
 0x265   : > { %2368 = sst [smem:[#allocation7 + $0x2]] (%p2611_p6), %s2542_s30  ;;  %s2543_s5 = smov 64  }
 0x266   : > { %2369 = sst [smem:[#allocation7 + $0x3]] (%p2611_p6), %s2543_s5  ;;  %s2544_s6 = smov 4  }
 0x267   : > { %2370 = sst [smem:[#allocation7 + $0x4]] (%p2611_p6), %s2543_s5  ;;  %s2545_s7 = smov [#allocation6]  }
 0x268   : > { %2371 = sst [smem:[#allocation7 + $0x5]] (%p2611_p6), %s2544_s6  ;;  %s2546_s9 = smov 0  }
 0x269   : > { %2372 = dma.general (%p2611_p6), %s1722_s20, 2048, %s1704_s28, %s1688_s8, %s2545_s7, [#allocation7], %s2546_s9, 0  }
 0x26a   : > { %1743 = sbr.rel (!%p2611_p6) target bundleno = 636 (0x27c), region = 78  ;;  %s2301_s10 = sshll.u32 (%p2611_p6), %s2593_s19, 6  ;;  %v1836_v27 = vld [vmem:[%s3030_s12] sm:$0xff] (%p2611_p6)  ;;  %v1838_v28 = vld [vmem:[%s3030_s12 + $0x8] sm:$0xff] (%p2611_p6)  ;;  %v1840_v29 = vld [vmem:[%s3030_s12 + $0x10] sm:$0xff] (%p2611_p6) }
 0x26b   : > { %s3125_s8 = scalar_lea.vmem (%p2611_p6), %s3210_s4, %s2301_s10  ;;  %v1842_v30 = vld [vmem:[%s3030_s12 + $0x18] sm:$0xff] (%p2611_p6)  ;;  %v1844_v31 = vld [vmem:[%s3030_s12 + $0x20] sm:$0xff] (%p2611_p6)  ;;  %v1846_v32 = vld [vmem:[%s3030_s12 + $0x28] sm:$0xff] (%p2611_p6) }
 0x26c   : > { %1837 = vst [vmem:[%s3125_s8] sm:$0xff] (%p2611_p6), %v1836_v27  ;;  %1839 = vst [vmem:[%s3125_s8 + $0x8] sm:$0xff] (%p2611_p6), %v1838_v28  ;;  %v1848_v34 = vld [vmem:[%s3030_s12 + $0x30] sm:$0xff] (%p2611_p6)  ;;  %v1850_v35 = vld [vmem:[%s3030_s12 + $0x38] sm:$0xff] (%p2611_p6) }
 0x26d   : > { %1841 = vst [vmem:[%s3125_s8 + $0x10] sm:$0xff] (%p2611_p6), %v1840_v29  ;;  %1843 = vst [vmem:[%s3125_s8 + $0x18] sm:$0xff] (%p2611_p6), %v1842_v30  ;;  %v1852_v36 = vld [vmem:[%s3030_s12 + $0x40] sm:$0xff] (%p2611_p6)  ;;  %v1854_v37 = vld [vmem:[%s3030_s12 + $0x48] sm:$0xff] (%p2611_p6) }
 0x26e   : > { %1845 = vst [vmem:[%s3125_s8 + $0x20] sm:$0xff] (%p2611_p6), %v1844_v31  ;;  %1847 = vst [vmem:[%s3125_s8 + $0x28] sm:$0xff] (%p2611_p6), %v1846_v32  ;;  %v1856_v38 = vld [vmem:[%s3030_s12 + $0x50] sm:$0xff] (%p2611_p6)  ;;  %v1858_v39 = vld [vmem:[%s3030_s12 + $0x58] sm:$0xff] (%p2611_p6) }
 0x26f   : > { %1849 = vst [vmem:[%s3125_s8 + $0x30] sm:$0xff] (%p2611_p6), %v1848_v34  ;;  %1851 = vst [vmem:[%s3125_s8 + $0x38] sm:$0xff] (%p2611_p6), %v1850_v35  ;;  %v1860_v40 = vld [vmem:[%s3030_s12 + $0x60] sm:$0xff] (%p2611_p6)  ;;  %v1862_v33 = vld [vmem:[%s3030_s12 + $0x68] sm:$0xff] (%p2611_p6) }
 0x270   : > { %1853 = vst [vmem:[%s3125_s8 + $0x80] sm:$0xff] (%p2611_p6), %v1852_v36  ;;  %1855 = vst [vmem:[%s3125_s8 + $0x88] sm:$0xff] (%p2611_p6), %v1854_v37  ;;  %v1864_v43 = vld [vmem:[%s3030_s12 + $0x70] sm:$0xff] (%p2611_p6)  ;;  %v1866_v44 = vld [vmem:[%s3030_s12 + $0x78] sm:$0xff] (%p2611_p6) }
 0x271   : > { %1857 = vst [vmem:[%s3125_s8 + $0x90] sm:$0xff] %v1856_v38  ;;  %1859 = vst [vmem:[%s3125_s8 + $0x98] sm:$0xff] %v1858_v39  ;;  %v1868_v45 = vld [vmem:[%s3030_s12 + $0x80] sm:$0xff]  ;;  %v1870_v46 = vld [vmem:[%s3030_s12 + $0x88] sm:$0xff] }
 0x272   : > { %1861 = vst [vmem:[%s3125_s8 + $0xa0] sm:$0xff] %v1860_v40  ;;  %1863 = vst [vmem:[%s3125_s8 + $0xa8] sm:$0xff] %v1862_v33  ;;  %v1872_v48 = vld [vmem:[%s3030_s12 + $0x90] sm:$0xff]  ;;  %v1874_v49 = vld [vmem:[%s3030_s12 + $0x98] sm:$0xff] }
 0x273   : > { %1865 = vst [vmem:[%s3125_s8 + $0xb0] sm:$0xff] %v1864_v43  ;;  %1867 = vst [vmem:[%s3125_s8 + $0xb8] sm:$0xff] %v1866_v44  ;;  %v1876_v50 = vld [vmem:[%s3030_s12 + $0xa0] sm:$0xff]  ;;  %v1878_v51 = vld [vmem:[%s3030_s12 + $0xa8] sm:$0xff] }
 0x274   : > { %1869 = vst [vmem:[%s3125_s8 + $0x100] sm:$0xff] %v1868_v45  ;;  %1871 = vst [vmem:[%s3125_s8 + $0x108] sm:$0xff] %v1870_v46  ;;  %v1880_v52 = vld [vmem:[%s3030_s12 + $0xb0] sm:$0xff]  ;;  %v1882_v53 = vld [vmem:[%s3030_s12 + $0xb8] sm:$0xff] }
 0x275   : > { %1873 = vst [vmem:[%s3125_s8 + $0x110] sm:$0xff] %v1872_v48  ;;  %1875 = vst [vmem:[%s3125_s8 + $0x118] sm:$0xff] %v1874_v49  ;;  %v1884_v54 = vld [vmem:[%s3030_s12 + $0xc0] sm:$0xff]  ;;  %v1886_v56 = vld [vmem:[%s3030_s12 + $0xc8] sm:$0xff] }
 0x276   : > { %1877 = vst [vmem:[%s3125_s8 + $0x120] sm:$0xff] %v1876_v50  ;;  %1879 = vst [vmem:[%s3125_s8 + $0x128] sm:$0xff] %v1878_v51  ;;  %v1888_v57 = vld [vmem:[%s3030_s12 + $0xd0] sm:$0xff]  ;;  %v1890_v58 = vld [vmem:[%s3030_s12 + $0xd8] sm:$0xff] }
 0x277   : > { %1881 = vst [vmem:[%s3125_s8 + $0x130] sm:$0xff] %v1880_v52  ;;  %1883 = vst [vmem:[%s3125_s8 + $0x138] sm:$0xff] %v1882_v53  ;;  %v1892_v60 = vld [vmem:[%s3030_s12 + $0xe0] sm:$0xff]  ;;  %v1894_v61 = vld [vmem:[%s3030_s12 + $0xe8] sm:$0xff] }
 0x278   : > { %1885 = vst [vmem:[%s3125_s8 + $0x180] sm:$0xff] %v1884_v54  ;;  %1887 = vst [vmem:[%s3125_s8 + $0x188] sm:$0xff] %v1886_v56  ;;  %v1896_v62 = vld [vmem:[%s3030_s12 + $0xf0] sm:$0xff]  ;;  %v1898_v47 = vld [vmem:[%s3030_s12 + $0xf8] sm:$0xff] }
 0x279   : > { %1889 = vst [vmem:[%s3125_s8 + $0x190] sm:$0xff] %v1888_v57  ;;  %1891 = vst [vmem:[%s3125_s8 + $0x198] sm:$0xff] %v1890_v58 }
 0x27a   : > { %1893 = vst [vmem:[%s3125_s8 + $0x1a0] sm:$0xff] %v1892_v60  ;;  %1895 = vst [vmem:[%s3125_s8 + $0x1a8] sm:$0xff] %v1894_v61 }
 0x27b   : > { %1897 = vst [vmem:[%s3125_s8 + $0x1b0] sm:$0xff] %v1896_v62  ;;  %1899 = vst [vmem:[%s3125_s8 + $0x1b8] sm:$0xff] %v1898_v47 }
 0x27c PF: > { %s1911_s19 = sand.u32 1, %s2525_s15   ;;  %p2375_p13 = pnand %p1994_p9, %p2615_p8 }
 0x27d   : > { %s1912_s25 = scalar_lea.sflag [#allocation4], %s1911_s19 }
 0x27e   : > { %2520 = dma.done.wait (!%p2375_p13), %s1912_s25, 2048  }
 0x27f   : > { %2522 = vsyncadd (!%p2375_p13), %s1912_s25, 4294965248  ;;  %p15_p0 = scmp.ge.s32.totalorder %s2597_s21, 4   ;;  %s3213_s15 = smov %s2529_s16 }
 0x280   : > { %s3214_s16 = smov %s2533_s17  ;;  %s3215_s17 = smov %s2609_s24 }
 0x281   : > { %s3216_s18 = smov %s2597_s21  ;;  %17 = sbr.rel (!%p15_p0) target bundleno = 3 (0x3), region = 177 }
 0x288   :  { %1924 = vsyncpa [#allocation4], 1 }
 0x289   :  { %1926 = vsyncpa [#allocation4 + $0x1], 1 }

</bundles_post_ra>
